<compile_context>
chip_gen: v7x
topology: tpu7x:2x2x1
jax: 0.10.0
libtpu: 0.0.40
codegen_flags: <defaults>
</compile_context>

<pallas_src>
import functools

import jax
import jax.numpy as jnp
import numpy as np
from jax import lax
from jax.experimental import pallas as pl
from jax.experimental.pallas import tpu as pltpu

_C = 8  # lk chunk size = one sublane group


def _round_up(x: int, m: int) -> int:
    return ((x + m - 1) // m) * m


# ----------------------------------------------------------------------------
# Fused kernel (per batch tile of TB points, batch on the lane axis):
#   kern[(ri,m,lk), n] = sum_f w[(ri,m,lk), f] * feat[f, n]            (MXU)
#   out[m,   n] = sum_lk kern_r*src_r - kern_i*src_i                   (VPU+XLU)
#   out[M+m, n] = sum_lk kern_r*src_i + kern_i*src_r
# The lk axis is processed in chunks of 8 sublanes so the full kern
# intermediate is never materialized; accumulators stay in f32 vregs.
# ----------------------------------------------------------------------------
def _fused_kernel(w_ref, feat_ref, sr_ref, si_ref, out_ref):
    nchunks = w_ref.shape[0]
    C = sr_ref.shape[1]
    M = out_ref.shape[0] // 2
    TB = out_ref.shape[1]

    feat = feat_ref[...]                                     # (f, TB)

    def body(ch, carry):
        out_r, out_i = carry
        kch = jnp.dot(w_ref[ch], feat,
                      preferred_element_type=jnp.float32)    # (2*M*C, TB) f32
        kch = kch.reshape(2 * M, C, TB)                      # sublane split (C=8)
        kr, ki = kch[:M], kch[M:]                            # (M, C, TB)
        sr = sr_ref[ch].astype(jnp.float32)[None]            # (1, C, TB)
        si = si_ref[ch].astype(jnp.float32)[None]
        out_r = out_r + jnp.sum(kr * sr - ki * si, axis=1)   # (M, TB)
        out_i = out_i + jnp.sum(kr * si + ki * sr, axis=1)
        return out_r, out_i

    init = (jnp.zeros((M, TB), jnp.float32), jnp.zeros((M, TB), jnp.float32))
    out_r, out_i = lax.fori_loop(0, nchunks, body, init, unroll=True)

    # (2*M, TB) output block: exact (8,128)-tiled, lane-dense stores.
    out_ref[:M, :] = out_r
    out_ref[M:, :] = out_i


@functools.partial(jax.jit, static_argnames=("TB",))
def _apply_fused(w_pack, feat, sr, si, *, TB):
    nchunks, rows_w, f = w_pack.shape
    C = sr.shape[1]
    M = rows_w // (2 * C)
    n_pad = feat.shape[1]
    grid = (n_pad // TB,)

    lk_tot = nchunks * C
    flops = n_pad * (2 * (2 * M * lk_tot) * f + 8 * M * lk_tot)
    bytes_accessed = (w_pack.size * w_pack.dtype.itemsize
                      + feat.size * feat.dtype.itemsize
                      + sr.size * sr.dtype.itemsize
                      + si.size * si.dtype.itemsize
                      + 2 * M * n_pad * 4)

    return pl.pallas_call(
        _fused_kernel,
        out_shape=jax.ShapeDtypeStruct((2 * M, n_pad), jnp.float32),
        grid_spec=pltpu.PrefetchScalarGridSpec(
            num_scalar_prefetch=0,
            grid=grid,
            in_specs=[
                # W: constant block index -> DMA'd once, VMEM-resident (tiny).
                pl.BlockSpec((nchunks, rows_w, f), lambda i: (0, 0, 0)),
                # Streamed per-point data, batch on the 128-lane axis.
                pl.BlockSpec((f, TB), lambda i: (0, i)),
                pl.BlockSpec((nchunks, C, TB), lambda i: (0, 0, i)),
                pl.BlockSpec((nchunks, C, TB), lambda i: (0, 0, i)),
            ],
            out_specs=pl.BlockSpec((2 * M, TB), lambda i: (0, i)),
        ),
        compiler_params=pltpu.CompilerParams(
            dimension_semantics=("parallel",)),   # megacore-shardable on v7x
        cost_estimate=pl.CostEstimate(flops=flops, transcendentals=0,
                                      bytes_accessed=bytes_accessed),
    )(w_pack, feat, sr, si)


# ----------------------------------------------------------------------------
# JAX port of the module (parameter setup + packing glue in plain JAX)
# ----------------------------------------------------------------------------
class FixedKernelModel:
    def __init__(self, kern_size, im_size, source_maps=None, target_maps=None,
                 feat_dim=16, key=jax.random.PRNGKey(0)):
        if source_maps is None:
            source_maps = jnp.ones((1, *im_size), dtype=jnp.complex64)
        if target_maps is None:
            target_maps = jnp.ones((1, *im_size), dtype=jnp.complex64)
        self.source_maps = source_maps    # stored like nn.Parameter (unused here)
        self.target_maps = target_maps
        self.kern_size = kern_size
        self.im_size = im_size
        self.L = source_maps.shape[0]
        self.M = target_maps.shape[0]
        self.K = int(np.prod(kern_size))
        self.feat_dim = feat_dim
        # TODO(synk): forward_kernel is abstract (raises NotImplementedError) in
        # the reference module; synthesized here as a deterministic linear map
        # feature_vecs -> complex kernels so forward() can be exercised.
        kr_key, ki_key = jax.random.split(key)
        shape = (feat_dim, self.M, self.L, self.K)
        scale = 1.0 / np.sqrt(feat_dim)
        self.W_r = jax.random.normal(kr_key, shape, jnp.float32) * scale
        self.W_i = jax.random.normal(ki_key, shape, jnp.float32) * scale

    # -- reference-semantics kernel map (plain JAX, used for the check) ------
    def forward_kernel(self, feature_vecs):
        """(N, f) float32 -> kern real/imag, each (N, M, L, K) float32."""
        kr = jnp.einsum("nf,fmlk->nmlk", feature_vecs, self.W_r)
        ki = jnp.einsum("nf,fmlk->nmlk", feature_vecs, self.W_i)
        return kr, ki

    # -- fused forward (Pallas) -----------------------------------------------
    def forward(self, feature_vecs, source_pts, L_slc=slice(None),
                batch_tile=512, storage_dtype=jnp.bfloat16):
        """feature_vecs: (..., f) float; source_pts: (..., L', K) complex
        -> target: (..., M) complex64."""
        f, M, C = self.feat_dim, self.M, _C

        # L_slc applied to W *before* the contraction.
        Wr = self.W_r[:, :, L_slc, :]              # (f, M, Lp, K)
        Wi = self.W_i[:, :, L_slc, :]
        Lp, K = Wr.shape[2], Wr.shape[3]
        LK = Lp * K
        LKp = _round_up(LK, C)                     # sublane-aligned, zero padded
        nchunks = LKp // C

        # ---- W -> (nchunks, 2*M*C, f); row-in-chunk = (ri*M + m)*C + j ------
        def pack_w(W):
            W = W.reshape(f, M, LK)
            W = jnp.pad(W, ((0, 0), (0, 0), (0, LKp - LK)))
            return jnp.transpose(W, (1, 2, 0))               # (M, LKp, f)
        w_all = jnp.stack([pack_w(Wr), pack_w(Wi)], axis=0)  # (2, M, LKp, f)
        w_pack = (w_all.reshape(2, M, nchunks, C, f)
                        .transpose(2, 0, 1, 3, 4)
                        .reshape(nchunks, 2 * M * C, f)
                        .astype(storage_dtype))

        # ---- batch / tile geometry ------------------------------------------
        batch_shape = feature_vecs.shape[:-1]
        N = int(np.prod(batch_shape)) if batch_shape else 1
        TB = int(batch_tile)
        assert TB > 0 and TB % 128 == 0, "batch_tile must be a multiple of 128"
        TB = min(TB, _round_up(N, 128))
        # keep >=4 grid steps when the batch allows it (pipelining + megacore)
        while TB > 128 and (N + TB - 1) // TB < 4:
            TB = max(128, (TB // 2) // 128 * 128)
        N_pad = _round_up(N, TB)

        # ---- streamed inputs: feature-major, batch on lanes, no concat ------
        feat_t = (jnp.pad(feature_vecs.reshape(N, f).astype(jnp.float32),
                          ((0, N_pad - N), (0, 0)))
                  .T.astype(storage_dtype))                  # (f, N_pad)
        sp = source_pts.reshape(N, -1)                       # (N, Lp*K)
        assert sp.shape[1] == LK, "source_pts L'*K must match the sliced kernel"

        def pack_src(x):                                     # (N, LK) -> (nchunks, C, N_pad)
            x = jnp.pad(x.astype(storage_dtype),
                        ((0, N_pad - N), (0, LKp - LK)))
            return x.T.reshape(nchunks, C, N_pad)
        sr = pack_src(jnp.real(sp))
        si = pack_src(jnp.imag(sp))

        out = _apply_fused(w_pack, feat_t, sr, si, TB=TB)    # (2*M, N_pad) f32
        target = (out[:M, :N] + 1j * out[M:, :N]).T          # (N, M)
        return target.reshape(*batch_shape, M).astype(jnp.complex64)


# ----------------------------------------------------------------------------
# Demo / correctness checks
# ----------------------------------------------------------------------------
if __name__ == "__main__":
    key = jax.random.PRNGKey(0)
    k_ms, k_mt, k_model, k_feat, k_sr, k_si = jax.random.split(key, 6)

    kern_size = (3, 3)            # K = 9
    im_size = (16, 16)
    L, M = 4, 4
    N, f = 4096, 16               # 8 "parallel" grid steps at TB=512

    source_maps = (jax.random.normal(k_ms, (L, *im_size)) + 0j).astype(jnp.complex64)
    target_maps = (jax.random.normal(k_mt, (M, *im_size)) + 0j).astype(jnp.complex64)
    model = FixedKernelModel(kern_size, im_size, source_maps, target_maps,
                             feat_dim=f, key=k_model)

    feature_vecs = jax.random.normal(k_feat, (N, f), jnp.float32)
    src_r = jax.random.normal(k_sr, (N, L, model.K), jnp.float32)
    src_i = jax.random.normal(k_si, (N, L, model.K), jnp.float32)
    source_pts = (src_r + 1j * src_i).astype(jnp.complex64)

    # Full-precision reference (matches the PyTorch forward semantics).
    kr, ki = model.forward_kernel(feature_vecs)
    kern_c = (kr + 1j * ki).astype(jnp.complex64)                 # (N, M, L, K)
    ref = (kern_c * source_pts[:, None, :, :]).sum(axis=(-2, -1))

    # 1) f32 storage path vs full-precision reference.
    t32 = jax.block_until_ready(
        model.forward(feature_vecs, source_pts, storage_dtype=jnp.float32))
    np.testing.assert_allclose(np.asarray(t32), np.asarray(ref),
                               rtol=5e-3, atol=5e-3)
    assert t32.shape == (N, M) and t32.dtype == jnp.complex64

    # 2) Default bf16-storage path vs reference on bf16-rounded inputs.
    rd = lambda x: x.astype(jnp.bfloat16).astype(jnp.float32)
    kr_b = jnp.einsum("nf,fmlk->nmlk", rd(feature_vecs), rd(model.W_r),
                      precision=jax.lax.Precision.HIGHEST)
    ki_b = jnp.einsum("nf,fmlk->nmlk", rd(feature_vecs), rd(model.W_i),
                      precision=jax.lax.Precision.HIGHEST)
    sr_b = rd(jnp.real(source_pts))[:, None]
    si_b = rd(jnp.imag(source_pts))[:, None]
    ref_bf = ((kr_b * sr_b - ki_b * si_b).sum(axis=(-2, -1))
              + 1j * (kr_b * si_b + ki_b * sr_b).sum(axis=(-2, -1)))
    tbf = jax.block_until_ready(model.forward(feature_vecs, source_pts))
    np.testing.assert_allclose(np.asarray(tbf), np.asarray(ref_bf),
                               rtol=1e-2, atol=1e-2)
    assert tbf.shape == (N, M) and tbf.dtype == jnp.complex64

    # 3) L_slc subset (exercises slice-before-matmul + different LK/chunks).
    src_sub = source_pts[:, 1:3, :]
    t_slc = jax.block_until_ready(
        model.forward(feature_vecs, src_sub, L_slc=slice(1, 3),
                      storage_dtype=jnp.float32))
    ref_slc = (kern_c[:, :, 1:3, :] * src_sub[:, None, :, :]).sum(axis=(-2, -1))
    np.testing.assert_allclose(np.asarray(t_slc), np.asarray(ref_slc),
                               rtol=5e-3, atol=5e-3)

    print("KERNEL_OK")
</pallas_src>

<mosaic_0001>
module attributes {stable_mosaic.version = 11 : i64} {
  func.func @_fused_kernel(%arg0: i32, %arg1: memref<5x64x16xf32, #tpu.memory_space<vmem>>, %arg2: memref<16x512xf32, #tpu.memory_space<vmem>>, %arg3: memref<5x8x512xf32, #tpu.memory_space<vmem>>, %arg4: memref<5x8x512xf32, #tpu.memory_space<vmem>>, %arg5: memref<8x512xf32, #tpu.memory_space<vmem>>) attributes {dimension_semantics = [#tpu.dimension_semantics<parallel>], iteration_bounds = array<i64: 8>, scalar_prefetch = 0 : i64, scratch_operands = 0 : i64, tpu.core_type = #tpu.core_type<tc>, window_params = [{pipeline_mode = #tpu.pipeline_mode<synchronous>, transform_indices = @transform_0, window_bounds = array<i64: 5, 64, 16>}, {transform_indices = @transform_1, window_bounds = array<i64: 16, 512>}, {transform_indices = @transform_2, window_bounds = array<i64: 5, 8, 512>}, {transform_indices = @transform_3, window_bounds = array<i64: 5, 8, 512>}, {transform_indices = @transform_4, window_bounds = array<i64: 8, 512>}]} {
    %c0 = arith.constant 0 : index
    %c0_0 = arith.constant 0 : index
    %0 = vector.load %arg2[%c0, %c0_0] : memref<16x512xf32, #tpu.memory_space<vmem>>, vector<16x512xf32>
    %cst = arith.constant 0.000000e+00 : f32
    %1 = vector.broadcast %cst : f32 to vector<4x512xf32>
    %cst_1 = arith.constant 0.000000e+00 : f32
    %2 = vector.broadcast %cst_1 : f32 to vector<4x512xf32>
    %c0_i32 = arith.constant 0 : i32
    %3 = arith.index_cast %c0_i32 : i32 to index
    %c0_2 = arith.constant 0 : index
    %c0_3 = arith.constant 0 : index
    %4 = vector.load %arg1[%3, %c0_2, %c0_3] : memref<5x64x16xf32, #tpu.memory_space<vmem>>, vector<1x64x16xf32>
    %5 = vector.shape_cast %4 : vector<1x64x16xf32> to vector<64x16xf32>
    %cst_4 = arith.constant dense<0.000000e+00> : vector<64x512xf32>
    %6 = tpu.matmul %5, %0, %cst_4 {dimension_numbers = #tpu.dot_dimension_numbers<[1], [0], [0], [1], [0, 0, 1, 1], [], []>} : vector<64x16xf32>, vector<16x512xf32>, vector<64x512xf32> -> vector<64x512xf32>
    %7 = vector.shape_cast %6 : vector<64x512xf32> to vector<8x8x512xf32>
    %8 = vector.extract_strided_slice %7 {offsets = [0, 0, 0], sizes = [4, 8, 512], strides = [1, 1, 1]} : vector<8x8x512xf32> to vector<4x8x512xf32>
    %9 = vector.extract_strided_slice %7 {offsets = [4, 0, 0], sizes = [4, 8, 512], strides = [1, 1, 1]} : vector<8x8x512xf32> to vector<4x8x512xf32>
    %10 = arith.index_cast %c0_i32 : i32 to index
    %c0_5 = arith.constant 0 : index
    %c0_6 = arith.constant 0 : index
    %11 = vector.load %arg3[%10, %c0_5, %c0_6] : memref<5x8x512xf32, #tpu.memory_space<vmem>>, vector<1x8x512xf32>
    %12 = vector.shape_cast %11 : vector<1x8x512xf32> to vector<8x512xf32>
    %13 = vector.shape_cast %12 : vector<8x512xf32> to vector<1x8x512xf32>
    %14 = arith.index_cast %c0_i32 : i32 to index
    %c0_7 = arith.constant 0 : index
    %c0_8 = arith.constant 0 : index
    %15 = vector.load %arg4[%14, %c0_7, %c0_8] : memref<5x8x512xf32, #tpu.memory_space<vmem>>, vector<1x8x512xf32>
    %16 = vector.shape_cast %15 : vector<1x8x512xf32> to vector<8x512xf32>
    %17 = vector.shape_cast %16 : vector<8x512xf32> to vector<1x8x512xf32>
    %18 = vector.broadcast %13 : vector<1x8x512xf32> to vector<4x8x512xf32>
    %19 = arith.mulf %8, %18 : vector<4x8x512xf32>
    %20 = vector.broadcast %17 : vector<1x8x512xf32> to vector<4x8x512xf32>
    %21 = arith.mulf %9, %20 : vector<4x8x512xf32>
    %22 = arith.subf %19, %21 : vector<4x8x512xf32>
    %cst_9 = arith.constant dense<0.000000e+00> : vector<4x512xf32>
    %23 = vector.multi_reduction <add>, %22, %cst_9 [1] : vector<4x8x512xf32> to vector<4x512xf32>
    %24 = arith.addf %1, %23 : vector<4x512xf32>
    %25 = vector.broadcast %17 : vector<1x8x512xf32> to vector<4x8x512xf32>
    %26 = arith.mulf %8, %25 : vector<4x8x512xf32>
    %27 = vector.broadcast %13 : vector<1x8x512xf32> to vector<4x8x512xf32>
    %28 = arith.mulf %9, %27 : vector<4x8x512xf32>
    %29 = arith.addf %26, %28 : vector<4x8x512xf32>
    %cst_10 = arith.constant dense<0.000000e+00> : vector<4x512xf32>
    %30 = vector.multi_reduction <add>, %29, %cst_10 [1] : vector<4x8x512xf32> to vector<4x512xf32>
    %31 = arith.addf %2, %30 : vector<4x512xf32>
    %c1_i32 = arith.constant 1 : i32
    %32 = arith.index_cast %c1_i32 : i32 to index
    %c0_11 = arith.constant 0 : index
    %c0_12 = arith.constant 0 : index
    %33 = vector.load %arg1[%32, %c0_11, %c0_12] : memref<5x64x16xf32, #tpu.memory_space<vmem>>, vector<1x64x16xf32>
    %34 = vector.shape_cast %33 : vector<1x64x16xf32> to vector<64x16xf32>
    %cst_13 = arith.constant dense<0.000000e+00> : vector<64x512xf32>
    %35 = tpu.matmul %34, %0, %cst_13 {dimension_numbers = #tpu.dot_dimension_numbers<[1], [0], [0], [1], [0, 0, 1, 1], [], []>} : vector<64x16xf32>, vector<16x512xf32>, vector<64x512xf32> -> vector<64x512xf32>
    %36 = vector.shape_cast %35 : vector<64x512xf32> to vector<8x8x512xf32>
    %37 = vector.extract_strided_slice %36 {offsets = [0, 0, 0], sizes = [4, 8, 512], strides = [1, 1, 1]} : vector<8x8x512xf32> to vector<4x8x512xf32>
    %38 = vector.extract_strided_slice %36 {offsets = [4, 0, 0], sizes = [4, 8, 512], strides = [1, 1, 1]} : vector<8x8x512xf32> to vector<4x8x512xf32>
    %39 = arith.index_cast %c1_i32 : i32 to index
    %c0_14 = arith.constant 0 : index
    %c0_15 = arith.constant 0 : index
    %40 = vector.load %arg3[%39, %c0_14, %c0_15] : memref<5x8x512xf32, #tpu.memory_space<vmem>>, vector<1x8x512xf32>
    %41 = vector.shape_cast %40 : vector<1x8x512xf32> to vector<8x512xf32>
    %42 = vector.shape_cast %41 : vector<8x512xf32> to vector<1x8x512xf32>
    %43 = arith.index_cast %c1_i32 : i32 to index
    %c0_16 = arith.constant 0 : index
    %c0_17 = arith.constant 0 : index
    %44 = vector.load %arg4[%43, %c0_16, %c0_17] : memref<5x8x512xf32, #tpu.memory_space<vmem>>, vector<1x8x512xf32>
    %45 = vector.shape_cast %44 : vector<1x8x512xf32> to vector<8x512xf32>
    %46 = vector.shape_cast %45 : vector<8x512xf32> to vector<1x8x512xf32>
    %47 = vector.broadcast %42 : vector<1x8x512xf32> to vector<4x8x512xf32>
    %48 = arith.mulf %37, %47 : vector<4x8x512xf32>
    %49 = vector.broadcast %46 : vector<1x8x512xf32> to vector<4x8x512xf32>
    %50 = arith.mulf %38, %49 : vector<4x8x512xf32>
    %51 = arith.subf %48, %50 : vector<4x8x512xf32>
    %cst_18 = arith.constant dense<0.000000e+00> : vector<4x512xf32>
    %52 = vector.multi_reduction <add>, %51, %cst_18 [1] : vector<4x8x512xf32> to vector<4x512xf32>
    %53 = arith.addf %24, %52 : vector<4x512xf32>
    %54 = vector.broadcast %46 : vector<1x8x512xf32> to vector<4x8x512xf32>
    %55 = arith.mulf %37, %54 : vector<4x8x512xf32>
    %56 = vector.broadcast %42 : vector<1x8x512xf32> to vector<4x8x512xf32>
    %57 = arith.mulf %38, %56 : vector<4x8x512xf32>
    %58 = arith.addf %55, %57 : vector<4x8x512xf32>
    %cst_19 = arith.constant dense<0.000000e+00> : vector<4x512xf32>
    %59 = vector.multi_reduction <add>, %58, %cst_19 [1] : vector<4x8x512xf32> to vector<4x512xf32>
    %60 = arith.addf %31, %59 : vector<4x512xf32>
    %c2_i32 = arith.constant 2 : i32
    %61 = arith.index_cast %c2_i32 : i32 to index
    %c0_20 = arith.constant 0 : index
    %c0_21 = arith.constant 0 : index
    %62 = vector.load %arg1[%61, %c0_20, %c0_21] : memref<5x64x16xf32, #tpu.memory_space<vmem>>, vector<1x64x16xf32>
    %63 = vector.shape_cast %62 : vector<1x64x16xf32> to vector<64x16xf32>
    %cst_22 = arith.constant dense<0.000000e+00> : vector<64x512xf32>
    %64 = tpu.matmul %63, %0, %cst_22 {dimension_numbers = #tpu.dot_dimension_numbers<[1], [0], [0], [1], [0, 0, 1, 1], [], []>} : vector<64x16xf32>, vector<16x512xf32>, vector<64x512xf32> -> vector<64x512xf32>
    %65 = vector.shape_cast %64 : vector<64x512xf32> to vector<8x8x512xf32>
    %66 = vector.extract_strided_slice %65 {offsets = [0, 0, 0], sizes = [4, 8, 512], strides = [1, 1, 1]} : vector<8x8x512xf32> to vector<4x8x512xf32>
    %67 = vector.extract_strided_slice %65 {offsets = [4, 0, 0], sizes = [4, 8, 512], strides = [1, 1, 1]} : vector<8x8x512xf32> to vector<4x8x512xf32>
    %68 = arith.index_cast %c2_i32 : i32 to index
    %c0_23 = arith.constant 0 : index
    %c0_24 = arith.constant 0 : index
    %69 = vector.load %arg3[%68, %c0_23, %c0_24] : memref<5x8x512xf32, #tpu.memory_space<vmem>>, vector<1x8x512xf32>
    %70 = vector.shape_cast %69 : vector<1x8x512xf32> to vector<8x512xf32>
    %71 = vector.shape_cast %70 : vector<8x512xf32> to vector<1x8x512xf32>
    %72 = arith.index_cast %c2_i32 : i32 to index
    %c0_25 = arith.constant 0 : index
    %c0_26 = arith.constant 0 : index
    %73 = vector.load %arg4[%72, %c0_25, %c0_26] : memref<5x8x512xf32, #tpu.memory_space<vmem>>, vector<1x8x512xf32>
    %74 = vector.shape_cast %73 : vector<1x8x512xf32> to vector<8x512xf32>
    %75 = vector.shape_cast %74 : vector<8x512xf32> to vector<1x8x512xf32>
    %76 = vector.broadcast %71 : vector<1x8x512xf32> to vector<4x8x512xf32>
    %77 = arith.mulf %66, %76 : vector<4x8x512xf32>
    %78 = vector.broadcast %75 : vector<1x8x512xf32> to vector<4x8x512xf32>
    %79 = arith.mulf %67, %78 : vector<4x8x512xf32>
    %80 = arith.subf %77, %79 : vector<4x8x512xf32>
    %cst_27 = arith.constant dense<0.000000e+00> : vector<4x512xf32>
    %81 = vector.multi_reduction <add>, %80, %cst_27 [1] : vector<4x8x512xf32> to vector<4x512xf32>
    %82 = arith.addf %53, %81 : vector<4x512xf32>
    %83 = vector.broadcast %75 : vector<1x8x512xf32> to vector<4x8x512xf32>
    %84 = arith.mulf %66, %83 : vector<4x8x512xf32>
    %85 = vector.broadcast %71 : vector<1x8x512xf32> to vector<4x8x512xf32>
    %86 = arith.mulf %67, %85 : vector<4x8x512xf32>
    %87 = arith.addf %84, %86 : vector<4x8x512xf32>
    %cst_28 = arith.constant dense<0.000000e+00> : vector<4x512xf32>
    %88 = vector.multi_reduction <add>, %87, %cst_28 [1] : vector<4x8x512xf32> to vector<4x512xf32>
    %89 = arith.addf %60, %88 : vector<4x512xf32>
    %c3_i32 = arith.constant 3 : i32
    %90 = arith.index_cast %c3_i32 : i32 to index
    %c0_29 = arith.constant 0 : index
    %c0_30 = arith.constant 0 : index
    %91 = vector.load %arg1[%90, %c0_29, %c0_30] : memref<5x64x16xf32, #tpu.memory_space<vmem>>, vector<1x64x16xf32>
    %92 = vector.shape_cast %91 : vector<1x64x16xf32> to vector<64x16xf32>
    %cst_31 = arith.constant dense<0.000000e+00> : vector<64x512xf32>
    %93 = tpu.matmul %92, %0, %cst_31 {dimension_numbers = #tpu.dot_dimension_numbers<[1], [0], [0], [1], [0, 0, 1, 1], [], []>} : vector<64x16xf32>, vector<16x512xf32>, vector<64x512xf32> -> vector<64x512xf32>
    %94 = vector.shape_cast %93 : vector<64x512xf32> to vector<8x8x512xf32>
    %95 = vector.extract_strided_slice %94 {offsets = [0, 0, 0], sizes = [4, 8, 512], strides = [1, 1, 1]} : vector<8x8x512xf32> to vector<4x8x512xf32>
    %96 = vector.extract_strided_slice %94 {offsets = [4, 0, 0], sizes = [4, 8, 512], strides = [1, 1, 1]} : vector<8x8x512xf32> to vector<4x8x512xf32>
    %97 = arith.index_cast %c3_i32 : i32 to index
    %c0_32 = arith.constant 0 : index
    %c0_33 = arith.constant 0 : index
    %98 = vector.load %arg3[%97, %c0_32, %c0_33] : memref<5x8x512xf32, #tpu.memory_space<vmem>>, vector<1x8x512xf32>
    %99 = vector.shape_cast %98 : vector<1x8x512xf32> to vector<8x512xf32>
    %100 = vector.shape_cast %99 : vector<8x512xf32> to vector<1x8x512xf32>
    %101 = arith.index_cast %c3_i32 : i32 to index
    %c0_34 = arith.constant 0 : index
    %c0_35 = arith.constant 0 : index
    %102 = vector.load %arg4[%101, %c0_34, %c0_35] : memref<5x8x512xf32, #tpu.memory_space<vmem>>, vector<1x8x512xf32>
    %103 = vector.shape_cast %102 : vector<1x8x512xf32> to vector<8x512xf32>
    %104 = vector.shape_cast %103 : vector<8x512xf32> to vector<1x8x512xf32>
    %105 = vector.broadcast %100 : vector<1x8x512xf32> to vector<4x8x512xf32>
    %106 = arith.mulf %95, %105 : vector<4x8x512xf32>
    %107 = vector.broadcast %104 : vector<1x8x512xf32> to vector<4x8x512xf32>
    %108 = arith.mulf %96, %107 : vector<4x8x512xf32>
    %109 = arith.subf %106, %108 : vector<4x8x512xf32>
    %cst_36 = arith.constant dense<0.000000e+00> : vector<4x512xf32>
    %110 = vector.multi_reduction <add>, %109, %cst_36 [1] : vector<4x8x512xf32> to vector<4x512xf32>
    %111 = arith.addf %82, %110 : vector<4x512xf32>
    %112 = vector.broadcast %104 : vector<1x8x512xf32> to vector<4x8x512xf32>
    %113 = arith.mulf %95, %112 : vector<4x8x512xf32>
    %114 = vector.broadcast %100 : vector<1x8x512xf32> to vector<4x8x512xf32>
    %115 = arith.mulf %96, %114 : vector<4x8x512xf32>
    %116 = arith.addf %113, %115 : vector<4x8x512xf32>
    %cst_37 = arith.constant dense<0.000000e+00> : vector<4x512xf32>
    %117 = vector.multi_reduction <add>, %116, %cst_37 [1] : vector<4x8x512xf32> to vector<4x512xf32>
    %118 = arith.addf %89, %117 : vector<4x512xf32>
    %c4_i32 = arith.constant 4 : i32
    %119 = arith.index_cast %c4_i32 : i32 to index
    %c0_38 = arith.constant 0 : index
    %c0_39 = arith.constant 0 : index
    %120 = vector.load %arg1[%119, %c0_38, %c0_39] : memref<5x64x16xf32, #tpu.memory_space<vmem>>, vector<1x64x16xf32>
    %121 = vector.shape_cast %120 : vector<1x64x16xf32> to vector<64x16xf32>
    %cst_40 = arith.constant dense<0.000000e+00> : vector<64x512xf32>
    %122 = tpu.matmul %121, %0, %cst_40 {dimension_numbers = #tpu.dot_dimension_numbers<[1], [0], [0], [1], [0, 0, 1, 1], [], []>} : vector<64x16xf32>, vector<16x512xf32>, vector<64x512xf32> -> vector<64x512xf32>
    %123 = vector.shape_cast %122 : vector<64x512xf32> to vector<8x8x512xf32>
    %124 = vector.extract_strided_slice %123 {offsets = [0, 0, 0], sizes = [4, 8, 512], strides = [1, 1, 1]} : vector<8x8x512xf32> to vector<4x8x512xf32>
    %125 = vector.extract_strided_slice %123 {offsets = [4, 0, 0], sizes = [4, 8, 512], strides = [1, 1, 1]} : vector<8x8x512xf32> to vector<4x8x512xf32>
    %126 = arith.index_cast %c4_i32 : i32 to index
    %c0_41 = arith.constant 0 : index
    %c0_42 = arith.constant 0 : index
    %127 = vector.load %arg3[%126, %c0_41, %c0_42] : memref<5x8x512xf32, #tpu.memory_space<vmem>>, vector<1x8x512xf32>
    %128 = vector.shape_cast %127 : vector<1x8x512xf32> to vector<8x512xf32>
    %129 = vector.shape_cast %128 : vector<8x512xf32> to vector<1x8x512xf32>
    %130 = arith.index_cast %c4_i32 : i32 to index
    %c0_43 = arith.constant 0 : index
    %c0_44 = arith.constant 0 : index
    %131 = vector.load %arg4[%130, %c0_43, %c0_44] : memref<5x8x512xf32, #tpu.memory_space<vmem>>, vector<1x8x512xf32>
    %132 = vector.shape_cast %131 : vector<1x8x512xf32> to vector<8x512xf32>
    %133 = vector.shape_cast %132 : vector<8x512xf32> to vector<1x8x512xf32>
    %134 = vector.broadcast %129 : vector<1x8x512xf32> to vector<4x8x512xf32>
    %135 = arith.mulf %124, %134 : vector<4x8x512xf32>
    %136 = vector.broadcast %133 : vector<1x8x512xf32> to vector<4x8x512xf32>
    %137 = arith.mulf %125, %136 : vector<4x8x512xf32>
    %138 = arith.subf %135, %137 : vector<4x8x512xf32>
    %cst_45 = arith.constant dense<0.000000e+00> : vector<4x512xf32>
    %139 = vector.multi_reduction <add>, %138, %cst_45 [1] : vector<4x8x512xf32> to vector<4x512xf32>
    %140 = arith.addf %111, %139 : vector<4x512xf32>
    %141 = vector.broadcast %133 : vector<1x8x512xf32> to vector<4x8x512xf32>
    %142 = arith.mulf %124, %141 : vector<4x8x512xf32>
    %143 = vector.broadcast %129 : vector<1x8x512xf32> to vector<4x8x512xf32>
    %144 = arith.mulf %125, %143 : vector<4x8x512xf32>
    %145 = arith.addf %142, %144 : vector<4x8x512xf32>
    %cst_46 = arith.constant dense<0.000000e+00> : vector<4x512xf32>
    %146 = vector.multi_reduction <add>, %145, %cst_46 [1] : vector<4x8x512xf32> to vector<4x512xf32>
    %147 = arith.addf %118, %146 : vector<4x512xf32>
    %c5_i32 = arith.constant 5 : i32
    %c0_47 = arith.constant 0 : index
    %c0_48 = arith.constant 0 : index
    %148 = vector.load %arg5[%c0_47, %c0_48] : memref<8x512xf32, #tpu.memory_space<vmem>>, vector<4x512xf32>
    tpu.vector_store %arg5[%c0_47, %c0_48], %140 {strides = array<i32>} : memref<8x512xf32, #tpu.memory_space<vmem>>, vector<4x512xf32>,
    %c4 = arith.constant 4 : index
    %c0_49 = arith.constant 0 : index
    %149 = vector.load %arg5[%c4, %c0_49] : memref<8x512xf32, #tpu.memory_space<vmem>>, vector<4x512xf32>
    tpu.vector_store %arg5[%c4, %c0_49], %147 {strides = array<i32>} : memref<8x512xf32, #tpu.memory_space<vmem>>, vector<4x512xf32>,
    return
  }
  func.func @transform_0(%arg0: i32) -> (i32, i32, i32) {
    %c0_i32 = arith.constant 0 : i32
    %c0_i32_0 = arith.constant 0 : i32
    %c0_i32_1 = arith.constant 0 : i32
    %c0_i32_2 = arith.constant 0 : i32
    return %c0_i32, %c0_i32_0, %c0_i32_1 : i32, i32, i32
  }
  func.func @transform_1(%arg0: i32) -> (i32, i32) {
    %c0_i32 = arith.constant 0 : i32
    %c0_i32_0 = arith.constant 0 : i32
    return %c0_i32, %arg0 : i32, i32
  }
  func.func @transform_2(%arg0: i32) -> (i32, i32, i32) {
    %c0_i32 = arith.constant 0 : i32
    %c0_i32_0 = arith.constant 0 : i32
    %c0_i32_1 = arith.constant 0 : i32
    return %c0_i32, %c0_i32_0, %arg0 : i32, i32, i32
  }
  func.func @transform_3(%arg0: i32) -> (i32, i32, i32) {
    %c0_i32 = arith.constant 0 : i32
    %c0_i32_0 = arith.constant 0 : i32
    %c0_i32_1 = arith.constant 0 : i32
    return %c0_i32, %c0_i32_0, %arg0 : i32, i32, i32
  }
  func.func @transform_4(%arg0: i32) -> (i32, i32) {
    %c0_i32 = arith.constant 0 : i32
    %c0_i32_0 = arith.constant 0 : i32
    return %c0_i32, %arg0 : i32, i32
  }
}

</mosaic_0001>

<bundles_post_ra>
// kernel: _apply_fused.1
= control target key start
LH: loop header
LB: loop body
LE: loop exit
PB: predicated region body
PF: predicated region fallthrough
CT: control target
= control target key end

     0   :  { %s6325_s0 = inlined_call_operand.vmem [shape: f32[5,64,16], index: 0, kind: input, shape index: {}]   ;;  %s6326_s1 = inlined_call_operand.hbm [shape: f32[16,4096], index: 1, kind: input, shape index: {}]   ;;  %s6327_s2 = inlined_call_operand.hbm [shape: f32[5,8,4096], index: 2, kind: input, shape index: {}]   ;;  %s6328_s3 = inlined_call_operand.hbm [shape: f32[5,8,4096], index: 3, kind: input, shape index: {}]   ;;  %s6329_s4 = inlined_call_operand.hbm [shape: f32[8,4096], index: 4, kind: output, shape index: {}]  }
   0x1   :  { %6448 = sst [smem:[#allocation106_spill]] %s6327_s2 }
   0x2   :  { %9 = vsyncpa [#allocation3], 0 }
   0x3   :  { %11 = vsyncpa [#allocation3 + $0x1], 0 }
   0x4   :  { %12 = vsyncpa [#allocation6], 0 }
   0x5   :  { %14 = vsyncpa [#allocation6 + $0x1], 0 }
   0x6   :  { %15 = vsyncpa [#allocation4], 0 }
   0x7   :  { %17 = vsyncpa [#allocation4 + $0x1], 0  ;;  %s3918_s15 = smov 0   ;;  %s3920_s16 = smov 0  }
   0x8   :  { %s3922_s17 = smov 0   ;;  %s3924_s18 = smov 0  }
   0x9 LB: > { %6449 = sst [smem:[#allocation12_spill]] %s3879_s17  ;;  %s3939_s19 = sadd.s32 4294967295, %s3883_s18   ;;  %s3883_s18 = sphi %s3924_s18, %s6964_s18   ;;  %s3879_s17 = sphi %s3922_s17, %s6966_s17   ;;  %s3875_s16 = sphi %s3920_s16, %s6968_s16   ;;  %s3871_s15 = sphi %s3918_s15, %s6967_s15  }
   0xa   : > { %s3454_s20 = sadd.s32 4294967294, %s3883_s18   ;;  %s3943_s21 = sadd.s32 1, %s3883_s18  }
   0xb   : > { %6450 = sst [smem:[#allocation13_spill]] %s3943_s21  ;;  %s51_s22 = sadd.s32 1, %s3879_s17 }
   0xc   : > { %s48_s23 = ssub.s32 %s3883_s18, %s3943_s21  ;;  %p58_p0 = scmp.ne.s32.totalorder %s3879_s17, %s3875_s16 }
   0xd   : > { %p49_p1 = scmp.eq.s32.totalorder %s48_s23, 0  ;;  %p59_p2 = scmp.eq.s32.totalorder %s3883_s18, 0 }
   0xe   : > { %p64_p3 = scmp.ne.s32.totalorder %s3875_s16, %s3871_s15  ;;  %p65_p4 = scmp.eq.s32.totalorder %s3939_s19, 0 }
   0xf   : > { %s3955_s24 = scalar_select %p49_p1, %s3879_s17, %s51_s22  }
  0x10   : > { %p60_p5 = por %p59_p2, %p58_p0  ;;  %p3957_p6 = por %p65_p4, %p64_p3 }
  0x11   : > { %6451 = sst [smem:[#allocation14_spill]] %s3955_s24  ;;  %p140_p7 = scmp.eq.s32.totalorder %s3939_s19, 7 }
  0x12   : > { %s6452_s25 = scalar_select %p3957_p6, 1, 0 }
  0x13   : > { %p146_p8 = scmp.eq.s32.totalorder %s3454_s20, 7  ;;  %p3685_p9 = scmp.lt.s32.totalorder %s3883_s18, 8 }
  0x14   : > { %p3963_p10 = por %p140_p7, %p58_p0  ;;  %s3972_s28 = sand.u32 1, %s3879_s17  }
  0x15   : > { %p3967_p11 = por %p146_p8, %p64_p3  ;;  %s3975_s29 = sshll.u32 %s3883_s18, 9 }
  0x16   : > { %s6453_s26 = scalar_select %p3963_p10, 1, 0 }
  0x17   : > { %s6454_s27 = scalar_select %p3967_p11, 1, 0 }
  0x18   : > { %p3977_p12 = pnand %p3685_p9, %p60_p5  ;;  %s190_s5 = sand.u32 1, %s3883_s18  }
  0x19   : > { %s6332_s6 = smul.u32 160, %s3972_s28  ;;  %s6456_s2 = sld [smem:[#allocation106_spill]] }
  0x1a   : > { %p3464_p13 = scmp.ge.s32.totalorder %s3883_s18, 1  ;;  %p230_p0 = scmp.lt.s32.totalorder %s3883_s18, 9 }
  0x1b   : > { %s194_s10 = scalar_lea.vmem [#allocation5], %s6332_s6  ;;  %s3999_s13 = scalar_lea.sflag [#allocation6], %s190_s5 }
  0x1c   : > { %s201_s11 = sshll.u32 %s194_s10, 4  ;;  %p3995_p1 = pnand %p3464_p13, %p230_p0  ;;  %s3993_s11 = int_to_ptr.vmem [resolvable:$true] %s201_s11 }
  0x1d   : > { %p4005_p3 = pneg %p3977_p12 }
  0x1e   : > { %s6457_s12 = scalar_select %p3995_p1, 1, 0 }
  0x1f   : > { %s3987_s9 = scalar_lea.hbm %s6456_s2, %s3975_s29  ;;  %s3728_s7 = scalar_lea.hbm %s6456_s2, 20480 }
  0x20   : > { %s3723_s14 = scalar_lea.hbm %s3987_s9, 2560  ;;  %p3729_p7 = scmp.lt.u32.totalorder %s3987_s9, %s6456_s2 }
  0x21   : > { %p3724_p2 = scmp.ne.s32.totalorder %s3987_s9, %s3723_s14  ;;  %p3730_p8 = scmp.lt.u32.totalorder %s3728_s7, %s3723_s14 }
  0x22   : > { %p3732_p13 = scmp.lt.u32.totalorder %s3723_s14, %s3987_s9 }
  0x23   : > { %p3726_p4 = pnand %p4005_p3, %p3724_p2  ;;  %p3731_p9 = por %p3730_p8, %p3729_p7 }
  0x25   : > { %p3727_p5 = pneg %p3726_p4  ;;  %p3733_p0 = por %p3732_p13, %p3731_p9 }
  0x27   : > { %p3734_p11 = pnand %p3733_p0, %p3727_p5 }
  0x29   : > { %3737 = shalt.err (!%p3734_p11)
}
  0x2a   : > { %s3738_s5 = scalar_lea.vmem %s3993_s11, 2560  ;;  %s3885_s22 = smov [#allocation5]  }
  0x2b   : > { %p3739_p2 = scmp.ne.s32.totalorder %s3993_s11, %s3738_s5  ;;  %s3743_s23 = sshll.u32 %s3885_s22, 4  ;;  %s3744_s23 = int_to_ptr.vmem [resolvable:$false] %s3743_s23 }
  0x2c   : > { %s3745_s8 = scalar_lea.vmem %s3744_s23, 5120  ;;  %p3746_p6 = scmp.lt.s32.totalorder %s3993_s11, %s3744_s23 }
  0x2d   : > { %p3741_p4 = pnand %p3739_p2, %p4005_p3  ;;  %p3747_p1 = scmp.lt.s32.totalorder %s3745_s8, %s3738_s5 }
  0x2f   : > { %p3742_p10 = pneg %p3741_p4  ;;  %p3748_p7 = por %p3747_p1, %p3746_p6 }
  0x31   : > { %p3749_p8 = pnand %p3748_p7, %p3742_p10 }
  0x33   : > { %3752 = shalt.err (!%p3749_p8)
}
  0x34   : > { %s6336_s14 = smov 4096   ;;  %s6338_s7 = smov 512  }
  0x35   : > { %s3888_s10 = smov 32   ;;  %s3457_s5 = sshll.u32 %s3972_s28, 6 }
  0x36   : > { %3677 = dma.hbm_to_vmem [thread:$0]  (!%p3977_p12), %s3987_s9, 2560, %s3993_s11, %s3999_s13, %s6336_s14, %s6338_s7, %s3888_s10  }
  0x37   : > { %s4037_s8 = scalar_lea.hbm %s6326_s1, %s3975_s29  ;;  %s173_s6 = scalar_lea.vmem [#allocation2], %s3457_s5 }
  0x38   : > { %s180_s2 = sshll.u32 %s173_s6, 4  ;;  %s4043_s21 = scalar_lea.hbm %s6328_s3, %s3975_s29  ;;  %s4045_s2 = int_to_ptr.vmem [resolvable:$true] %s180_s2 }
  0x39   : > { %s6459_s9 = smul.u32 160, %s3972_s28  ;;  %s170_s23 = scalar_lea.sflag [#allocation3], %s3972_s28 }
  0x3a   : > { %s3753_s14 = scalar_lea.hbm %s4037_s8, 1024  ;;  %s3758_s7 = scalar_lea.hbm %s6326_s1, 8192 }
  0x3b   : > { %s4049_s11 = scalar_lea.vmem [#allocation7], %s6459_s9  ;;  %p3754_p6 = scmp.ne.s32.totalorder %s4037_s8, %s3753_s14 }
  0x3c   : > { %s222_s22 = sshll.u32 %s4049_s11, 4  ;;  %p3759_p1 = scmp.lt.u32.totalorder %s4037_s8, %s6326_s1  ;;  %s4081_s22 = int_to_ptr.vmem [resolvable:$true] %s222_s22 }
  0x3d   : > { %p3756_p10 = pnand %p3754_p6, %p4005_p3  ;;  %p3760_p5 = scmp.lt.u32.totalorder %s3758_s7, %s3753_s14 }
  0x3e   : > { %p3762_p13 = scmp.lt.u32.totalorder %s3753_s14, %s4037_s8 }
  0x3f   : > { %p3757_p11 = pneg %p3756_p10  ;;  %p3761_p9 = por %p3760_p5, %p3759_p1 }
  0x41   : > { %p3763_p0 = por %p3762_p13, %p3761_p9 }
  0x43   : > { %p3764_p2 = pnand %p3763_p0, %p3757_p11 }
  0x45   : > { %3767 = shalt.err (!%p3764_p2)
}
  0x46   : > { %s3768_s29 = scalar_lea.vmem %s4045_s2, 1024  ;;  %s3889_s9 = smov [#allocation2]  }
  0x47   : > { %p3769_p4 = scmp.ne.s32.totalorder %s4045_s2, %s3768_s29  ;;  %s3773_s5 = sshll.u32 %s3889_s9, 4  ;;  %s3774_s5 = int_to_ptr.vmem [resolvable:$false] %s3773_s5 }
  0x48   : > { %s3775_s6 = scalar_lea.vmem %s3774_s5, 2048  ;;  %p3776_p6 = scmp.lt.s32.totalorder %s4045_s2, %s3774_s5 }
  0x49   : > { %p3771_p7 = pnand %p3769_p4, %p4005_p3  ;;  %p3777_p10 = scmp.lt.s32.totalorder %s3775_s6, %s3768_s29 }
  0x4b   : > { %p3772_p8 = pneg %p3771_p7  ;;  %p3778_p1 = por %p3777_p10, %p3776_p6 }
  0x4d   : > { %p3779_p5 = pnand %p3778_p1, %p3772_p8 }
  0x4f   : > { %3782 = shalt.err (!%p3779_p5)
}
  0x50   : > { %s6460_s14 = smov 512   ;;  %s6461_s7 = smov 4096  }
  0x51   : > { %3674 = dma.hbm_to_vmem [thread:$0]  (!%p3977_p12), %s4037_s8, 1024, %s4045_s2, %s170_s23, %s6461_s7, %s6460_s14, %s3888_s10  }
  0x52   : > { %s3783_s17 = scalar_lea.hbm %s4043_s21, 2560  ;;  %s3788_s28 = scalar_lea.hbm %s6328_s3, 20480 }
  0x53   : > { %p3784_p11 = scmp.ne.s32.totalorder %s4043_s21, %s3783_s17  ;;  %p3789_p0 = scmp.lt.u32.totalorder %s4043_s21, %s6328_s3 }
  0x54   : > { %p3790_p2 = scmp.lt.u32.totalorder %s3788_s28, %s3783_s17  ;;  %p3792_p7 = scmp.lt.u32.totalorder %s3783_s17, %s4043_s21 }
  0x55   : > { %p3786_p9 = pnand %p3784_p11, %p4005_p3 }
  0x56   : > { %p3791_p4 = por %p3790_p2, %p3789_p0 }
  0x57   : > { %p3787_p13 = pneg %p3786_p9 }
  0x58   : > { %p3793_p8 = por %p3792_p7, %p3791_p4 }
  0x5a   : > { %p3794_p6 = pnand %p3793_p8, %p3787_p13 }
  0x5c   : > { %3797 = shalt.err (!%p3794_p6)
}
  0x5d   : > { %s3798_s2 = scalar_lea.vmem %s4081_s22, 2560  ;;  %s3890_s8 = smov [#allocation7]  }
  0x5e   : > { %p3799_p10 = scmp.ne.s32.totalorder %s4081_s22, %s3798_s2  ;;  %s3803_s11 = sshll.u32 %s3890_s8, 4  ;;  %s3804_s11 = int_to_ptr.vmem [resolvable:$false] %s3803_s11 }
  0x5f   : > { %s3805_s23 = scalar_lea.vmem %s3804_s11, 5120  ;;  %p3806_p11 = scmp.lt.s32.totalorder %s4081_s22, %s3804_s11 }
  0x60   : > { %p3801_p1 = pnand %p3799_p10, %p4005_p3  ;;  %p3807_p9 = scmp.lt.s32.totalorder %s3805_s23, %s3798_s2 }
  0x62   : > { %p3802_p5 = pneg %p3801_p1  ;;  %p3808_p0 = por %p3807_p9, %p3806_p11 }
  0x64   : > { %p3809_p2 = pnand %p3808_p0, %p3802_p5 }
  0x66   : > { %3812 = shalt.err (!%p3809_p2)
}
  0x67   : > { %3680 = dma.hbm_to_vmem [thread:$0]  (!%p3977_p12), %s4043_s21, 2560, %s4081_s22, %s3999_s13, %s6461_s7, %s6460_s14, %s3888_s10  }
  0x68   : > { %p6462_p3 = scmp.ne.s32.totalorder %s6457_s12, 0 }
  0x6a   : > { %234 = sbr.rel (%p6462_p3) target bundleno = 784 (0x310), region = 36 }
  0x71   : > { %s4111_s20 = sand.u32 1, %s3875_s16   ;;  %p6463_p13 = scmp.ne.s32.totalorder %s6452_s25, 0 }
  0x72   : > { %s3465_s6 = sshll.u32 %s4111_s20, 6  ;;  %s237_s17 = scalar_lea.sflag [#allocation3], %s4111_s20 }
  0x73   : > { %s240_s24 = scalar_lea.vmem [#allocation2], %s3465_s6 }
  0x74   : > { %3858 = dma.done.wait (%p6463_p13), %s237_s17, 1024  }
  0x75   : > { %3860 = vsyncadd (%p6463_p13), %s237_s17, 4294966272  ;;  %s245_s21 = sand.u32 1, %s3939_s19   ;;  %s3662_s30 = smul.u32 160, %s4111_s20 }
  0x76   : > { %s246_s12 = scalar_lea.sflag [#allocation6], %s245_s21 }
  0x77   : > { %s4123_s13 = scalar_lea.vmem [#allocation5], %s3662_s30 }
  0x78   : > { %3862 = dma.done.wait (%p6463_p13), %s246_s12, 5120  }
  0x79   : > { %3864 = vsyncadd (%p6463_p13), %s246_s12, 4294962176  ;;  %v3891_v0 = vmov 0.0   ;;  %v298_v1 = vld [vmem:[%s240_s24 + $0x8] sm:$0xff]  ;;  %v300_v3 = vld [vmem:[%s240_s24 + $0x18] sm:$0xff]  ;;  %vm313_vm0 = vcmask 130048   ;;  %s4442_s5 = scalar_lea.vmem [#allocation7], %s3662_s30 }
  0x7a   : > { %402 = vmatprep.mubr.f32.mxu0 %v3891_v0  ;;  %515 = vmatprep.mubr.f32.mxu1 %v3891_v0  ;;  %v302_v2 = vld [vmem:[%s240_s24 + $0x28] sm:$0xff]  ;;  %v304_v5 = vld [vmem:[%s240_s24 + $0x38] sm:$0xff]  ;;  %v297_v6 = vld [vmem:[%s240_s24] sm:$0xff]  ;;  %vm3264_vm1 = vcmask 1041409   ;;  %vm3303_vm2 = vcmask 1045509   ;;  %vm3266_vm3 = vcmask 1042434  }
  0x7b   : > { %v4131_v4 = vpack.c.bf16 %v302_v2, %v298_v1  ;;  %v301_v7 = vld [vmem:[%s240_s24 + $0x20] sm:$0xff]  ;;  %v4133_v8 = vpack.c.bf16 %v304_v5, %v300_v3  ;;  %v299_v10 = vld [vmem:[%s240_s24 + $0x10] sm:$0xff]  ;;  %v306_v14 = vld [vmem:[%s6325_s0 + $0x8] sm:$0xff]  ;;  %vm3305_vm4 = vcmask 1046534   ;;  %vm3268_vm5 = vcmask 1043459   ;;  %s3466_s30 = sshll.u32 %s4111_s20, 5 }
  0x7c   : > { %v4135_v9 = vpack.c.bf16 %v301_v7, %v297_v6  ;;  %v303_v11 = vld [vmem:[%s240_s24 + $0x30] sm:$0xff]  ;;  %v305_v13 = vld [vmem:[%s6325_s0] sm:$0xff]  ;;  %v308_v16 = vld [vmem:[%s6325_s0 + $0x18] sm:$0xff]  ;;  %vm3307_vm6 = vcmask 1047559   ;;  %s292_s2 = scalar_lea.vmem [#allocation8], %s3466_s30  ;;  %s3327_s6 = scalar_lea.sflag [#allocation4], %s4111_s20 }
  0x7d   : > { %3621 = vmatprep.subr.bf16.mxu0 %v4131_v4  ;;  %v4138_v12 = vpack.c.bf16 %v303_v11, %v299_v10  ;;  %3625 = vmatprep.subr.bf16.mxu1 %v4133_v8  ;;  %v307_v15 = vld [vmem:[%s6325_s0 + $0x10] sm:$0xff]  ;;  %v309_v17 = vld [vmem:[%s6325_s0 + $0x20] sm:$0xff]  ;;  %v310_v18 = vld [vmem:[%s6325_s0 + $0x28] sm:$0xff]  ;;  %s3341_s8 = sshll.u32 %s292_s2, 4  ;;  %p6962_p4 = scmp.ne.s32.totalorder %s6453_s26, 0  ;;  %s6280_s8 = int_to_ptr.vmem [resolvable:$true] %s3341_s8 }
  0x7e   : > { %3623 = vmatpush1.bf16.msra.mxu0 %v4135_v9  ;;  %v311_v19 = vld [vmem:[%s6325_s0 + $0x30] sm:$0xff]  ;;  %v312_v20 = vld [vmem:[%s6325_s0 + $0x38] sm:$0xff]  ;;  %v3483_v21 = vld [vmem:[%s6325_s0 + $0x40] sm:$0xff]  ;;  %s3813_s17 = scalar_lea.vmem %s6280_s8, 512  ;;  %s3892_s24 = smov [#allocation8]  }
  0x7f   : > { %3627 = vmatpush1.bf16.msra.mxu1 %v4138_v12  ;;  %3629 = vmatprep.subr.bf16.mxu0 %v4131_v4  ;;  %v3484_v22 = vld [vmem:[%s6325_s0 + $0x48] sm:$0xff]  ;;  %v3485_v23 = vld [vmem:[%s6325_s0 + $0x50] sm:$0xff]  ;;  %v3486_v24 = vld [vmem:[%s6325_s0 + $0x58] sm:$0xff]  ;;  %p3814_p12 = scmp.ne.s32.totalorder %s6280_s8, %s3813_s17  ;;  %s3817_s21 = sshll.u32 %s3892_s24, 4  ;;  %s3818_s21 = int_to_ptr.vmem [resolvable:$false] %s3817_s21 }
  0x80   : > { %3633 = vmatprep.subr.bf16.mxu1 %v4133_v8  ;;  %v3487_v25 = vld [vmem:[%s6325_s0 + $0x60] sm:$0xff]  ;;  %v3488_v26 = vld [vmem:[%s6325_s0 + $0x68] sm:$0xff]  ;;  %v3489_v27 = vld [vmem:[%s6325_s0 + $0x70] sm:$0xff]  ;;  %s3819_s12 = scalar_lea.vmem %s3818_s21, 1024  ;;  %p3820_p6 = scmp.lt.s32.totalorder %s6280_s8, %s3818_s21 }
  0x81   : > { %3467 = vmatmul.mubr.msk.f32.vlgmr.msra.gmra.mrb[0].mxu0 %vm313_vm0, %v305_v13  ;;  %v3490_v28 = vld [vmem:[%s6325_s0 + $0x78] sm:$0xff]  ;;  %v3515_v29 = vld [vmem:[%s6325_s0 + $0x80] sm:$0xff]  ;;  %v3516_v30 = vld [vmem:[%s6325_s0 + $0x88] sm:$0xff]  ;;  %p3815_p7 = pnand %p3814_p12, %p6962_p4  ;;  %p3821_p10 = scmp.lt.s32.totalorder %s3819_s12, %s3813_s17 }
  0x82   : > { %3475 = vmatmul.mubr.msk.f32.vlgmr.msra.gmra.mrb[0].mxu1 %vm313_vm0, %v305_v13  ;;  %3631 = vmatpush1.bf16.msra.mxu0 %v4135_v9  ;;  %v3517_v31 = vld [vmem:[%s6325_s0 + $0x90] sm:$0xff]  ;;  %v3518_v32 = vld [vmem:[%s6325_s0 + $0x98] sm:$0xff]  ;;  %v3519_v33 = vld [vmem:[%s6325_s0 + $0xa0] sm:$0xff] }
  0x83   : > { %3635 = vmatpush1.bf16.msra.mxu1 %v4138_v12  ;;  %408 = vmatprep.mubr.f32.mxu0 %v3891_v0  ;;  %v3520_v34 = vld [vmem:[%s6325_s0 + $0xa8] sm:$0xff]  ;;  %v3521_v35 = vld [vmem:[%s6325_s0 + $0xb0] sm:$0xff]  ;;  %v3522_v36 = vld [vmem:[%s6325_s0 + $0xb8] sm:$0xff]  ;;  %p3816_p8 = pneg %p3815_p7  ;;  %p3822_p1 = por %p3821_p10, %p3820_p6 }
  0x84   : > { %521 = vmatprep.mubr.f32.mxu1 %v3891_v0  ;;  %3637 = vmatprep.subr.bf16.mxu0 %v4131_v4  ;;  %v3547_v37 = vld [vmem:[%s6325_s0 + $0xc0] sm:$0xff]  ;;  %v3548_v38 = vld [vmem:[%s6325_s0 + $0xc8] sm:$0xff]  ;;  %v3549_v39 = vld [vmem:[%s6325_s0 + $0xd0] sm:$0xff] }
  0x85   : > { %3468 = vmatmul.mubr.msk.f32.gmra.mrb[2].mxu0 %vm313_vm0, %v306_v14  ;;  %3641 = vmatprep.subr.bf16.mxu1 %v4133_v8  ;;  %v3550_v40 = vld [vmem:[%s6325_s0 + $0xd8] sm:$0xff]  ;;  %v3551_v41 = vld [vmem:[%s6325_s0 + $0xe0] sm:$0xff]  ;;  %v3552_v42 = vld [vmem:[%s6325_s0 + $0xe8] sm:$0xff]  ;;  %p3823_p5 = pnand %p3822_p1, %p3816_p8 }
  0x86   : > { %3476 = vmatmul.mubr.msk.f32.gmra.mrb[2].mxu1 %vm313_vm0, %v306_v14  ;;  %414 = vmatprep.mubr.f32.mxu0 %v3891_v0  ;;  %v3553_v43 = vld [vmem:[%s6325_s0 + $0xf0] sm:$0xff]  ;;  %v3554_v44 = vld [vmem:[%s6325_s0 + $0xf8] sm:$0xff]  ;;  %v3579_v45 = vld [vmem:[%s6325_s0 + $0x100] sm:$0xff] }
  0x87   : > { %527 = vmatprep.mubr.f32.mxu1 %v3891_v0  ;;  %v3580_v46 = vld [vmem:[%s6325_s0 + $0x108] sm:$0xff]  ;;  %v3581_v47 = vld [vmem:[%s6325_s0 + $0x110] sm:$0xff]  ;;  %v3582_v48 = vld [vmem:[%s6325_s0 + $0x118] sm:$0xff] }
  0x88   : > { %v3583_v49 = vld [vmem:[%s6325_s0 + $0x120] sm:$0xff]  ;;  %v3584_v50 = vld [vmem:[%s6325_s0 + $0x128] sm:$0xff]  ;;  %v3585_v51 = vld [vmem:[%s6325_s0 + $0x130] sm:$0xff] }
  0x89   : > { %3469 = vmatmul.mubr.msk.f32.gmra.mrb[4].mxu0 %vm313_vm0, %v307_v15  ;;  %v3586_v52 = vld [vmem:[%s6325_s0 + $0x138] sm:$0xff]  ;;  %v4438_v60 = vld [vmem:[%s4123_s13] sm:$0xff]  ;;  %v4448_v62 = vld [vmem:[%s4123_s13 + $0x10] sm:$0xff] }
  0x8a   : > { %3477 = vmatmul.mubr.msk.f32.gmra.mrb[4].mxu1 %vm313_vm0, %v307_v15  ;;  %420 = vmatprep.mubr.f32.mxu0 %v3891_v0  ;;  %v4445_v61 = vld [vmem:[%s4442_s5] sm:$0xff]  ;;  %v4454_v1 = vld [vmem:[%s4123_s13 + $0x8] sm:$0xff]  ;;  %v4460_v3 = vld [vmem:[%s4123_s13 + $0x18] sm:$0xff] }
  0x8b   : > { %533 = vmatprep.mubr.f32.mxu1 %v3891_v0  ;;  %v4457_v2 = vld [vmem:[%s4442_s5 + $0x8] sm:$0xff] }
  0x8d   : > { %3470 = vmatmul.mubr.msk.f32.gmra.mrb[6].mxu0 %vm313_vm0, %v308_v16 }
  0x8e   : > { %3478 = vmatmul.mubr.msk.f32.gmra.mrb[6].mxu1 %vm313_vm0, %v308_v16  ;;  %426 = vmatprep.mubr.f32.mxu0 %v3891_v0 }
  0x8f   : > { %539 = vmatprep.mubr.f32.mxu1 %v3891_v0 }
  0x91   : > { %3471 = vmatmul.mubr.msk.f32.gmra.mrb[8].mxu0 %vm313_vm0, %v309_v17 }
  0x92   : > { %3479 = vmatmul.mubr.msk.f32.gmra.mrb[8].mxu1 %vm313_vm0, %v309_v17  ;;  %432 = vmatprep.mubr.f32.mxu0 %v3891_v0 }
  0x93   : > { %545 = vmatprep.mubr.f32.mxu1 %v3891_v0 }
  0x95   : > { %3472 = vmatmul.mubr.msk.f32.gmra.mrb[10].mxu0 %vm313_vm0, %v310_v18 }
  0x96   : > { %3480 = vmatmul.mubr.msk.f32.gmra.mrb[10].mxu1 %vm313_vm0, %v310_v18  ;;  %438 = vmatprep.mubr.f32.mxu0 %v3891_v0 }
  0x97   : > { %551 = vmatprep.mubr.f32.mxu1 %v3891_v0 }
  0x99   : > { %3473 = vmatmul.mubr.msk.f32.gmra.mrb[12].mxu0 %vm313_vm0, %v311_v19 }
  0x9a   : > { %3481 = vmatmul.mubr.msk.f32.gmra.mrb[12].mxu1 %vm313_vm0, %v311_v19  ;;  %444 = vmatprep.mubr.f32.mxu0 %v3891_v0 }
  0x9b   : > { %557 = vmatprep.mubr.f32.mxu1 %v3891_v0 }
  0x9d   : > { %3474 = vmatmul.mubr.msk.f32.gmra.mrb[14].mxu0 %vm313_vm0, %v312_v20 }
  0x9e   : > { %3482 = vmatmul.mubr.msk.f32.gmra.mrb[14].mxu1 %vm313_vm0, %v312_v20  ;;  %989 = vmatprep.mubr.f32.mxu0 %v3891_v0 }
  0x9f   : > { %1102 = vmatprep.mubr.f32.mxu1 %v3891_v0 }
  0xa1   : > { %3491 = vmatmul.mubr.msk.f32.vlgmr.msra.gmra.mrb[16].mxu0 %vm313_vm0, %v3483_v21 }
  0xa2   : > { %3499 = vmatmul.mubr.msk.f32.vlgmr.msra.gmra.mrb[16].mxu1 %vm313_vm0, %v3483_v21  ;;  %3639 = vmatpush1.bf16.msra.mxu0 %v4135_v9 }
  0xa3   : > { %3643 = vmatpush1.bf16.msra.mxu1 %v4138_v12  ;;  %995 = vmatprep.mubr.f32.mxu0 %v3891_v0 }
  0xa4   : > { %1108 = vmatprep.mubr.f32.mxu1 %v3891_v0  ;;  %3645 = vmatprep.subr.bf16.mxu0 %v4131_v4 }
  0xa5   : > { %3492 = vmatmul.mubr.msk.f32.gmra.mrb[18].mxu0 %vm313_vm0, %v3484_v22  ;;  %3649 = vmatprep.subr.bf16.mxu1 %v4133_v8 }
  0xa6   : > { %3500 = vmatmul.mubr.msk.f32.gmra.mrb[18].mxu1 %vm313_vm0, %v3484_v22  ;;  %1001 = vmatprep.mubr.f32.mxu0 %v3891_v0 }
  0xa7   : > { %1114 = vmatprep.mubr.f32.mxu1 %v3891_v0 }
  0xa9   : > { %3493 = vmatmul.mubr.msk.f32.gmra.mrb[20].mxu0 %vm313_vm0, %v3485_v23 }
  0xaa   : > { %3501 = vmatmul.mubr.msk.f32.gmra.mrb[20].mxu1 %vm313_vm0, %v3485_v23  ;;  %1007 = vmatprep.mubr.f32.mxu0 %v3891_v0 }
  0xab   : > { %1120 = vmatprep.mubr.f32.mxu1 %v3891_v0 }
  0xad   : > { %3494 = vmatmul.mubr.msk.f32.gmra.mrb[22].mxu0 %vm313_vm0, %v3486_v24 }
  0xae   : > { %3502 = vmatmul.mubr.msk.f32.gmra.mrb[22].mxu1 %vm313_vm0, %v3486_v24  ;;  %1013 = vmatprep.mubr.f32.mxu0 %v3891_v0 }
  0xaf   : > { %1126 = vmatprep.mubr.f32.mxu1 %v3891_v0 }
  0xb1   : > { %3495 = vmatmul.mubr.msk.f32.gmra.mrb[24].mxu0 %vm313_vm0, %v3487_v25 }
  0xb2   : > { %3503 = vmatmul.mubr.msk.f32.gmra.mrb[24].mxu1 %vm313_vm0, %v3487_v25  ;;  %1019 = vmatprep.mubr.f32.mxu0 %v3891_v0 }
  0xb3   : > { %1132 = vmatprep.mubr.f32.mxu1 %v3891_v0 }
  0xb5   : > { %3496 = vmatmul.mubr.msk.f32.gmra.mrb[26].mxu0 %vm313_vm0, %v3488_v26 }
  0xb6   : > { %3504 = vmatmul.mubr.msk.f32.gmra.mrb[26].mxu1 %vm313_vm0, %v3488_v26  ;;  %1025 = vmatprep.mubr.f32.mxu0 %v3891_v0 }
  0xb7   : > { %1138 = vmatprep.mubr.f32.mxu1 %v3891_v0 }
  0xb9   : > { %3497 = vmatmul.mubr.msk.f32.gmra.mrb[28].mxu0 %vm313_vm0, %v3489_v27 }
  0xba   : > { %3505 = vmatmul.mubr.msk.f32.gmra.mrb[28].mxu1 %vm313_vm0, %v3489_v27  ;;  %1031 = vmatprep.mubr.f32.mxu0 %v3891_v0 }
  0xbb   : > { %1144 = vmatprep.mubr.f32.mxu1 %v3891_v0 }
  0xbd   : > { %3498 = vmatmul.mubr.msk.f32.gmra.mrb[30].mxu0 %vm313_vm0, %v3490_v28 }
  0xbe   : > { %3506 = vmatmul.mubr.msk.f32.gmra.mrb[30].mxu1 %vm313_vm0, %v3490_v28  ;;  %1578 = vmatprep.mubr.f32.mxu0 %v3891_v0 }
  0xbf   : > { %1691 = vmatprep.mubr.f32.mxu1 %v3891_v0 }
  0xc1   : > { %3523 = vmatmul.mubr.msk.f32.vlgmr.msra.gmra.mrb[32].mxu0 %vm313_vm0, %v3515_v29 }
  0xc2   : > { %3531 = vmatmul.mubr.msk.f32.vlgmr.msra.gmra.mrb[32].mxu1 %vm313_vm0, %v3515_v29  ;;  %3647 = vmatpush1.bf16.msra.mxu0 %v4135_v9 }
  0xc3   : > { %3651 = vmatpush1.bf16.msra.mxu1 %v4138_v12  ;;  %1584 = vmatprep.mubr.f32.mxu0 %v3891_v0 }
  0xc4   : > { %1697 = vmatprep.mubr.f32.mxu1 %v3891_v0  ;;  %3653 = vmatprep.subr.bf16.mxu0 %v4131_v4  ;;  %v4463_v4 = vld [vmem:[%s4442_s5 + $0x18] sm:$0xff] }
  0xc5   : > { %3524 = vmatmul.mubr.msk.f32.gmra.mrb[34].mxu0 %vm313_vm0, %v3516_v30  ;;  %3657 = vmatprep.subr.bf16.mxu1 %v4133_v8 }
  0xc6   : > { %3532 = vmatmul.mubr.msk.f32.gmra.mrb[34].mxu1 %vm313_vm0, %v3516_v30  ;;  %1590 = vmatprep.mubr.f32.mxu0 %v3891_v0 }
  0xc7   : > { %1703 = vmatprep.mubr.f32.mxu1 %v3891_v0 }
  0xc9   : > { %3525 = vmatmul.mubr.msk.f32.gmra.mrb[36].mxu0 %vm313_vm0, %v3517_v31 }
  0xca   : > { %3533 = vmatmul.mubr.msk.f32.gmra.mrb[36].mxu1 %vm313_vm0, %v3517_v31  ;;  %1596 = vmatprep.mubr.f32.mxu0 %v3891_v0 }
  0xcb   : > { %1709 = vmatprep.mubr.f32.mxu1 %v3891_v0 }
  0xcd   : > { %3526 = vmatmul.mubr.msk.f32.gmra.mrb[38].mxu0 %vm313_vm0, %v3518_v32 }
  0xce   : > { %3534 = vmatmul.mubr.msk.f32.gmra.mrb[38].mxu1 %vm313_vm0, %v3518_v32  ;;  %1602 = vmatprep.mubr.f32.mxu0 %v3891_v0 }
  0xcf   : > { %1715 = vmatprep.mubr.f32.mxu1 %v3891_v0 }
  0xd1   : > { %3527 = vmatmul.mubr.msk.f32.gmra.mrb[40].mxu0 %vm313_vm0, %v3519_v33 }
  0xd2   : > { %3535 = vmatmul.mubr.msk.f32.gmra.mrb[40].mxu1 %vm313_vm0, %v3519_v33  ;;  %1608 = vmatprep.mubr.f32.mxu0 %v3891_v0 }
  0xd3   : > { %1721 = vmatprep.mubr.f32.mxu1 %v3891_v0 }
  0xd5   : > { %3528 = vmatmul.mubr.msk.f32.gmra.mrb[42].mxu0 %vm313_vm0, %v3520_v34 }
  0xd6   : > { %3536 = vmatmul.mubr.msk.f32.gmra.mrb[42].mxu1 %vm313_vm0, %v3520_v34  ;;  %1614 = vmatprep.mubr.f32.mxu0 %v3891_v0 }
  0xd7   : > { %1727 = vmatprep.mubr.f32.mxu1 %v3891_v0 }
  0xd9   : > { %3529 = vmatmul.mubr.msk.f32.gmra.mrb[44].mxu0 %vm313_vm0, %v3521_v35 }
  0xda   : > { %3537 = vmatmul.mubr.msk.f32.gmra.mrb[44].mxu1 %vm313_vm0, %v3521_v35  ;;  %1620 = vmatprep.mubr.f32.mxu0 %v3891_v0 }
  0xdb   : > { %1733 = vmatprep.mubr.f32.mxu1 %v3891_v0 }
  0xdd   : > { %3530 = vmatmul.mubr.msk.f32.gmra.mrb[46].mxu0 %vm313_vm0, %v3522_v36 }
  0xde   : > { %3538 = vmatmul.mubr.msk.f32.gmra.mrb[46].mxu1 %vm313_vm0, %v3522_v36  ;;  %2167 = vmatprep.mubr.f32.mxu0 %v3891_v0 }
  0xdf   : > { %2280 = vmatprep.mubr.f32.mxu1 %v3891_v0 }
  0xe1   : > { %3555 = vmatmul.mubr.msk.f32.vlgmr.msra.gmra.mrb[48].mxu0 %vm313_vm0, %v3547_v37 }
  0xe2   : > { %3563 = vmatmul.mubr.msk.f32.vlgmr.msra.gmra.mrb[48].mxu1 %vm313_vm0, %v3547_v37  ;;  %3655 = vmatpush1.bf16.msra.mxu0 %v4135_v9 }
  0xe3   : > { %3659 = vmatpush1.bf16.msra.mxu1 %v4138_v12  ;;  %2173 = vmatprep.mubr.f32.mxu0 %v3891_v0 }
  0xe4   : > { %2286 = vmatprep.mubr.f32.mxu1 %v3891_v0 }
  0xe5   : > { %3556 = vmatmul.mubr.msk.f32.gmra.mrb[50].mxu0 %vm313_vm0, %v3548_v38 }
  0xe6   : > { %3564 = vmatmul.mubr.msk.f32.gmra.mrb[50].mxu1 %vm313_vm0, %v3548_v38  ;;  %2179 = vmatprep.mubr.f32.mxu0 %v3891_v0 }
  0xe7   : > { %2292 = vmatprep.mubr.f32.mxu1 %v3891_v0 }
  0xe9   : > { %3557 = vmatmul.mubr.msk.f32.gmra.mrb[52].mxu0 %vm313_vm0, %v3549_v39 }
  0xea   : > { %3565 = vmatmul.mubr.msk.f32.gmra.mrb[52].mxu1 %vm313_vm0, %v3549_v39  ;;  %2185 = vmatprep.mubr.f32.mxu0 %v3891_v0 }
  0xeb   : > { %2298 = vmatprep.mubr.f32.mxu1 %v3891_v0 }
  0xed   : > { %3558 = vmatmul.mubr.msk.f32.gmra.mrb[54].mxu0 %vm313_vm0, %v3550_v40 }
  0xee   : > { %3566 = vmatmul.mubr.msk.f32.gmra.mrb[54].mxu1 %vm313_vm0, %v3550_v40  ;;  %2191 = vmatprep.mubr.f32.mxu0 %v3891_v0 }
  0xef   : > { %2304 = vmatprep.mubr.f32.mxu1 %v3891_v0 }
  0xf1   : > { %3559 = vmatmul.mubr.msk.f32.gmra.mrb[56].mxu0 %vm313_vm0, %v3551_v41 }
  0xf2   : > { %3567 = vmatmul.mubr.msk.f32.gmra.mrb[56].mxu1 %vm313_vm0, %v3551_v41  ;;  %2197 = vmatprep.mubr.f32.mxu0 %v3891_v0 }
  0xf3   : > { %2310 = vmatprep.mubr.f32.mxu1 %v3891_v0 }
  0xf5   : > { %3560 = vmatmul.mubr.msk.f32.gmra.mrb[58].mxu0 %vm313_vm0, %v3552_v42 }
  0xf6   : > { %3568 = vmatmul.mubr.msk.f32.gmra.mrb[58].mxu1 %vm313_vm0, %v3552_v42  ;;  %2203 = vmatprep.mubr.f32.mxu0 %v3891_v0 }
  0xf7   : > { %2316 = vmatprep.mubr.f32.mxu1 %v3891_v0 }
  0xf9   : > { %3561 = vmatmul.mubr.msk.f32.gmra.mrb[60].mxu0 %vm313_vm0, %v3553_v43 }
  0xfa   : > { %3569 = vmatmul.mubr.msk.f32.gmra.mrb[60].mxu1 %vm313_vm0, %v3553_v43  ;;  %2209 = vmatprep.mubr.f32.mxu0 %v3891_v0 }
  0xfb   : > { %2322 = vmatprep.mubr.f32.mxu1 %v3891_v0 }
  0xfd   : > { %3562 = vmatmul.mubr.msk.f32.gmra.mrb[62].mxu0 %vm313_vm0, %v3554_v44 }
  0xfe   : > { %3570 = vmatmul.mubr.msk.f32.gmra.mrb[62].mxu1 %vm313_vm0, %v3554_v44  ;;  %2756 = vmatprep.mubr.f32.mxu0 %v3891_v0 }
  0xff   : > { %2869 = vmatprep.mubr.f32.mxu1 %v3891_v0 }
 0x101   : > { %3587 = vmatmul.mubr.msk.f32.vlgmr.msra.gmra.mrb[64].mxu0 %vm313_vm0, %v3579_v45 }
 0x102   : > { %3595 = vmatmul.mubr.msk.f32.vlgmr.msra.gmra.mrb[64].mxu1 %vm313_vm0, %v3579_v45  ;;  %2762 = vmatprep.mubr.f32.mxu0 %v3891_v0 }
 0x103   : > { %2875 = vmatprep.mubr.f32.mxu1 %v3891_v0 }
 0x105   : > { %3588 = vmatmul.mubr.msk.f32.gmra.mrb[66].mxu0 %vm313_vm0, %v3580_v46 }
 0x106   : > { %3596 = vmatmul.mubr.msk.f32.gmra.mrb[66].mxu1 %vm313_vm0, %v3580_v46  ;;  %2768 = vmatprep.mubr.f32.mxu0 %v3891_v0 }
 0x107   : > { %2881 = vmatprep.mubr.f32.mxu1 %v3891_v0 }
 0x109   : > { %3589 = vmatmul.mubr.msk.f32.gmra.mrb[68].mxu0 %vm313_vm0, %v3581_v47 }
 0x10a   : > { %3597 = vmatmul.mubr.msk.f32.gmra.mrb[68].mxu1 %vm313_vm0, %v3581_v47  ;;  %2774 = vmatprep.mubr.f32.mxu0 %v3891_v0 }
 0x10b   : > { %2887 = vmatprep.mubr.f32.mxu1 %v3891_v0 }
 0x10d   : > { %3590 = vmatmul.mubr.msk.f32.gmra.mrb[70].mxu0 %vm313_vm0, %v3582_v48 }
 0x10e   : > { %3598 = vmatmul.mubr.msk.f32.gmra.mrb[70].mxu1 %vm313_vm0, %v3582_v48  ;;  %2780 = vmatprep.mubr.f32.mxu0 %v3891_v0 }
 0x10f   : > { %2893 = vmatprep.mubr.f32.mxu1 %v3891_v0 }
 0x111   : > { %3591 = vmatmul.mubr.msk.f32.gmra.mrb[72].mxu0 %vm313_vm0, %v3583_v49 }
 0x112   : > { %3599 = vmatmul.mubr.msk.f32.gmra.mrb[72].mxu1 %vm313_vm0, %v3583_v49  ;;  %2786 = vmatprep.mubr.f32.mxu0 %v3891_v0 }
 0x113   : > { %2899 = vmatprep.mubr.f32.mxu1 %v3891_v0 }
 0x115   : > { %3592 = vmatmul.mubr.msk.f32.gmra.mrb[74].mxu0 %vm313_vm0, %v3584_v50 }
 0x116   : > { %3600 = vmatmul.mubr.msk.f32.gmra.mrb[74].mxu1 %vm313_vm0, %v3584_v50  ;;  %2792 = vmatprep.mubr.f32.mxu0 %v3891_v0 }
 0x117   : > { %2905 = vmatprep.mubr.f32.mxu1 %v3891_v0 }
 0x119   : > { %3593 = vmatmul.mubr.msk.f32.gmra.mrb[76].mxu0 %vm313_vm0, %v3585_v51 }
 0x11a   : > { %3601 = vmatmul.mubr.msk.f32.gmra.mrb[76].mxu1 %vm313_vm0, %v3585_v51  ;;  %2798 = vmatprep.mubr.f32.mxu0 %v3891_v0 }
 0x11b   : > { %2911 = vmatprep.mubr.f32.mxu1 %v3891_v0  ;;  %v4451_v0 = vld [vmem:[%s4442_s5 + $0x10] sm:$0xff] }
 0x11d   : > { %3594 = vmatmul.mubr.msk.f32.gmra.mrb[78].mxu0 %vm313_vm0, %v3586_v52 }
 0x11e   : > { %3602 = vmatmul.mubr.msk.f32.gmra.mrb[78].mxu1 %vm313_vm0, %v3586_v52 }
 0x154   : > { %v404_v53 = vpop.f32.mrb[0].mxu0 }
 0x155   : > { %v517_v54 = vpop.f32.mrb[0].mxu1  ;;  %v406_v55 = vpop.f32.mrb[1].mxu0  ;;  %v572_v6 = vmul.f32 %v4438_v60, %v404_v53  ;;  %v732_v7 = vmul.f32 %v4445_v61, %v404_v53 }
 0x156   : > { %v519_v56 = vpop.f32.mrb[1].mxu1  ;;  %v574_v10 = vmul.f32 %v4448_v62, %v517_v54  ;;  %v734_v11 = vmul.f32 %v4451_v0, %v517_v54  ;;  %v573_v12 = vmul.f32 %v4454_v1, %v406_v55  ;;  %v733_v13 = vmul.f32 %v4457_v2, %v406_v55 }
 0x157   : > { %v575_v15 = vmul.f32 %v4460_v3, %v519_v56  ;;  %v735_v16 = vmul.f32 %v4463_v4, %v519_v56 }
 0x158   : > { %v410_v57 = vpop.f32.mrb[2].mxu0 }
 0x159   : > { %v523_v58 = vpop.f32.mrb[2].mxu1  ;;  %v412_v59 = vpop.f32.mrb[3].mxu0  ;;  %v4474_v17 = vmul.f32 %v4438_v60, %v410_v57  ;;  %v4477_v18 = vmul.f32 %v4445_v61, %v410_v57 }
 0x15a   : > { %v525_v63 = vpop.f32.mrb[3].mxu1  ;;  %v4480_v19 = vmul.f32 %v4448_v62, %v523_v58  ;;  %v4483_v20 = vmul.f32 %v4451_v0, %v523_v58  ;;  %v4486_v21 = vmul.f32 %v4454_v1, %v412_v59  ;;  %v4489_v22 = vmul.f32 %v4457_v2, %v412_v59 }
 0x15b   : > { %v4492_v24 = vmul.f32 %v4460_v3, %v525_v63  ;;  %v4495_v25 = vmul.f32 %v4463_v4, %v525_v63 }
 0x15c   : > { %v416_v5 = vpop.f32.mrb[4].mxu0 }
 0x15d   : > { %v529_v8 = vpop.f32.mrb[4].mxu1  ;;  %v418_v9 = vpop.f32.mrb[5].mxu0  ;;  %v4498_v26 = vmul.f32 %v4438_v60, %v416_v5  ;;  %v4501_v27 = vmul.f32 %v4445_v61, %v416_v5 }
 0x15e   : > { %v531_v14 = vpop.f32.mrb[5].mxu1  ;;  %v4504_v30 = vmul.f32 %v4448_v62, %v529_v8  ;;  %v4507_v31 = vmul.f32 %v4451_v0, %v529_v8  ;;  %v4510_v32 = vmul.f32 %v4454_v1, %v418_v9  ;;  %v4513_v33 = vmul.f32 %v4457_v2, %v418_v9 }
 0x15f   : > { %v4516_v35 = vmul.f32 %v4460_v3, %v531_v14  ;;  %v4519_v36 = vmul.f32 %v4463_v4, %v531_v14 }
 0x160   : > { %v422_v23 = vpop.f32.mrb[6].mxu0 }
 0x161   : > { %v535_v28 = vpop.f32.mrb[6].mxu1  ;;  %v424_v29 = vpop.f32.mrb[7].mxu0  ;;  %v4522_v37 = vmul.f32 %v4438_v60, %v422_v23  ;;  %v4525_v38 = vmul.f32 %v4445_v61, %v422_v23 }
 0x162   : > { %v537_v34 = vpop.f32.mrb[7].mxu1  ;;  %v4528_v39 = vmul.f32 %v4448_v62, %v535_v28  ;;  %v4531_v40 = vmul.f32 %v4451_v0, %v535_v28  ;;  %v4534_v41 = vmul.f32 %v4454_v1, %v424_v29  ;;  %v4537_v42 = vmul.f32 %v4457_v2, %v424_v29 }
 0x163   : > { %6464 = vst [vmem:[#allocation15_spill] sm:$0xff] %v4525_v38  ;;  %v4540_v44 = vmul.f32 %v4460_v3, %v537_v34  ;;  %v4543_v45 = vmul.f32 %v4463_v4, %v537_v34 }
 0x164   : > { %6465 = vst [vmem:[#allocation16_spill] sm:$0xff] %v4528_v39  ;;  %6466 = vst [vmem:[#allocation17_spill] sm:$0xff] %v4531_v40  ;;  %v428_v43 = vpop.f32.mrb[8].mxu0 }
 0x165   : > { %6467 = vst [vmem:[#allocation18_spill] sm:$0xff] %v4534_v41  ;;  %6468 = vst [vmem:[#allocation19_spill] sm:$0xff] %v4537_v42  ;;  %v588_v46 = vmul.f32 %v4445_v61, %v428_v43  ;;  %v748_v47 = vmul.f32 %v4438_v60, %v428_v43  ;;  %v541_v48 = vpop.f32.mrb[8].mxu1  ;;  %v430_v49 = vpop.f32.mrb[9].mxu0 }
 0x166   : > { %6469 = vst [vmem:[#allocation20_spill] sm:$0xff] %v4540_v44  ;;  %6470 = vst [vmem:[#allocation21_spill] sm:$0xff] %v4543_v45  ;;  %v590_v50 = vmul.f32 %v4451_v0, %v541_v48  ;;  %v750_v51 = vmul.f32 %v4448_v62, %v541_v48  ;;  %v589_v52 = vmul.f32 %v4457_v2, %v430_v49  ;;  %v543_v54 = vpop.f32.mrb[9].mxu1 }
 0x167   : > { %v749_v53 = vmul.f32 %v4454_v1, %v430_v49  ;;  %v604_v55 = vsub.f32 %v572_v6, %v588_v46  ;;  %v764_v56 = vadd.f32 %v748_v47, %v732_v7  ;;  %v591_v57 = vmul.f32 %v4463_v4, %v543_v54 }
 0x168   : > { %v751_v58 = vmul.f32 %v4460_v3, %v543_v54  ;;  %v606_v59 = vsub.f32 %v574_v10, %v590_v50  ;;  %v766_v63 = vadd.f32 %v750_v51, %v734_v11  ;;  %v605_v5 = vsub.f32 %v573_v12, %v589_v52  ;;  %v4553_v9 = vpop.f32.mrb[10].mxu0 }
 0x169   : > { %v765_v8 = vadd.f32 %v749_v53, %v733_v13  ;;  %v620_v14 = vrot.slane %v604_v55, 4  ;;  %v780_v23 = vrot.slane %v764_v56, 4  ;;  %v607_v28 = vsub.f32 %v575_v15, %v591_v57  ;;  %v4555_v34 = vpop.f32.mrb[10].mxu1  ;;  %v4557_v43 = vpop.f32.mrb[11].mxu0 }
 0x16a   : > { %v767_v29 = vadd.f32 %v751_v58, %v735_v16  ;;  %v632_v6 = vrot.slane %v606_v59, 4  ;;  %v792_v7 = vrot.slane %v766_v63, 4  ;;  %v626_v46 = vrot.slane %v605_v5, 4  ;;  %v4559_v48 = vpop.f32.mrb[11].mxu1 }
 0x16b   : > { %v786_v47 = vrot.slane %v765_v8, 4  ;;  %v621_v10 = vadd.f32 %v620_v14, %v604_v55  ;;  %v781_v11 = vadd.f32 %v780_v23, %v764_v56  ;;  %v638_v12 = vrot.slane %v607_v28, 4 }
 0x16c   : > { %v798_v13 = vrot.slane %v767_v29, 4  ;;  %v633_v49 = vadd.f32 %v632_v6, %v606_v59  ;;  %v793_v50 = vadd.f32 %v792_v7, %v766_v63  ;;  %v627_v51 = vadd.f32 %v626_v46, %v605_v5  ;;  %v4561_v15 = vpop.f32.mrb[12].mxu0 }
 0x16d   : > { %v787_v52 = vadd.f32 %v786_v47, %v765_v8  ;;  %v622_v16 = vrot.slane %v621_v10, 2  ;;  %v782_v53 = vrot.slane %v781_v11, 2  ;;  %v639_v54 = vadd.f32 %v638_v12, %v607_v28  ;;  %v4563_v58 = vpop.f32.mrb[12].mxu1  ;;  %v4565_v45 = vpop.f32.mrb[13].mxu0 }
 0x16e   : > { %v799_v57 = vadd.f32 %v798_v13, %v767_v29  ;;  %v634_v44 = vrot.slane %v633_v49, 2  ;;  %v794_v42 = vrot.slane %v793_v50, 2  ;;  %v628_v55 = vrot.slane %v627_v51, 2  ;;  %v4567_v14 = vpop.f32.mrb[13].mxu1 }
 0x16f   : > { %v788_v56 = vrot.slane %v787_v52, 2  ;;  %v623_v59 = vadd.f32 %v622_v16, %v621_v10  ;;  %v783_v63 = vadd.f32 %v782_v53, %v781_v11  ;;  %v640_v5 = vrot.slane %v639_v54, 2 }
 0x170   : > { %v800_v8 = vrot.slane %v799_v57, 2  ;;  %v635_v23 = vadd.f32 %v634_v44, %v633_v49  ;;  %v795_v6 = vadd.f32 %v794_v42, %v793_v50  ;;  %v629_v7 = vadd.f32 %v628_v55, %v627_v51  ;;  %v4569_v28 = vpop.f32.mrb[14].mxu0 }
 0x171   : > { %v789_v46 = vadd.f32 %v788_v56, %v787_v52  ;;  %v624_v29 = vrot.slane %v623_v59, 1  ;;  %v784_v47 = vrot.slane %v783_v63, 1  ;;  %v641_v12 = vadd.f32 %v640_v5, %v639_v54  ;;  %v4571_v41 = vpop.f32.mrb[14].mxu1  ;;  %v4573_v40 = vpop.f32.mrb[15].mxu0 }
 0x172   : > { %v801_v13 = vadd.f32 %v800_v8, %v799_v57  ;;  %v636_v39 = vrot.slane %v635_v23, 1  ;;  %v796_v38 = vrot.slane %v795_v6, 1  ;;  %v630_v10 = vrot.slane %v629_v7, 1  ;;  %v4575_v16 = vpop.f32.mrb[15].mxu1 }
 0x173   : > { %v790_v11 = vrot.slane %v789_v46, 1  ;;  %v4577_v44 = vadd.f32 %v624_v29, %v623_v59  ;;  %v4579_v42 = vadd.f32 %v784_v47, %v783_v63  ;;  %v642_v49 = vrot.slane %v641_v12, 1 }
 0x174   : > { %v802_v50 = vrot.slane %v801_v13, 1  ;;  %v4581_v51 = vadd.f32 %v636_v39, %v635_v23  ;;  %v4583_v52 = vadd.f32 %v796_v38, %v795_v6  ;;  %v4585_v53 = vadd.f32 %v630_v10, %v629_v7  ;;  %v4589_v57 = vpop.f32.mrb[16].mxu0 }
 0x175   : > { %6471 = vst [vmem:[#allocation22_spill] sm:$0xff] %v4577_v44  ;;  %6472 = vst [vmem:[#allocation23_spill] sm:$0xff] %v4579_v42  ;;  %v4587_v54 = vadd.f32 %v790_v11, %v789_v46  ;;  %v4591_v55 = vadd.f32 %v642_v49, %v641_v12  ;;  %v592_v59 = vmul.f32 %v4445_v61, %v4553_v9  ;;  %v4599_v39 = vpop.f32.mrb[16].mxu1  ;;  %v4601_v38 = vpop.f32.mrb[17].mxu0 }
 0x176   : > { %6473 = vst [vmem:[#allocation24_spill] sm:$0xff] %v4581_v51  ;;  %6474 = vst [vmem:[#allocation25_spill] sm:$0xff] %v4583_v52  ;;  %v4593_v56 = vadd.f32 %v802_v50, %v801_v13  ;;  %v752_v63 = vmul.f32 %v4438_v60, %v4553_v9  ;;  %v594_v5 = vmul.f32 %v4451_v0, %v4555_v34  ;;  %v4611_v7 = vpop.f32.mrb[17].mxu1 }
 0x177   : > { %6475 = vst [vmem:[#allocation26_spill] sm:$0xff] %v4585_v53  ;;  %6476 = vst [vmem:[#allocation27_spill] sm:$0xff] %v4587_v54  ;;  %v754_v8 = vmul.f32 %v4448_v62, %v4555_v34  ;;  %v593_v23 = vmul.f32 %v4457_v2, %v4557_v43  ;;  %v753_v6 = vmul.f32 %v4454_v1, %v4557_v43 }
 0x178   : > { %6477 = vst [vmem:[#allocation28_spill] sm:$0xff] %v4591_v55  ;;  %6478 = vst [vmem:[#allocation29_spill] sm:$0xff] %v4593_v56  ;;  %v608_v9 = vsub.f32 %v4474_v17, %v592_v59  ;;  %v768_v46 = vadd.f32 %v752_v63, %v4477_v18  ;;  %v595_v29 = vmul.f32 %v4463_v4, %v4559_v48  ;;  %v4623_v10 = vpop.f32.mrb[18].mxu0 }
 0x179   : > { %v755_v47 = vmul.f32 %v4460_v3, %v4559_v48  ;;  %v610_v34 = vsub.f32 %v4480_v19, %v594_v5  ;;  %v770_v12 = vadd.f32 %v754_v8, %v4483_v20  ;;  %v609_v13 = vsub.f32 %v4486_v21, %v593_v23  ;;  %v4627_v50 = vpop.f32.mrb[18].mxu1  ;;  %v4629_v59 = vpop.f32.mrb[19].mxu0 }
 0x17a   : > { %v769_v43 = vadd.f32 %v753_v6, %v4489_v22  ;;  %v644_v11 = vrot.slane %v608_v9, 4  ;;  %v804_v17 = vrot.slane %v768_v46, 4  ;;  %v611_v18 = vsub.f32 %v4492_v24, %v595_v29  ;;  %v4631_v5 = vpop.f32.mrb[19].mxu1 }
 0x17b   : > { %v771_v49 = vadd.f32 %v755_v47, %v4495_v25  ;;  %v656_v48 = vrot.slane %v610_v34, 4  ;;  %v816_v19 = vrot.slane %v770_v12, 4  ;;  %v650_v63 = vrot.slane %v609_v13, 4 }
 0x17c   : > { %v810_v20 = vrot.slane %v769_v43, 4  ;;  %v645_v21 = vadd.f32 %v644_v11, %v608_v9  ;;  %v805_v22 = vadd.f32 %v804_v17, %v768_v46  ;;  %v662_v8 = vrot.slane %v611_v18, 4  ;;  %v4633_v29 = vpop.f32.mrb[20].mxu0 }
 0x17d   : > { %v822_v23 = vrot.slane %v771_v49, 4  ;;  %v657_v6 = vadd.f32 %v656_v48, %v610_v34  ;;  %v817_v56 = vadd.f32 %v816_v19, %v770_v12  ;;  %v651_v55 = vadd.f32 %v650_v63, %v609_v13  ;;  %6479 = vst [vmem:[#allocation30_spill] sm:$0xff] %v4633_v29  ;;  %v4635_v52 = vpop.f32.mrb[20].mxu1  ;;  %v4637_v51 = vpop.f32.mrb[21].mxu0 }
 0x17e   : > { %v811_v24 = vadd.f32 %v810_v20, %v769_v43  ;;  %v646_v25 = vrot.slane %v645_v21, 2  ;;  %v806_v47 = vrot.slane %v805_v22, 2  ;;  %v663_v54 = vadd.f32 %v662_v8, %v611_v18  ;;  %6480 = vst [vmem:[#allocation31_spill] sm:$0xff] %v4635_v52  ;;  %6481 = vst [vmem:[#allocation32_spill] sm:$0xff] %v4637_v51  ;;  %v4639_v11 = vpop.f32.mrb[21].mxu1 }
 0x17f   : > { %v823_v53 = vadd.f32 %v822_v23, %v771_v49  ;;  %v658_v42 = vrot.slane %v657_v6, 2  ;;  %v818_v44 = vrot.slane %v817_v56, 2  ;;  %v652_v9 = vrot.slane %v651_v55, 2  ;;  %6482 = vst [vmem:[#allocation33_spill] sm:$0xff] %v4639_v11 }
 0x180   : > { %v812_v46 = vrot.slane %v811_v24, 2  ;;  %v647_v34 = vadd.f32 %v646_v25, %v645_v21  ;;  %v807_v12 = vadd.f32 %v806_v47, %v805_v22  ;;  %v664_v13 = vrot.slane %v663_v54, 2  ;;  %v4641_v18 = vpop.f32.mrb[22].mxu0 }
 0x181   : > { %v824_v43 = vrot.slane %v823_v53, 2  ;;  %v659_v17 = vadd.f32 %v658_v42, %v657_v6  ;;  %v819_v48 = vadd.f32 %v818_v44, %v817_v56  ;;  %v653_v19 = vadd.f32 %v652_v9, %v651_v55  ;;  %v4643_v51 = vpop.f32.mrb[22].mxu1  ;;  %v4645_v52 = vpop.f32.mrb[23].mxu0 }
 0x182   : > { %v813_v63 = vadd.f32 %v812_v46, %v811_v24  ;;  %v648_v49 = vrot.slane %v647_v34, 1  ;;  %v808_v20 = vrot.slane %v807_v12, 1  ;;  %v665_v8 = vadd.f32 %v664_v13, %v663_v54  ;;  %v4647_v25 = vpop.f32.mrb[23].mxu1 }
 0x183   : > { %v825_v23 = vadd.f32 %v824_v43, %v823_v53  ;;  %v660_v29 = vrot.slane %v659_v17, 1  ;;  %v820_v11 = vrot.slane %v819_v48, 1  ;;  %v654_v21 = vrot.slane %v653_v19, 1 }
 0x184   : > { %v814_v22 = vrot.slane %v813_v63, 1  ;;  %v4649_v42 = vadd.f32 %v648_v49, %v647_v34  ;;  %v4651_v44 = vadd.f32 %v808_v20, %v807_v12  ;;  %v666_v55 = vrot.slane %v665_v8, 1  ;;  %v4661_v47 = vpop.f32.mrb[24].mxu0 }
 0x185   : > { %v826_v56 = vrot.slane %v825_v23, 1  ;;  %v4653_v6 = vadd.f32 %v660_v29, %v659_v17  ;;  %v4655_v54 = vadd.f32 %v820_v11, %v819_v48  ;;  %v4657_v53 = vadd.f32 %v654_v21, %v653_v19  ;;  %v4671_v29 = vpop.f32.mrb[24].mxu1  ;;  %v4673_v11 = vpop.f32.mrb[25].mxu0 }
 0x186   : > { %6483 = vst [vmem:[#allocation34_spill] sm:$0xff] %v4649_v42  ;;  %6484 = vst [vmem:[#allocation35_spill] sm:$0xff] %v4651_v44  ;;  %v4659_v24 = vadd.f32 %v814_v22, %v813_v63  ;;  %v4663_v9 = vadd.f32 %v666_v55, %v665_v8  ;;  %v596_v34 = vmul.f32 %v4445_v61, %v4561_v15  ;;  %v4683_v19 = vpop.f32.mrb[25].mxu1 }
 0x187   : > { %6485 = vst [vmem:[#allocation36_spill] sm:$0xff] %v4653_v6  ;;  %6486 = vst [vmem:[#allocation37_spill] sm:$0xff] %v4655_v54  ;;  %v4665_v46 = vadd.f32 %v826_v56, %v825_v23  ;;  %v756_v12 = vmul.f32 %v4438_v60, %v4561_v15  ;;  %v598_v13 = vmul.f32 %v4451_v0, %v4563_v58 }
 0x188   : > { %6487 = vst [vmem:[#allocation38_spill] sm:$0xff] %v4657_v53  ;;  %6488 = vst [vmem:[#allocation39_spill] sm:$0xff] %v4659_v24  ;;  %v758_v43 = vmul.f32 %v4448_v62, %v4563_v58  ;;  %v597_v17 = vmul.f32 %v4457_v2, %v4565_v45  ;;  %v757_v48 = vmul.f32 %v4454_v1, %v4565_v45  ;;  %v4695_v21 = vpop.f32.mrb[26].mxu0 }
 0x189   : > { %6489 = vst [vmem:[#allocation40_spill] sm:$0xff] %v4663_v9  ;;  %6490 = vst [vmem:[#allocation41_spill] sm:$0xff] %v4665_v46  ;;  %v612_v15 = vsub.f32 %v4498_v26, %v596_v34  ;;  %v772_v63 = vadd.f32 %v756_v12, %v4501_v27  ;;  %v599_v49 = vmul.f32 %v4463_v4, %v4567_v14  ;;  %v4699_v56 = vpop.f32.mrb[26].mxu1  ;;  %v4701_v34 = vpop.f32.mrb[27].mxu0 }
 0x18a   : > { %v759_v20 = vmul.f32 %v4460_v3, %v4567_v14  ;;  %v614_v58 = vsub.f32 %v4504_v30, %v598_v13  ;;  %v774_v8 = vadd.f32 %v758_v43, %v4507_v31  ;;  %v613_v23 = vsub.f32 %v4510_v32, %v597_v17  ;;  %v4703_v13 = vpop.f32.mrb[27].mxu1 }
 0x18b   : > { %v773_v45 = vadd.f32 %v757_v48, %v4513_v33  ;;  %v668_v22 = vrot.slane %v612_v15, 4  ;;  %v828_v26 = vrot.slane %v772_v63, 4  ;;  %v615_v27 = vsub.f32 %v4516_v35, %v599_v49 }
 0x18c   : > { %v775_v55 = vadd.f32 %v759_v20, %v4519_v36  ;;  %v680_v14 = vrot.slane %v614_v58, 4  ;;  %v840_v30 = vrot.slane %v774_v8, 4  ;;  %v674_v12 = vrot.slane %v613_v23, 4  ;;  %v4705_v49 = vpop.f32.mrb[28].mxu0 }
 0x18d   : > { %v834_v31 = vrot.slane %v773_v45, 4  ;;  %v669_v32 = vadd.f32 %v668_v22, %v612_v15  ;;  %v829_v33 = vadd.f32 %v828_v26, %v772_v63  ;;  %v686_v43 = vrot.slane %v615_v27, 4  ;;  %6491 = vst [vmem:[#allocation42_spill] sm:$0xff] %v4705_v49  ;;  %v4707_v54 = vpop.f32.mrb[28].mxu1  ;;  %v4709_v6 = vpop.f32.mrb[29].mxu0 }
 0x18e   : > { %v846_v17 = vrot.slane %v775_v55, 4  ;;  %v681_v48 = vadd.f32 %v680_v14, %v614_v58  ;;  %v841_v46 = vadd.f32 %v840_v30, %v774_v8  ;;  %v675_v9 = vadd.f32 %v674_v12, %v613_v23  ;;  %6492 = vst [vmem:[#allocation43_spill] sm:$0xff] %v4707_v54  ;;  %6493 = vst [vmem:[#allocation44_spill] sm:$0xff] %v4709_v6  ;;  %v4711_v22 = vpop.f32.mrb[29].mxu1 }
 0x18f   : > { %v835_v35 = vadd.f32 %v834_v31, %v773_v45  ;;  %v670_v36 = vrot.slane %v669_v32, 2  ;;  %v830_v20 = vrot.slane %v829_v33, 2  ;;  %v687_v24 = vadd.f32 %v686_v43, %v615_v27  ;;  %6494 = vst [vmem:[#allocation45_spill] sm:$0xff] %v4711_v22 }
 0x190   : > { %v847_v53 = vadd.f32 %v846_v17, %v775_v55  ;;  %v682_v44 = vrot.slane %v681_v48, 2  ;;  %v842_v42 = vrot.slane %v841_v46, 2  ;;  %v676_v15 = vrot.slane %v675_v9, 2  ;;  %v4713_v27 = vpop.f32.mrb[30].mxu0 }
 0x191   : > { %v836_v63 = vrot.slane %v835_v35, 2  ;;  %v671_v58 = vadd.f32 %v670_v36, %v669_v32  ;;  %v831_v8 = vadd.f32 %v830_v20, %v829_v33  ;;  %v688_v23 = vrot.slane %v687_v24, 2  ;;  %6495 = vst [vmem:[#allocation46_spill] sm:$0xff] %v4713_v27  ;;  %v4715_v6 = vpop.f32.mrb[30].mxu1  ;;  %v4717_v54 = vpop.f32.mrb[31].mxu0 }
 0x192   : > { %v848_v45 = vrot.slane %v847_v53, 2  ;;  %v683_v26 = vadd.f32 %v682_v44, %v681_v48  ;;  %v843_v14 = vadd.f32 %v842_v42, %v841_v46  ;;  %v677_v30 = vadd.f32 %v676_v15, %v675_v9  ;;  %6496 = vst [vmem:[#allocation47_spill] sm:$0xff] %v4715_v6  ;;  %6497 = vst [vmem:[#allocation48_spill] sm:$0xff] %v4717_v54  ;;  %v4719_v36 = vpop.f32.mrb[31].mxu1 }
 0x193   : > { %v837_v12 = vadd.f32 %v836_v63, %v835_v35  ;;  %v672_v55 = vrot.slane %v671_v58, 1  ;;  %v832_v31 = vrot.slane %v831_v8, 1  ;;  %v689_v43 = vadd.f32 %v688_v23, %v687_v24  ;;  %6498 = vst [vmem:[#allocation49_spill] sm:$0xff] %v4719_v36 }
 0x194   : > { %v849_v17 = vadd.f32 %v848_v45, %v847_v53  ;;  %v684_v49 = vrot.slane %v683_v26, 1  ;;  %v844_v22 = vrot.slane %v843_v14, 1  ;;  %v678_v32 = vrot.slane %v677_v30, 1  ;;  %v4733_v20 = vpop.f32.mrb[32].mxu0 }
 0x195   : > { %v838_v33 = vrot.slane %v837_v12, 1  ;;  %v4721_v44 = vadd.f32 %v672_v55, %v671_v58  ;;  %v4723_v42 = vadd.f32 %v832_v31, %v831_v8  ;;  %v690_v9 = vrot.slane %v689_v43, 1  ;;  %6503 = vst [vmem:[#allocation54_spill] sm:$0xff] %v4733_v20  ;;  %v6510_v55 = vld [vmem:[#allocation16_spill] sm:$0xff] }
 0x196   : > { %v850_v46 = vrot.slane %v849_v17, 1  ;;  %v4725_v48 = vadd.f32 %v684_v49, %v683_v26  ;;  %v4727_v24 = vadd.f32 %v844_v22, %v843_v14  ;;  %v4729_v53 = vadd.f32 %v678_v32, %v677_v30  ;;  %v4743_v49 = vpop.f32.mrb[32].mxu1  ;;  %v4745_v22 = vpop.f32.mrb[33].mxu0 }
 0x197   : > { %v4731_v35 = vadd.f32 %v838_v33, %v837_v12  ;;  %v4735_v15 = vadd.f32 %v690_v9, %v689_v43  ;;  %v600_v58 = vmul.f32 %v4445_v61, %v4569_v28  ;;  %v760_v8 = vmul.f32 %v4438_v60, %v4569_v28  ;;  %6506 = vst [vmem:[#allocation57_spill] sm:$0xff] %v4743_v49  ;;  %v4755_v61 = vpop.f32.mrb[33].mxu1  ;;  %v6509_v28 = vld [vmem:[#allocation15_spill] sm:$0xff]  ;;  %v6515_v33 = vld [vmem:[#allocation20_spill] sm:$0xff] }
 0x198   : > { %6499 = vst [vmem:[#allocation50_spill] sm:$0xff] %v4725_v48  ;;  %6500 = vst [vmem:[#allocation51_spill] sm:$0xff] %v4727_v24  ;;  %v4737_v63 = vadd.f32 %v850_v46, %v849_v17  ;;  %v602_v23 = vmul.f32 %v4451_v0, %v4571_v41  ;;  %v762_v45 = vmul.f32 %v4448_v62, %v4571_v41  ;;  %v6511_v41 = vld [vmem:[#allocation17_spill] sm:$0xff]  ;;  %v6513_v17 = vld [vmem:[#allocation19_spill] sm:$0xff] }
 0x199   : > { %6501 = vst [vmem:[#allocation52_spill] sm:$0xff] %v4729_v53  ;;  %6502 = vst [vmem:[#allocation53_spill] sm:$0xff] %v4731_v35  ;;  %v601_v26 = vmul.f32 %v4457_v2, %v4573_v40  ;;  %v761_v14 = vmul.f32 %v4454_v1, %v4573_v40  ;;  %v616_v60 = vsub.f32 %v4522_v37, %v600_v58  ;;  %v6512_v2 = vld [vmem:[#allocation18_spill] sm:$0xff]  ;;  %v4767_v40 = vpop.f32.mrb[34].mxu0  ;;  %v6516_v46 = vld [vmem:[#allocation21_spill] sm:$0xff] }
 0x19a   : > { %6504 = vst [vmem:[#allocation55_spill] sm:$0xff] %v4735_v15  ;;  %6505 = vst [vmem:[#allocation56_spill] sm:$0xff] %v4737_v63  ;;  %v776_v30 = vadd.f32 %v760_v8, %v6509_v28  ;;  %v603_v12 = vmul.f32 %v4463_v4, %v4575_v16  ;;  %v763_v0 = vmul.f32 %v4460_v3, %v4575_v16  ;;  %v4771_v4 = vpop.f32.mrb[34].mxu1  ;;  %v4773_v8 = vpop.f32.mrb[35].mxu0 }
 0x19b   : > { %6507 = vst [vmem:[#allocation58_spill] sm:$0xff] %v4745_v22  ;;  %6508 = vst [vmem:[#allocation59_spill] sm:$0xff] %v4755_v61  ;;  %v618_v62 = vsub.f32 %v6510_v55, %v602_v23  ;;  %v778_v31 = vadd.f32 %v762_v45, %v6511_v41  ;;  %v617_v43 = vsub.f32 %v6512_v2, %v601_v26  ;;  %v692_v32 = vrot.slane %v616_v60, 4  ;;  %v4775_v28 = vpop.f32.mrb[35].mxu1 }
 0x19c   : > { %v777_v1 = vadd.f32 %v761_v14, %v6513_v17  ;;  %6514 = vst [vmem:[#allocation15_spill] sm:$0xff] %v4767_v40  ;;  %v852_v37 = vrot.slane %v776_v30, 4  ;;  %v619_v9 = vsub.f32 %v6515_v33, %v603_v12  ;;  %v779_v58 = vadd.f32 %v763_v0, %v6516_v46  ;;  %6517 = vst [vmem:[#allocation16_spill] sm:$0xff] %v4771_v4  ;;  %v4777_v33 = vpop.f32.mrb[36].mxu0 }
 0x19d   : > { %6518 = vst [vmem:[#allocation17_spill] sm:$0xff] %v4773_v8  ;;  %v704_v3 = vrot.slane %v618_v62, 4  ;;  %v864_v16 = vrot.slane %v778_v31, 4  ;;  %v698_v23 = vrot.slane %v617_v43, 4  ;;  %6519 = vst [vmem:[#allocation18_spill] sm:$0xff] %v4775_v28  ;;  %v693_v26 = vadd.f32 %v692_v32, %v616_v60  ;;  %v4779_v61 = vpop.f32.mrb[36].mxu1 }
 0x19e   : > { %v858_v45 = vrot.slane %v777_v1, 4  ;;  %v853_v14 = vadd.f32 %v852_v37, %v776_v30  ;;  %v710_v55 = vrot.slane %v619_v9, 4  ;;  %v870_v41 = vrot.slane %v779_v58, 4  ;;  %6520 = vst [vmem:[#allocation19_spill] sm:$0xff] %v4777_v33  ;;  %6521 = vst [vmem:[#allocation20_spill] sm:$0xff] %v4779_v61  ;;  %v4781_v22 = vpop.f32.mrb[37].mxu0 }
 0x19f   : > { %v705_v2 = vadd.f32 %v704_v3, %v618_v62  ;;  %v865_v17 = vadd.f32 %v864_v16, %v778_v31  ;;  %v699_v40 = vadd.f32 %v698_v23, %v617_v43  ;;  %v694_v0 = vrot.slane %v693_v26, 2  ;;  %6522 = vst [vmem:[#allocation21_spill] sm:$0xff] %v4781_v22  ;;  %v4783_v62 = vpop.f32.mrb[37].mxu1  ;;  %v4788_v22 = vld [vmem:[%s4123_s13 + $0x20] sm:$0xff] }
 0x1a0   : > { %v859_v12 = vadd.f32 %v858_v45, %v777_v1  ;;  %v854_v46 = vrot.slane %v853_v14, 2  ;;  %v711_v4 = vadd.f32 %v710_v55, %v619_v9  ;;  %v871_v8 = vadd.f32 %v870_v41, %v779_v58  ;;  %6523 = vst [vmem:[#allocation60_spill] sm:$0xff] %v4783_v62  ;;  %v4785_v16 = vpop.f32.mrb[38].mxu0 }
 0x1a1   : > { %v706_v49 = vrot.slane %v705_v2, 2  ;;  %v866_v28 = vrot.slane %v865_v17, 2  ;;  %v700_v60 = vrot.slane %v699_v40, 2  ;;  %v695_v31 = vadd.f32 %v694_v0, %v693_v26  ;;  %6524 = vst [vmem:[#allocation61_spill] sm:$0xff] %v4785_v16  ;;  %v4791_v26 = vld [vmem:[%s4442_s5 + $0x20] sm:$0xff] }
 0x1a2   : > { %v860_v30 = vrot.slane %v859_v12, 2  ;;  %v855_v43 = vadd.f32 %v854_v46, %v853_v14  ;;  %v712_v1 = vrot.slane %v711_v4, 2  ;;  %v872_v32 = vrot.slane %v871_v8, 2  ;;  %v4793_v14 = vpop.f32.mrb[38].mxu1 }
 0x1a3   : > { %v707_v37 = vadd.f32 %v706_v49, %v705_v2  ;;  %v867_v3 = vadd.f32 %v866_v28, %v865_v17  ;;  %v701_v9 = vadd.f32 %v700_v60, %v699_v40  ;;  %v696_v23 = vrot.slane %v695_v31, 1  ;;  %6525 = vst [vmem:[#allocation62_spill] sm:$0xff] %v4793_v14  ;;  %v4795_v49 = vpop.f32.mrb[39].mxu0 }
 0x1a4   : > { %v861_v58 = vadd.f32 %v860_v30, %v859_v12  ;;  %v856_v45 = vrot.slane %v855_v43, 1  ;;  %v713_v55 = vadd.f32 %v712_v1, %v711_v4  ;;  %v873_v41 = vadd.f32 %v872_v32, %v871_v8  ;;  %6526 = vst [vmem:[#allocation63_spill] sm:$0xff] %v4795_v49  ;;  %v4798_v12 = vld [vmem:[%s4123_s13 + $0x30] sm:$0xff]  ;;  %v4800_v4 = vpop.f32.mrb[39].mxu1  ;;  %v4810_v1 = vld [vmem:[%s4123_s13 + $0x28] sm:$0xff] }
 0x1a5   : > { %v708_v28 = vrot.slane %v707_v37, 1  ;;  %v868_v40 = vrot.slane %v867_v3, 1  ;;  %v702_v2 = vrot.slane %v701_v9, 1  ;;  %6527 = vst [vmem:[#allocation64_spill] sm:$0xff] %v4800_v4  ;;  %v4802_v8 = vadd.f32 %v696_v23, %v695_v31  ;;  %v4807_v30 = vld [vmem:[%s4442_s5 + $0x30] sm:$0xff]  ;;  %v4813_v32 = vld [vmem:[%s4442_s5 + $0x28] sm:$0xff] }
 0x1a6   : > { %v862_v17 = vrot.slane %v861_v58, 1  ;;  %v4804_v0 = vadd.f32 %v856_v45, %v855_v43  ;;  %v714_v46 = vrot.slane %v713_v55, 1  ;;  %v874_v60 = vrot.slane %v873_v41, 1  ;;  %v4824_v31 = vld [vmem:[%s4123_s13 + $0x38] sm:$0xff]  ;;  %v4829_v23 = vpop.f32.mrb[40].mxu0 }
 0x1a7   : > { %6528 = vst [vmem:[#allocation65_spill] sm:$0xff] %v4802_v8  ;;  %v4815_v49 = vadd.f32 %v708_v28, %v707_v37  ;;  %v4817_v14 = vadd.f32 %v868_v40, %v867_v3  ;;  %v4819_v16 = vadd.f32 %v702_v2, %v701_v9  ;;  %v4827_v43 = vld [vmem:[%s4442_s5 + $0x38] sm:$0xff]  ;;  %6534 = vst [vmem:[#allocation71_spill] sm:$0xff] %v4829_v23  ;;  %v4839_v9 = vpop.f32.mrb[40].mxu1 }
 0x1a8   : > { %6529 = vst [vmem:[#allocation66_spill] sm:$0xff] %v4804_v0  ;;  %v4821_v62 = vadd.f32 %v862_v17, %v861_v58  ;;  %v4831_v45 = vadd.f32 %v714_v46, %v713_v55  ;;  %v4833_v4 = vadd.f32 %v874_v60, %v873_v41  ;;  %v1161_v37 = vmul.f32 %v4788_v22, %v4589_v57  ;;  %v4841_v58 = vpop.f32.mrb[41].mxu0  ;;  %v4851_v2 = vpop.f32.mrb[41].mxu1 }
 0x1a9   : > { %6530 = vst [vmem:[#allocation67_spill] sm:$0xff] %v4815_v49  ;;  %6531 = vst [vmem:[#allocation68_spill] sm:$0xff] %v4817_v14  ;;  %v1321_v3 = vmul.f32 %v4791_v26, %v4589_v57  ;;  %v1163_v28 = vmul.f32 %v4798_v12, %v4599_v39  ;;  %v1323_v40 = vmul.f32 %v4807_v30, %v4599_v39 }
 0x1aa   : > { %6532 = vst [vmem:[#allocation69_spill] sm:$0xff] %v4819_v16  ;;  %6533 = vst [vmem:[#allocation70_spill] sm:$0xff] %v4821_v62  ;;  %v1162_v55 = vmul.f32 %v4810_v1, %v4601_v38  ;;  %v1322_v41 = vmul.f32 %v4813_v32, %v4601_v38  ;;  %v1164_v57 = vmul.f32 %v4824_v31, %v4611_v7 }
 0x1ab   : > { %6535 = vst [vmem:[#allocation72_spill] sm:$0xff] %v4831_v45  ;;  %6536 = vst [vmem:[#allocation73_spill] sm:$0xff] %v4833_v4  ;;  %v1324_v17 = vmul.f32 %v4827_v43, %v4611_v7  ;;  %v4859_v46 = vmul.f32 %v4788_v22, %v4623_v10  ;;  %v4863_v39 = vmul.f32 %v4791_v26, %v4623_v10  ;;  %v6545_v4 = vld [vmem:[#allocation32_spill] sm:$0xff] }
 0x1ac   : > { %6537 = vst [vmem:[#allocation74_spill] sm:$0xff] %v4839_v9  ;;  %6538 = vst [vmem:[#allocation75_spill] sm:$0xff] %v4841_v58  ;;  %v4867_v60 = vmul.f32 %v4798_v12, %v4627_v50  ;;  %v4871_v38 = vmul.f32 %v4807_v30, %v4627_v50  ;;  %v4879_v7 = vmul.f32 %v4813_v32, %v4629_v59  ;;  %v4881_v58 = vpop.f32.mrb[42].mxu0  ;;  %v6541_v50 = vld [vmem:[#allocation30_spill] sm:$0xff] }
 0x1ad   : > { %6539 = vst [vmem:[#allocation76_spill] sm:$0xff] %v4851_v2  ;;  %v4875_v2 = vmul.f32 %v4810_v1, %v4629_v59  ;;  %6540 = vst [vmem:[#allocation77_spill] sm:$0xff] %v4881_v58  ;;  %v4885_v10 = vmul.f32 %v4824_v31, %v4631_v5  ;;  %v4889_v9 = vmul.f32 %v4827_v43, %v4631_v5  ;;  %v4899_v59 = vpop.f32.mrb[42].mxu1  ;;  %v4901_v33 = vpop.f32.mrb[43].mxu0  ;;  %v6544_v58 = vld [vmem:[#allocation31_spill] sm:$0xff] }
 0x1ae   : > { %v4893_v23 = vmul.f32 %v4788_v22, %v6541_v50  ;;  %v4897_v61 = vmul.f32 %v4791_v26, %v6541_v50  ;;  %6542 = vst [vmem:[#allocation30_spill] sm:$0xff] %v4899_v59  ;;  %6543 = vst [vmem:[#allocation78_spill] sm:$0xff] %v4901_v33  ;;  %v4905_v20 = vmul.f32 %v4798_v12, %v6544_v58  ;;  %v4919_v62 = vpop.f32.mrb[43].mxu1  ;;  %v6547_v59 = vld [vmem:[#allocation33_spill] sm:$0xff]  ;;  %v4953_v0 = vpop.f32.mrb[44].mxu0 }
 0x1af   : > { %v4909_v5 = vmul.f32 %v4807_v30, %v6544_v58  ;;  %v4913_v45 = vmul.f32 %v4810_v1, %v6545_v4  ;;  %v4917_v50 = vmul.f32 %v4813_v32, %v6545_v4  ;;  %6546 = vst [vmem:[#allocation31_spill] sm:$0xff] %v4919_v62  ;;  %v4923_v33 = vmul.f32 %v4824_v31, %v6547_v59 }
 0x1b0   : > { %v4927_v16 = vmul.f32 %v4827_v43, %v6547_v59  ;;  %v4931_v58 = vmul.f32 %v4788_v22, %v4641_v18  ;;  %v4935_v14 = vmul.f32 %v4791_v26, %v4641_v18  ;;  %v4939_v4 = vmul.f32 %v4798_v12, %v4643_v51  ;;  %6554 = vst [vmem:[#allocation83_spill] sm:$0xff] %v4953_v0 }
 0x1b1   : > { %v4943_v62 = vmul.f32 %v4807_v30, %v4643_v51  ;;  %v4947_v59 = vmul.f32 %v4810_v1, %v4645_v52  ;;  %v4951_v49 = vmul.f32 %v4813_v32, %v4645_v52  ;;  %v4957_v18 = vmul.f32 %v4824_v31, %v4647_v25  ;;  %v4969_v52 = vpop.f32.mrb[45].mxu0 }
 0x1b2   : > { %6548 = vst [vmem:[#allocation32_spill] sm:$0xff] %v4931_v58  ;;  %6549 = vst [vmem:[#allocation33_spill] sm:$0xff] %v4935_v14  ;;  %v4961_v8 = vmul.f32 %v4827_v43, %v4647_v25  ;;  %v1177_v51 = vmul.f32 %v4791_v26, %v4661_v47  ;;  %v1179_v0 = vmul.f32 %v4807_v30, %v4671_v29  ;;  %v4985_v54 = vpop.f32.mrb[46].mxu0 }
 0x1b3   : > { %6550 = vst [vmem:[#allocation79_spill] sm:$0xff] %v4939_v4  ;;  %6551 = vst [vmem:[#allocation80_spill] sm:$0xff] %v4943_v62  ;;  %v4967_v62 = vpop.f32.mrb[44].mxu1  ;;  %v1178_v25 = vmul.f32 %v4813_v32, %v4673_v11 }
 0x1b4   : > { %6552 = vst [vmem:[#allocation81_spill] sm:$0xff] %v4947_v59  ;;  %6553 = vst [vmem:[#allocation82_spill] sm:$0xff] %v4951_v49  ;;  %v1337_v59 = vmul.f32 %v4788_v22, %v4661_v47  ;;  %v4979_v49 = vpop.f32.mrb[45].mxu1  ;;  %v1193_v4 = vsub.f32 %v1161_v37, %v1177_v51  ;;  %v1195_v36 = vsub.f32 %v1163_v28, %v1179_v0 }
 0x1b5   : > { %6555 = vst [vmem:[#allocation84_spill] sm:$0xff] %v4957_v18  ;;  %6556 = vst [vmem:[#allocation85_spill] sm:$0xff] %v4961_v8  ;;  %v1339_v18 = vmul.f32 %v4798_v12, %v4671_v29  ;;  %v1338_v8 = vmul.f32 %v4810_v1, %v4673_v11  ;;  %v1194_v58 = vsub.f32 %v1162_v55, %v1178_v25  ;;  %v4989_v55 = vpop.f32.mrb[47].mxu0 }
 0x1b6   : > { %6557 = vst [vmem:[#allocation86_spill] sm:$0xff] %v4967_v62  ;;  %6558 = vst [vmem:[#allocation87_spill] sm:$0xff] %v4969_v52  ;;  %v1353_v47 = vadd.f32 %v1337_v59, %v1321_v3  ;;  %v1180_v62 = vmul.f32 %v4827_v43, %v4683_v19  ;;  %v1340_v52 = vmul.f32 %v4824_v31, %v4683_v19  ;;  %v1209_v6 = vrot.slane %v1193_v4, 4  ;;  %v4987_v59 = vpop.f32.mrb[46].mxu1 }
 0x1b7   : > { %6559 = vst [vmem:[#allocation88_spill] sm:$0xff] %v4979_v49  ;;  %v1355_v14 = vadd.f32 %v1339_v18, %v1323_v40  ;;  %v1354_v29 = vadd.f32 %v1338_v8, %v1322_v41  ;;  %6560 = vst [vmem:[#allocation89_spill] sm:$0xff] %v4985_v54  ;;  %v1221_v15 = vrot.slane %v1195_v36, 4  ;;  %v1215_v37 = vrot.slane %v1194_v58, 4  ;;  %v4991_v41 = vpop.f32.mrb[47].mxu1 }
 0x1b8   : > { %v1369_v27 = vrot.slane %v1353_v47, 4  ;;  %v1196_v63 = vsub.f32 %v1164_v57, %v1180_v62  ;;  %v1356_v11 = vadd.f32 %v1340_v52, %v1324_v17  ;;  %6561 = vst [vmem:[#allocation90_spill] sm:$0xff] %v4987_v59  ;;  %v1210_v51 = vadd.f32 %v1209_v6, %v1193_v4  ;;  %6562 = vst [vmem:[#allocation91_spill] sm:$0xff] %v4989_v55 }
 0x1b9   : > { %v1381_v49 = vrot.slane %v1355_v14, 4  ;;  %v1375_v3 = vrot.slane %v1354_v29, 4  ;;  %v1222_v0 = vadd.f32 %v1221_v15, %v1195_v36  ;;  %v1216_v40 = vadd.f32 %v1215_v37, %v1194_v58  ;;  %6563 = vst [vmem:[#allocation92_spill] sm:$0xff] %v4991_v41  ;;  %v4993_v36 = vpop.f32.mrb[48].mxu0 }
 0x1ba   : > { %v1370_v35 = vadd.f32 %v1369_v27, %v1353_v47  ;;  %v1227_v53 = vrot.slane %v1196_v63, 4  ;;  %v1387_v19 = vrot.slane %v1356_v11, 4  ;;  %v1211_v62 = vrot.slane %v1210_v51, 2  ;;  %6564 = vst [vmem:[#allocation93_spill] sm:$0xff] %v4993_v36 }
 0x1bb   : > { %v1382_v28 = vadd.f32 %v1381_v49, %v1355_v14  ;;  %v1376_v8 = vadd.f32 %v1375_v3, %v1354_v29  ;;  %v1223_v52 = vrot.slane %v1222_v0, 2  ;;  %v1217_v54 = vrot.slane %v1216_v40, 2 }
 0x1bc   : > { %v1371_v57 = vrot.slane %v1370_v35, 2  ;;  %v1228_v17 = vadd.f32 %v1227_v53, %v1196_v63  ;;  %v1388_v18 = vadd.f32 %v1387_v19, %v1356_v11  ;;  %v1212_v6 = vadd.f32 %v1211_v62, %v1210_v51 }
 0x1bd   : > { %v1383_v25 = vrot.slane %v1382_v28, 2  ;;  %v1377_v59 = vrot.slane %v1376_v8, 2  ;;  %v1224_v15 = vadd.f32 %v1223_v52, %v1222_v0  ;;  %v1218_v49 = vadd.f32 %v1217_v54, %v1216_v40  ;;  %v6565_v0 = vld [vmem:[#allocation22_spill] sm:$0xff]  ;;  %v6566_v54 = vld [vmem:[#allocation23_spill] sm:$0xff]  ;;  %v6568_v52 = vld [vmem:[#allocation25_spill] sm:$0xff] }
 0x1be   : > { %v1372_v27 = vadd.f32 %v1371_v57, %v1370_v35  ;;  %v1229_v4 = vrot.slane %v1228_v17, 2  ;;  %v1389_v47 = vrot.slane %v1388_v18, 2  ;;  %v1213_v29 = vrot.slane %v1212_v6, 1 }
 0x1bf   : > { %v1384_v14 = vadd.f32 %v1383_v25, %v1382_v28  ;;  %v1378_v58 = vadd.f32 %v1377_v59, %v1376_v8  ;;  %v1225_v53 = vrot.slane %v1224_v15, 1  ;;  %v1219_v11 = vrot.slane %v1218_v49, 1 }
 0x1c0   : > { %v1373_v37 = vrot.slane %v1372_v27, 1  ;;  %v1230_v3 = vadd.f32 %v1229_v4, %v1228_v17  ;;  %v1390_v41 = vadd.f32 %v1389_v47, %v1388_v18  ;;  %v1214_v55 = vadd.f32 %v1213_v29, %v1212_v6  ;;  %v6567_v17 = vld [vmem:[#allocation24_spill] sm:$0xff]  ;;  %v6569_v6 = vld [vmem:[#allocation26_spill] sm:$0xff]  ;;  %v6570_v4 = vld [vmem:[#allocation27_spill] sm:$0xff] }
 0x1c1   : > { %v1385_v63 = vrot.slane %v1384_v14, 1  ;;  %v1379_v19 = vrot.slane %v1378_v58, 1  ;;  %v1226_v62 = vadd.f32 %v1225_v53, %v1224_v15  ;;  %v1220_v48 = vadd.f32 %v1219_v11, %v1218_v49  ;;  %v6571_v15 = vld [vmem:[#allocation28_spill] sm:$0xff] }
 0x1c2   : > { %v1374_v24 = vadd.f32 %v1373_v37, %v1372_v27  ;;  %v1231_v51 = vrot.slane %v1230_v3, 1  ;;  %v1391_v35 = vrot.slane %v1390_v41, 1  ;;  %v4996_v28 = vadd.f32 %v1214_v55, %v6565_v0 }
 0x1c3   : > { %v1386_v57 = vadd.f32 %v1385_v63, %v1384_v14  ;;  %v1380_v36 = vadd.f32 %v1379_v19, %v1378_v58  ;;  %v5002_v18 = vadd.f32 %v1226_v62, %v6567_v17  ;;  %v5008_v27 = vadd.f32 %v1220_v48, %v6569_v6  ;;  %v6572_v14 = vld [vmem:[#allocation29_spill] sm:$0xff] }
 0x1c4   : > { %v4999_v59 = vadd.f32 %v1374_v24, %v6566_v54  ;;  %v1232_v40 = vadd.f32 %v1231_v51, %v1230_v3  ;;  %v1392_v8 = vadd.f32 %v1391_v35, %v1390_v41  ;;  %v1181_v41 = vmul.f32 %v4791_v26, %v4695_v21  ;;  %v5043_v54 = vpop.f32.mrb[48].mxu1 }
 0x1c5   : > { %v5005_v25 = vadd.f32 %v1386_v57, %v6568_v52  ;;  %v5011_v47 = vadd.f32 %v1380_v36, %v6570_v4  ;;  %v1341_v49 = vmul.f32 %v4788_v22, %v4695_v21  ;;  %v1183_v58 = vmul.f32 %v4807_v30, %v4699_v56  ;;  %6573 = vst [vmem:[#allocation22_spill] sm:$0xff] %v5043_v54  ;;  %v5045_v52 = vpop.f32.mrb[49].mxu0  ;;  %v5047_v6 = vpop.f32.mrb[49].mxu1  ;;  %v6671_v54 = vld [vmem:[#allocation21_spill] sm:$0xff] }
 0x1c6   : > { %v5014_v55 = vadd.f32 %v1232_v40, %v6571_v15  ;;  %v5017_v24 = vadd.f32 %v1392_v8, %v6572_v14  ;;  %v1343_v48 = vmul.f32 %v4798_v12, %v4699_v56  ;;  %v1182_v36 = vmul.f32 %v4813_v32, %v4701_v34  ;;  %6574 = vst [vmem:[#allocation23_spill] sm:$0xff] %v5045_v52  ;;  %v5049_v14 = vpop.f32.mrb[50].mxu0 }
 0x1c7   : > { %v1342_v29 = vmul.f32 %v4810_v1, %v4701_v34  ;;  %v1197_v37 = vsub.f32 %v4859_v46, %v1181_v41  ;;  %v1357_v3 = vadd.f32 %v1341_v49, %v4863_v39  ;;  %v1184_v53 = vmul.f32 %v4827_v43, %v4703_v13  ;;  %6575 = vst [vmem:[#allocation24_spill] sm:$0xff] %v5047_v6  ;;  %v5051_v41 = vpop.f32.mrb[50].mxu1  ;;  %v6668_v6 = vld [vmem:[#allocation20_spill] sm:$0xff] }
 0x1c8   : > { %v1344_v21 = vmul.f32 %v4824_v31, %v4703_v13  ;;  %v1199_v63 = vsub.f32 %v4867_v60, %v1183_v58  ;;  %v1359_v56 = vadd.f32 %v1343_v48, %v4871_v38  ;;  %v1198_v11 = vsub.f32 %v4875_v2, %v1182_v36  ;;  %6576 = vst [vmem:[#allocation25_spill] sm:$0xff] %v5049_v14 }
 0x1c9   : > { %v1358_v19 = vadd.f32 %v1342_v29, %v4879_v7  ;;  %v1233_v51 = vrot.slane %v1197_v37, 4  ;;  %v1393_v34 = vrot.slane %v1357_v3, 4  ;;  %v1200_v46 = vsub.f32 %v4885_v10, %v1184_v53  ;;  %6577 = vst [vmem:[#allocation26_spill] sm:$0xff] %v5051_v41  ;;  %v5053_v29 = vpop.f32.mrb[51].mxu0  ;;  %v6665_v41 = vld [vmem:[#allocation19_spill] sm:$0xff] }
 0x1ca   : > { %v1360_v39 = vadd.f32 %v1344_v21, %v4889_v9  ;;  %v1245_v35 = vrot.slane %v1199_v63, 4  ;;  %v1405_v62 = vrot.slane %v1359_v56, 4  ;;  %v1239_v57 = vrot.slane %v1198_v11, 4  ;;  %6578 = vst [vmem:[#allocation27_spill] sm:$0xff] %v5053_v29 }
 0x1cb   : > { %v1399_v0 = vrot.slane %v1358_v19, 4  ;;  %v1234_v13 = vadd.f32 %v1233_v51, %v1197_v37  ;;  %v1394_v60 = vadd.f32 %v1393_v34, %v1357_v3  ;;  %v1251_v40 = vrot.slane %v1200_v46, 4  ;;  %v5055_v37 = vpop.f32.mrb[51].mxu1 }
 0x1cc   : > { %v1411_v38 = vrot.slane %v1360_v39, 4  ;;  %v1246_v8 = vadd.f32 %v1245_v35, %v1199_v63  ;;  %v1406_v2 = vadd.f32 %v1405_v62, %v1359_v56  ;;  %v1240_v17 = vadd.f32 %v1239_v57, %v1198_v11  ;;  %6579 = vst [vmem:[#allocation28_spill] sm:$0xff] %v5055_v37  ;;  %v5057_v56 = vpop.f32.mrb[52].mxu0  ;;  %v5059_v11 = vpop.f32.mrb[52].mxu1 }
 0x1cd   : > { %v1400_v7 = vadd.f32 %v1399_v0, %v1358_v19  ;;  %v1235_v10 = vrot.slane %v1234_v13, 2  ;;  %v1395_v9 = vrot.slane %v1394_v60, 2  ;;  %v1252_v4 = vadd.f32 %v1251_v40, %v1200_v46  ;;  %6580 = vst [vmem:[#allocation29_spill] sm:$0xff] %v5057_v56  ;;  %6581 = vst [vmem:[#allocation94_spill] sm:$0xff] %v5059_v11  ;;  %v5063_v35 = vpop.f32.mrb[53].mxu1  ;;  %v6591_v56 = vld [vmem:[#allocation36_spill] sm:$0xff] }
 0x1ce   : > { %v1412_v15 = vadd.f32 %v1411_v38, %v1360_v39  ;;  %v1247_v49 = vrot.slane %v1246_v8, 2  ;;  %v1407_v58 = vrot.slane %v1406_v2, 2  ;;  %v1241_v48 = vrot.slane %v1240_v17, 2  ;;  %v5061_v39 = vpop.f32.mrb[53].mxu0  ;;  %6583 = vst [vmem:[#allocation96_spill] sm:$0xff] %v5063_v35 }
 0x1cf   : > { %v1401_v36 = vrot.slane %v1400_v7, 2  ;;  %v1236_v3 = vadd.f32 %v1235_v10, %v1234_v13  ;;  %v1396_v53 = vadd.f32 %v1395_v9, %v1394_v60  ;;  %v1253_v21 = vrot.slane %v1252_v4, 2  ;;  %6582 = vst [vmem:[#allocation95_spill] sm:$0xff] %v5061_v39  ;;  %v5065_v13 = vpop.f32.mrb[54].mxu0  ;;  %v5067_v60 = vpop.f32.mrb[54].mxu1 }
 0x1d0   : > { %v1413_v63 = vrot.slane %v1412_v15, 2  ;;  %v1248_v19 = vadd.f32 %v1247_v49, %v1246_v8  ;;  %v1408_v51 = vadd.f32 %v1407_v58, %v1406_v2  ;;  %v1242_v34 = vadd.f32 %v1241_v48, %v1240_v17  ;;  %6584 = vst [vmem:[#allocation97_spill] sm:$0xff] %v5065_v13  ;;  %6585 = vst [vmem:[#allocation98_spill] sm:$0xff] %v5067_v60  ;;  %v5069_v8 = vpop.f32.mrb[55].mxu0  ;;  %v5071_v2 = vpop.f32.mrb[55].mxu1  ;;  %v6590_v13 = vld [vmem:[#allocation35_spill] sm:$0xff] }
 0x1d1   : > { %v1402_v46 = vadd.f32 %v1401_v36, %v1400_v7  ;;  %v1237_v62 = vrot.slane %v1236_v3, 1  ;;  %v1397_v57 = vrot.slane %v1396_v53, 1  ;;  %v1254_v0 = vadd.f32 %v1253_v21, %v1252_v4  ;;  %6586 = vst [vmem:[#allocation99_spill] sm:$0xff] %v5069_v8  ;;  %6587 = vst [vmem:[#allocation100_spill] sm:$0xff] %v5071_v2  ;;  %v5073_v48 = vpop.f32.mrb[56].mxu0 }
 0x1d2   : > { %v1414_v40 = vadd.f32 %v1413_v63, %v1412_v15  ;;  %v1249_v38 = vrot.slane %v1248_v19, 1  ;;  %v1409_v10 = vrot.slane %v1408_v51, 1  ;;  %v1243_v9 = vrot.slane %v1242_v34, 1  ;;  %6588 = vst [vmem:[#allocation101_spill] sm:$0xff] %v5073_v48  ;;  %v6589_v63 = vld [vmem:[#allocation34_spill] sm:$0xff] }
 0x1d3   : > { %v1403_v11 = vrot.slane %v1402_v46, 1  ;;  %v1238_v17 = vadd.f32 %v1237_v62, %v1236_v3  ;;  %v1398_v7 = vadd.f32 %v1397_v57, %v1396_v53  ;;  %v1255_v49 = vrot.slane %v1254_v0, 1  ;;  %v6592_v3 = vld [vmem:[#allocation37_spill] sm:$0xff]  ;;  %v6593_v62 = vld [vmem:[#allocation38_spill] sm:$0xff] }
 0x1d4   : > { %v1415_v58 = vrot.slane %v1414_v40, 1  ;;  %v1250_v4 = vadd.f32 %v1249_v38, %v1248_v19  ;;  %v1410_v15 = vadd.f32 %v1409_v10, %v1408_v51  ;;  %v1244_v36 = vadd.f32 %v1243_v9, %v1242_v34  ;;  %v6594_v19 = vld [vmem:[#allocation39_spill] sm:$0xff] }
 0x1d5   : > { %v1404_v21 = vadd.f32 %v1403_v11, %v1402_v46  ;;  %v5076_v60 = vadd.f32 %v1238_v17, %v6589_v63  ;;  %v5079_v35 = vadd.f32 %v1398_v7, %v6590_v13  ;;  %v1256_v39 = vadd.f32 %v1255_v49, %v1254_v0  ;;  %v6595_v11 = vld [vmem:[#allocation40_spill] sm:$0xff]  ;;  %v6597_v46 = vld [vmem:[#allocation41_spill] sm:$0xff]  ;;  %v6599_v0 = vld [vmem:[#allocation42_spill] sm:$0xff] }
 0x1d6   : > { %v1416_v8 = vadd.f32 %v1415_v58, %v1414_v40  ;;  %v5082_v2 = vadd.f32 %v1250_v4, %v6591_v56  ;;  %v5085_v53 = vadd.f32 %v1410_v15, %v6592_v3  ;;  %v5088_v57 = vadd.f32 %v1244_v36, %v6593_v62  ;;  %v6600_v38 = vld [vmem:[#allocation43_spill] sm:$0xff]  ;;  %v6601_v17 = vld [vmem:[#allocation44_spill] sm:$0xff]  ;;  %v6602_v58 = vld [vmem:[#allocation45_spill] sm:$0xff] }
 0x1d7   : > { %v5091_v51 = vadd.f32 %v1404_v21, %v6594_v19  ;;  %v5094_v34 = vadd.f32 %v1256_v39, %v6595_v11  ;;  %v1185_v40 = vmul.f32 %v4791_v26, %v6599_v0  ;;  %v1345_v56 = vmul.f32 %v4788_v22, %v6599_v0  ;;  %v5123_v11 = vpop.f32.mrb[56].mxu1 }
 0x1d8   : > { %v5097_v13 = vadd.f32 %v1416_v8, %v6597_v46  ;;  %v1187_v10 = vmul.f32 %v4807_v30, %v6600_v38  ;;  %v1347_v9 = vmul.f32 %v4798_v12, %v6600_v38  ;;  %v1186_v7 = vmul.f32 %v4813_v32, %v6601_v17  ;;  %6603 = vst [vmem:[#allocation36_spill] sm:$0xff] %v5123_v11  ;;  %v5125_v38 = vpop.f32.mrb[57].mxu0 }
 0x1d9   : > { %6596 = vst [vmem:[#allocation34_spill] sm:$0xff] %v5094_v34  ;;  %v1346_v39 = vmul.f32 %v4810_v1, %v6601_v17  ;;  %v1201_v8 = vsub.f32 %v4893_v23, %v1185_v40  ;;  %v1361_v49 = vadd.f32 %v1345_v56, %v4897_v61  ;;  %v1188_v4 = vmul.f32 %v4827_v43, %v6602_v58 }
 0x1da   : > { %6598 = vst [vmem:[#allocation35_spill] sm:$0xff] %v5097_v13  ;;  %v1348_v15 = vmul.f32 %v4824_v31, %v6602_v58  ;;  %v1203_v36 = vsub.f32 %v4905_v20, %v1187_v10  ;;  %v1363_v21 = vadd.f32 %v1347_v9, %v4909_v5  ;;  %v1202_v63 = vsub.f32 %v4913_v45, %v1186_v7  ;;  %v5127_v20 = vpop.f32.mrb[57].mxu1 }
 0x1db   : > { %v1362_v3 = vadd.f32 %v1346_v39, %v4917_v50  ;;  %v1257_v62 = vrot.slane %v1201_v8, 4  ;;  %v1417_v19 = vrot.slane %v1361_v49, 4  ;;  %v1204_v23 = vsub.f32 %v4923_v33, %v1188_v4  ;;  %6604 = vst [vmem:[#allocation37_spill] sm:$0xff] %v5125_v38  ;;  %6605 = vst [vmem:[#allocation38_spill] sm:$0xff] %v5127_v20 }
 0x1dc   : > { %v1364_v61 = vadd.f32 %v1348_v15, %v4927_v16  ;;  %v1269_v46 = vrot.slane %v1203_v36, 4  ;;  %v1429_v0 = vrot.slane %v1363_v21, 4  ;;  %v1263_v40 = vrot.slane %v1202_v63, 4  ;;  %v5129_v15 = vpop.f32.mrb[58].mxu0 }
 0x1dd   : > { %v1423_v56 = vrot.slane %v1362_v3, 4  ;;  %v1258_v5 = vadd.f32 %v1257_v62, %v1201_v8  ;;  %v1418_v45 = vadd.f32 %v1417_v19, %v1361_v49  ;;  %v1275_v10 = vrot.slane %v1204_v23, 4  ;;  %6606 = vst [vmem:[#allocation39_spill] sm:$0xff] %v5129_v15 }
 0x1de   : > { %v1435_v50 = vrot.slane %v1364_v61, 4  ;;  %v1270_v9 = vadd.f32 %v1269_v46, %v1203_v36  ;;  %v1430_v17 = vadd.f32 %v1429_v0, %v1363_v21  ;;  %v1264_v7 = vadd.f32 %v1263_v40, %v1202_v63 }
 0x1df   : > { %v1424_v33 = vadd.f32 %v1423_v56, %v1362_v3  ;;  %v1259_v39 = vrot.slane %v1258_v5, 2  ;;  %v1419_v16 = vrot.slane %v1418_v45, 2  ;;  %v1276_v58 = vadd.f32 %v1275_v10, %v1204_v23  ;;  %v5131_v10 = vpop.f32.mrb[58].mxu1 }
 0x1e0   : > { %v1436_v4 = vadd.f32 %v1435_v50, %v1364_v61  ;;  %v1271_v11 = vrot.slane %v1270_v9, 2  ;;  %v1431_v48 = vrot.slane %v1430_v17, 2  ;;  %v1265_v37 = vrot.slane %v1264_v7, 2  ;;  %6607 = vst [vmem:[#allocation40_spill] sm:$0xff] %v5131_v10 }
 0x1e1   : > { %v1425_v38 = vrot.slane %v1424_v33, 2  ;;  %v1260_v29 = vadd.f32 %v1259_v39, %v1258_v5  ;;  %v1420_v20 = vadd.f32 %v1419_v16, %v1418_v45  ;;  %v1277_v8 = vrot.slane %v1276_v58, 2 }
 0x1e2   : > { %v1437_v49 = vrot.slane %v1436_v4, 2  ;;  %v1272_v62 = vadd.f32 %v1271_v11, %v1270_v9  ;;  %v1432_v19 = vadd.f32 %v1431_v48, %v1430_v17  ;;  %v1266_v36 = vadd.f32 %v1265_v37, %v1264_v7  ;;  %v5133_v37 = vpop.f32.mrb[59].mxu0 }
 0x1e3   : > { %v1426_v21 = vadd.f32 %v1425_v38, %v1424_v33  ;;  %v1261_v63 = vrot.slane %v1260_v29, 1  ;;  %v1421_v3 = vrot.slane %v1420_v20, 1  ;;  %v1278_v46 = vadd.f32 %v1277_v8, %v1276_v58  ;;  %6608 = vst [vmem:[#allocation41_spill] sm:$0xff] %v5133_v37  ;;  %v5135_v38 = vpop.f32.mrb[59].mxu1  ;;  %v6614_v58 = vld [vmem:[#allocation51_spill] sm:$0xff]  ;;  %v6616_v8 = vld [vmem:[#allocation52_spill] sm:$0xff] }
 0x1e4   : > { %v1438_v0 = vadd.f32 %v1437_v49, %v1436_v4  ;;  %v1273_v23 = vrot.slane %v1272_v62, 1  ;;  %v1433_v61 = vrot.slane %v1432_v19, 1  ;;  %v1267_v40 = vrot.slane %v1266_v36, 1  ;;  %6609 = vst [vmem:[#allocation42_spill] sm:$0xff] %v5135_v38 }
 0x1e5   : > { %v1427_v56 = vrot.slane %v1426_v21, 1  ;;  %v1262_v50 = vadd.f32 %v1261_v63, %v1260_v29  ;;  %v1422_v15 = vadd.f32 %v1421_v3, %v1420_v20  ;;  %v1279_v5 = vrot.slane %v1278_v46, 1  ;;  %v6612_v29 = vld [vmem:[#allocation50_spill] sm:$0xff] }
 0x1e6   : > { %v1439_v45 = vrot.slane %v1438_v0, 1  ;;  %v1274_v39 = vadd.f32 %v1273_v23, %v1272_v62  ;;  %v1434_v16 = vadd.f32 %v1433_v61, %v1432_v19  ;;  %v1268_v11 = vadd.f32 %v1267_v40, %v1266_v36  ;;  %v6618_v62 = vld [vmem:[#allocation53_spill] sm:$0xff]  ;;  %v6620_v36 = vld [vmem:[#allocation55_spill] sm:$0xff]  ;;  %v6627_v40 = vld [vmem:[#allocation48_spill] sm:$0xff] }
 0x1e7   : > { %v1428_v48 = vadd.f32 %v1427_v56, %v1426_v21  ;;  %v5138_v9 = vadd.f32 %v1262_v50, %v4721_v44  ;;  %v5141_v17 = vadd.f32 %v1422_v15, %v4723_v42  ;;  %v1280_v7 = vadd.f32 %v1279_v5, %v1278_v46  ;;  %v6622_v21 = vld [vmem:[#allocation56_spill] sm:$0xff]  ;;  %v6624_v15 = vld [vmem:[#allocation46_spill] sm:$0xff]  ;;  %v5165_v46 = vpop.f32.mrb[60].mxu0 }
 0x1e8   : > { %v1440_v33 = vadd.f32 %v1439_v45, %v1438_v0  ;;  %v5144_v20 = vadd.f32 %v1274_v39, %v6612_v29  ;;  %v5147_v4 = vadd.f32 %v1434_v16, %v6614_v58  ;;  %v5150_v49 = vadd.f32 %v1268_v11, %v6616_v8  ;;  %6625 = vst [vmem:[#allocation56_spill] sm:$0xff] %v5165_v46  ;;  %v6626_v0 = vld [vmem:[#allocation47_spill] sm:$0xff]  ;;  %v6628_v5 = vld [vmem:[#allocation32_spill] sm:$0xff]  ;;  %v6630_v16 = vld [vmem:[#allocation49_spill] sm:$0xff] }
 0x1e9   : > { %6610 = vst [vmem:[#allocation43_spill] sm:$0xff] %v5138_v9  ;;  %6611 = vst [vmem:[#allocation44_spill] sm:$0xff] %v5141_v17  ;;  %v5153_v19 = vadd.f32 %v1428_v48, %v6618_v62  ;;  %v5156_v44 = vadd.f32 %v1280_v7, %v6620_v36  ;;  %v1189_v63 = vmul.f32 %v4791_v26, %v6624_v15  ;;  %v6629_v26 = vld [vmem:[#allocation33_spill] sm:$0xff]  ;;  %v6632_v7 = vld [vmem:[#allocation80_spill] sm:$0xff] }
 0x1ea   : > { %6613 = vst [vmem:[#allocation45_spill] sm:$0xff] %v5144_v20  ;;  %6615 = vst [vmem:[#allocation50_spill] sm:$0xff] %v5147_v4  ;;  %v5159_v42 = vadd.f32 %v1440_v33, %v6622_v21  ;;  %v1349_v3 = vmul.f32 %v4788_v22, %v6624_v15  ;;  %v1191_v23 = vmul.f32 %v4807_v30, %v6626_v0  ;;  %v6631_v30 = vld [vmem:[#allocation79_spill] sm:$0xff]  ;;  %v6633_v33 = vld [vmem:[#allocation81_spill] sm:$0xff] }
 0x1eb   : > { %6617 = vst [vmem:[#allocation51_spill] sm:$0xff] %v5150_v49  ;;  %6619 = vst [vmem:[#allocation52_spill] sm:$0xff] %v5153_v19  ;;  %v1351_v61 = vmul.f32 %v4798_v12, %v6626_v0  ;;  %v1190_v56 = vmul.f32 %v4813_v32, %v6627_v40  ;;  %v1350_v50 = vmul.f32 %v4810_v1, %v6627_v40  ;;  %v6634_v32 = vld [vmem:[#allocation82_spill] sm:$0xff]  ;;  %v6635_v62 = vld [vmem:[#allocation84_spill] sm:$0xff] }
 0x1ec   : > { %6621 = vst [vmem:[#allocation53_spill] sm:$0xff] %v5156_v44  ;;  %6623 = vst [vmem:[#allocation55_spill] sm:$0xff] %v5159_v42  ;;  %v1205_v45 = vsub.f32 %v6628_v5, %v1189_v63  ;;  %v1365_v39 = vadd.f32 %v1349_v3, %v6629_v26  ;;  %v1192_v22 = vmul.f32 %v4827_v43, %v6630_v16  ;;  %v6636_v21 = vld [vmem:[#allocation85_spill] sm:$0xff]  ;;  %v6690_v44 = vld [vmem:[#allocation74_spill] sm:$0xff] }
 0x1ed   : > { %v1352_v11 = vmul.f32 %v4824_v31, %v6630_v16  ;;  %v1207_v48 = vsub.f32 %v6631_v30, %v1191_v23  ;;  %v1367_v12 = vadd.f32 %v1351_v61, %v6632_v7  ;;  %v1206_v29 = vsub.f32 %v6633_v33, %v1190_v56  ;;  %v6692_v49 = vld [vmem:[#allocation76_spill] sm:$0xff] }
 0x1ee   : > { %v1366_v58 = vadd.f32 %v1350_v50, %v6634_v32  ;;  %v1281_v8 = vrot.slane %v1205_v45, 4  ;;  %v1441_v1 = vrot.slane %v1365_v39, 4  ;;  %v1208_v36 = vsub.f32 %v6635_v62, %v1192_v22 }
 0x1ef   : > { %v1368_v15 = vadd.f32 %v1352_v11, %v6636_v21  ;;  %v1293_v63 = vrot.slane %v1207_v48, 4  ;;  %v1453_v3 = vrot.slane %v1367_v12, 4  ;;  %v1287_v43 = vrot.slane %v1206_v29, 4 }
 0x1f0   : > { %v1447_v0 = vrot.slane %v1366_v58, 4  ;;  %v1282_v40 = vadd.f32 %v1281_v8, %v1205_v45  ;;  %v1442_v31 = vadd.f32 %v1441_v1, %v1365_v39  ;;  %v1299_v5 = vrot.slane %v1208_v36, 4 }
 0x1f1   : > { %v1459_v23 = vrot.slane %v1368_v15, 4  ;;  %v1294_v26 = vadd.f32 %v1293_v63, %v1207_v48  ;;  %v1454_v61 = vadd.f32 %v1453_v3, %v1367_v12  ;;  %v1288_v16 = vadd.f32 %v1287_v43, %v1206_v29  ;;  %v5187_v43 = vpop.f32.mrb[60].mxu1 }
 0x1f2   : > { %v1448_v56 = vadd.f32 %v1447_v0, %v1366_v58  ;;  %v1283_v30 = vrot.slane %v1282_v40, 2  ;;  %v1443_v50 = vrot.slane %v1442_v31, 2  ;;  %v1300_v7 = vadd.f32 %v1299_v5, %v1208_v36  ;;  %6637 = vst [vmem:[#allocation46_spill] sm:$0xff] %v5187_v43  ;;  %v6664_v43 = vld [vmem:[#allocation18_spill] sm:$0xff] }
 0x1f3   : > { %v1460_v33 = vadd.f32 %v1459_v23, %v1368_v15  ;;  %v1295_v32 = vrot.slane %v1294_v26, 2  ;;  %v1455_v22 = vrot.slane %v1454_v61, 2  ;;  %v1289_v62 = vrot.slane %v1288_v16, 2 }
 0x1f4   : > { %v1449_v11 = vrot.slane %v1448_v56, 2  ;;  %v1284_v21 = vadd.f32 %v1283_v30, %v1282_v40  ;;  %v1444_v46 = vadd.f32 %v1443_v50, %v1442_v31  ;;  %v1301_v38 = vrot.slane %v1300_v7, 2  ;;  %v5198_v30 = vpop.f32.mrb[61].mxu0  ;;  %v6640_v50 = vld [vmem:[#allocation65_spill] sm:$0xff] }
 0x1f5   : > { %v1461_v37 = vrot.slane %v1460_v33, 2  ;;  %v1296_v45 = vadd.f32 %v1295_v32, %v1294_v26  ;;  %v1456_v39 = vadd.f32 %v1455_v22, %v1454_v61  ;;  %v1290_v8 = vadd.f32 %v1289_v62, %v1288_v16  ;;  %v5190_v16 = vld [vmem:[%s4123_s13 + $0x40] sm:$0xff]  ;;  %6638 = vst [vmem:[#allocation47_spill] sm:$0xff] %v5198_v30 }
 0x1f6   : > { %v1450_v1 = vadd.f32 %v1449_v11, %v1448_v56  ;;  %v1285_v48 = vrot.slane %v1284_v21, 1  ;;  %v1445_v12 = vrot.slane %v1444_v46, 1  ;;  %v1302_v29 = vadd.f32 %v1301_v38, %v1300_v7  ;;  %v5196_v56 = vld [vmem:[%s4123_s13 + $0x50] sm:$0xff] }
 0x1f7   : > { %v1462_v58 = vadd.f32 %v1461_v37, %v1460_v33  ;;  %v1297_v36 = vrot.slane %v1296_v45, 1  ;;  %v1457_v15 = vrot.slane %v1456_v39, 1  ;;  %v1291_v63 = vrot.slane %v1290_v8, 1  ;;  %v5193_v37 = vld [vmem:[%s4442_s5 + $0x40] sm:$0xff]  ;;  %v6642_v33 = vld [vmem:[#allocation66_spill] sm:$0xff]  ;;  %v5209_v11 = vld [vmem:[%s4442_s5 + $0x50] sm:$0xff] }
 0x1f8   : > { %v1451_v3 = vrot.slane %v1450_v1, 1  ;;  %v1286_v0 = vadd.f32 %v1285_v48, %v1284_v21  ;;  %v1446_v40 = vadd.f32 %v1445_v12, %v1444_v46  ;;  %v1303_v31 = vrot.slane %v1302_v29, 1  ;;  %v5200_v46 = vpop.f32.mrb[61].mxu1  ;;  %v5212_v21 = vld [vmem:[%s4123_s13 + $0x48] sm:$0xff]  ;;  %v6648_v12 = vld [vmem:[#allocation69_spill] sm:$0xff] }
 0x1f9   : > { %v1463_v5 = vrot.slane %v1462_v58, 1  ;;  %v1298_v23 = vadd.f32 %v1297_v36, %v1296_v45  ;;  %v1458_v26 = vadd.f32 %v1457_v15, %v1456_v39  ;;  %v1292_v61 = vadd.f32 %v1291_v63, %v1290_v8  ;;  %6639 = vst [vmem:[#allocation48_spill] sm:$0xff] %v5200_v46  ;;  %v5215_v45 = vld [vmem:[%s4442_s5 + $0x48] sm:$0xff]  ;;  %v6644_v39 = vld [vmem:[#allocation67_spill] sm:$0xff]  ;;  %v6650_v15 = vld [vmem:[#allocation70_spill] sm:$0xff] }
 0x1fa   : > { %v1452_v38 = vadd.f32 %v1451_v3, %v1450_v1  ;;  %v5203_v7 = vadd.f32 %v1286_v0, %v6640_v50  ;;  %v5206_v32 = vadd.f32 %v1446_v40, %v6642_v33  ;;  %v1304_v22 = vadd.f32 %v1303_v31, %v1302_v29  ;;  %v6646_v1 = vld [vmem:[#allocation68_spill] sm:$0xff]  ;;  %v5230_v29 = vld [vmem:[%s4123_s13 + $0x58] sm:$0xff]  ;;  %v6654_v40 = vld [vmem:[#allocation73_spill] sm:$0xff] }
 0x1fb   : > { %v1464_v62 = vadd.f32 %v1463_v5, %v1462_v58  ;;  %v5218_v8 = vadd.f32 %v1298_v23, %v6644_v39  ;;  %v5221_v48 = vadd.f32 %v1458_v26, %v6646_v1  ;;  %v5224_v36 = vadd.f32 %v1292_v61, %v6648_v12  ;;  %v5233_v58 = vld [vmem:[%s4442_s5 + $0x58] sm:$0xff]  ;;  %v6652_v3 = vld [vmem:[#allocation72_spill] sm:$0xff]  ;;  %v5245_v61 = vpop.f32.mrb[62].mxu0  ;;  %v6660_v1 = vld [vmem:[#allocation59_spill] sm:$0xff] }
 0x1fc   : > { %6641 = vst [vmem:[#allocation32_spill] sm:$0xff] %v5203_v7  ;;  %6643 = vst [vmem:[#allocation33_spill] sm:$0xff] %v5206_v32  ;;  %v5227_v63 = vadd.f32 %v1452_v38, %v6650_v15  ;;  %v5236_v0 = vadd.f32 %v1304_v22, %v6652_v3  ;;  %v6656_v5 = vld [vmem:[#allocation54_spill] sm:$0xff]  ;;  %v6658_v38 = vld [vmem:[#allocation57_spill] sm:$0xff]  ;;  %v1753_v12 = vmul.f32 %v5230_v29, %v6660_v1 }
 0x1fd   : > { %6645 = vst [vmem:[#allocation49_spill] sm:$0xff] %v5218_v8  ;;  %6647 = vst [vmem:[#allocation79_spill] sm:$0xff] %v5221_v48  ;;  %v5239_v31 = vadd.f32 %v1464_v62, %v6654_v40  ;;  %v1750_v23 = vmul.f32 %v5190_v16, %v6656_v5  ;;  %v1910_v26 = vmul.f32 %v5193_v37, %v6656_v5  ;;  %v6659_v39 = vld [vmem:[#allocation58_spill] sm:$0xff]  ;;  %v6661_v3 = vld [vmem:[#allocation15_spill] sm:$0xff] }
 0x1fe   : > { %6649 = vst [vmem:[#allocation80_spill] sm:$0xff] %v5224_v36  ;;  %6651 = vst [vmem:[#allocation81_spill] sm:$0xff] %v5227_v63  ;;  %v1752_v50 = vmul.f32 %v5196_v56, %v6658_v38  ;;  %v1912_v33 = vmul.f32 %v5209_v11, %v6658_v38  ;;  %v1751_v22 = vmul.f32 %v5212_v21, %v6659_v39  ;;  %v6662_v38 = vld [vmem:[#allocation16_spill] sm:$0xff]  ;;  %v6663_v46 = vld [vmem:[#allocation17_spill] sm:$0xff] }
 0x1ff   : > { %6653 = vst [vmem:[#allocation82_spill] sm:$0xff] %v5236_v0  ;;  %6655 = vst [vmem:[#allocation84_spill] sm:$0xff] %v5239_v31  ;;  %v1911_v62 = vmul.f32 %v5215_v45, %v6659_v39  ;;  %v1913_v15 = vmul.f32 %v5233_v58, %v6660_v1  ;;  %v5261_v40 = vmul.f32 %v5190_v16, %v6661_v3  ;;  %v6674_v0 = vld [vmem:[#allocation60_spill] sm:$0xff]  ;;  %v6677_v36 = vld [vmem:[#allocation61_spill] sm:$0xff] }
 0x200   : > { %6657 = vst [vmem:[#allocation85_spill] sm:$0xff] %v5245_v61  ;;  %v5265_v5 = vmul.f32 %v5193_v37, %v6661_v3  ;;  %v5269_v61 = vmul.f32 %v5196_v56, %v6662_v38  ;;  %v5273_v39 = vmul.f32 %v5209_v11, %v6662_v38  ;;  %v5277_v30 = vmul.f32 %v5212_v21, %v6663_v46  ;;  %v6680_v8 = vld [vmem:[#allocation62_spill] sm:$0xff]  ;;  %v6683_v7 = vld [vmem:[#allocation63_spill] sm:$0xff] }
 0x201   : > { %v5281_v1 = vmul.f32 %v5215_v45, %v6663_v46  ;;  %v5285_v3 = vmul.f32 %v5230_v29, %v6664_v43  ;;  %v5289_v10 = vmul.f32 %v5233_v58, %v6664_v43  ;;  %v5293_v38 = vmul.f32 %v5190_v16, %v6665_v41 }
 0x202   : > { %v5297_v14 = vmul.f32 %v5193_v37, %v6665_v41  ;;  %v5301_v46 = vmul.f32 %v5196_v56, %v6668_v6  ;;  %v5305_v52 = vmul.f32 %v5209_v11, %v6668_v6  ;;  %v5309_v43 = vmul.f32 %v5212_v21, %v6671_v54 }
 0x203   : > { %6666 = vst [vmem:[#allocation65_spill] sm:$0xff] %v5293_v38  ;;  %v5313_v31 = vmul.f32 %v5215_v45, %v6671_v54  ;;  %v5317_v41 = vmul.f32 %v5230_v29, %v6674_v0  ;;  %v5321_v63 = vmul.f32 %v5233_v58, %v6674_v0  ;;  %v5325_v6 = vmul.f32 %v5190_v16, %v6677_v36 }
 0x204   : > { %6667 = vst [vmem:[#allocation66_spill] sm:$0xff] %v5297_v14  ;;  %6669 = vst [vmem:[#allocation67_spill] sm:$0xff] %v5301_v46  ;;  %v5329_v48 = vmul.f32 %v5193_v37, %v6677_v36  ;;  %v5333_v54 = vmul.f32 %v5196_v56, %v6680_v8  ;;  %v5337_v32 = vmul.f32 %v5209_v11, %v6680_v8 }
 0x205   : > { %6670 = vst [vmem:[#allocation68_spill] sm:$0xff] %v5305_v52  ;;  %6672 = vst [vmem:[#allocation69_spill] sm:$0xff] %v5309_v43  ;;  %v5341_v0 = vmul.f32 %v5212_v21, %v6683_v7  ;;  %v5345_v42 = vmul.f32 %v5215_v45, %v6683_v7  ;;  %v1928_v7 = vmul.f32 %v5196_v56, %v6690_v44 }
 0x206   : > { %6673 = vst [vmem:[#allocation70_spill] sm:$0xff] %v5313_v31  ;;  %6675 = vst [vmem:[#allocation72_spill] sm:$0xff] %v5317_v41  ;;  %v1769_v4 = vmul.f32 %v5233_v58, %v6692_v49 }
 0x207   : > { %6676 = vst [vmem:[#allocation73_spill] sm:$0xff] %v5321_v63  ;;  %6678 = vst [vmem:[#allocation54_spill] sm:$0xff] %v5325_v6  ;;  %v6686_v6 = vld [vmem:[#allocation64_spill] sm:$0xff]  ;;  %v1944_v17 = vadd.f32 %v1928_v7, %v1912_v33 }
 0x208   : > { %6679 = vst [vmem:[#allocation57_spill] sm:$0xff] %v5329_v48  ;;  %6681 = vst [vmem:[#allocation58_spill] sm:$0xff] %v5333_v54  ;;  %v5349_v36 = vmul.f32 %v5230_v29, %v6686_v6  ;;  %v5353_v48 = vmul.f32 %v5233_v58, %v6686_v6  ;;  %v6689_v54 = vld [vmem:[#allocation71_spill] sm:$0xff]  ;;  %v1785_v31 = vsub.f32 %v1753_v12, %v1769_v4 }
 0x209   : > { %6682 = vst [vmem:[#allocation59_spill] sm:$0xff] %v5337_v32  ;;  %6684 = vst [vmem:[#allocation15_spill] sm:$0xff] %v5341_v0  ;;  %v1766_v8 = vmul.f32 %v5193_v37, %v6689_v54  ;;  %v1926_v32 = vmul.f32 %v5190_v16, %v6689_v54  ;;  %v1768_v0 = vmul.f32 %v5209_v11, %v6690_v44  ;;  %v1970_v46 = vrot.slane %v1944_v17, 4 }
 0x20a   : > { %6685 = vst [vmem:[#allocation16_spill] sm:$0xff] %v5345_v42  ;;  %6687 = vst [vmem:[#allocation17_spill] sm:$0xff] %v5349_v36  ;;  %v6691_v42 = vld [vmem:[#allocation75_spill] sm:$0xff]  ;;  %v1929_v54 = vmul.f32 %v5230_v29, %v6692_v49 }
 0x20b   : > { %6688 = vst [vmem:[#allocation18_spill] sm:$0xff] %v5353_v48  ;;  %v1767_v19 = vmul.f32 %v5215_v45, %v6691_v42  ;;  %v1927_v36 = vmul.f32 %v5212_v21, %v6691_v42  ;;  %v1782_v6 = vsub.f32 %v1750_v23, %v1766_v8  ;;  %v1942_v48 = vadd.f32 %v1926_v32, %v1910_v26  ;;  %v5371_v23 = vpop.f32.mrb[62].mxu1 }
 0x20c   : > { %v1784_v20 = vsub.f32 %v1752_v50, %v1768_v0  ;;  %v1945_v43 = vadd.f32 %v1929_v54, %v1913_v15  ;;  %6693 = vst [vmem:[#allocation19_spill] sm:$0xff] %v5371_v23  ;;  %v1816_v8 = vrot.slane %v1785_v31, 4  ;;  %v1971_v49 = vadd.f32 %v1970_v46, %v1944_v17 }
 0x20d   : > { %v1783_v9 = vsub.f32 %v1751_v22, %v1767_v19  ;;  %v1943_v63 = vadd.f32 %v1927_v36, %v1911_v62  ;;  %v1798_v41 = vrot.slane %v1782_v6, 4  ;;  %v1958_v44 = vrot.slane %v1942_v48, 4  ;;  %v5373_v19 = vpop.f32.mrb[63].mxu0  ;;  %v5375_v22 = vpop.f32.mrb[63].mxu1 }
 0x20e   : > { %v1810_v52 = vrot.slane %v1784_v20, 4  ;;  %v1976_v38 = vrot.slane %v1945_v43, 4  ;;  %6694 = vst [vmem:[#allocation20_spill] sm:$0xff] %v5373_v19  ;;  %6695 = vst [vmem:[#allocation21_spill] sm:$0xff] %v5375_v22  ;;  %v1817_v12 = vadd.f32 %v1816_v8, %v1785_v31  ;;  %v1972_v36 = vrot.slane %v1971_v49, 2 }
 0x20f   : > { %v1804_v14 = vrot.slane %v1783_v9, 4  ;;  %v1964_v42 = vrot.slane %v1943_v63, 4  ;;  %v1799_v32 = vadd.f32 %v1798_v41, %v1782_v6  ;;  %v1959_v26 = vadd.f32 %v1958_v44, %v1942_v48 }
 0x210   : > { %v1811_v13 = vadd.f32 %v1810_v52, %v1784_v20  ;;  %v1977_v15 = vadd.f32 %v1976_v38, %v1945_v43  ;;  %v1818_v6 = vrot.slane %v1817_v12, 2  ;;  %v5377_v52 = vpop.f32.mrb[64].mxu0 }
 0x211   : > { %v1805_v50 = vadd.f32 %v1804_v14, %v1783_v9  ;;  %v1965_v33 = vadd.f32 %v1964_v42, %v1943_v63  ;;  %v1800_v4 = vrot.slane %v1799_v32, 2  ;;  %v1960_v62 = vrot.slane %v1959_v26, 2  ;;  %6696 = vst [vmem:[#allocation60_spill] sm:$0xff] %v5377_v52 }
 0x212   : > { %v1812_v0 = vrot.slane %v1811_v13, 2  ;;  %v1978_v44 = vrot.slane %v1977_v15, 2  ;;  %v1973_v9 = vadd.f32 %v1972_v36, %v1971_v49  ;;  %v1819_v42 = vadd.f32 %v1818_v6, %v1817_v12 }
 0x213   : > { %v1806_v7 = vrot.slane %v1805_v50, 2  ;;  %v1966_v54 = vrot.slane %v1965_v33, 2  ;;  %v1801_v41 = vadd.f32 %v1800_v4, %v1799_v32  ;;  %v1961_v48 = vadd.f32 %v1960_v62, %v1959_v26 }
 0x214   : > { %v1813_v14 = vadd.f32 %v1812_v0, %v1811_v13  ;;  %v1979_v22 = vadd.f32 %v1978_v44, %v1977_v15  ;;  %v1974_v38 = vrot.slane %v1973_v9, 1  ;;  %v1820_v32 = vrot.slane %v1819_v42, 1 }
 0x215   : > { %v1807_v17 = vadd.f32 %v1806_v7, %v1805_v50  ;;  %v1967_v20 = vadd.f32 %v1966_v54, %v1965_v33  ;;  %v1802_v63 = vrot.slane %v1801_v41, 1  ;;  %v1962_v46 = vrot.slane %v1961_v48, 1  ;;  %v6700_v54 = vld [vmem:[#allocation31_spill] sm:$0xff] }
 0x216   : > { %v1814_v31 = vrot.slane %v1813_v14, 1  ;;  %v1980_v26 = vrot.slane %v1979_v22, 1  ;;  %v1975_v62 = vadd.f32 %v1974_v38, %v1973_v9  ;;  %v1821_v50 = vadd.f32 %v1820_v32, %v1819_v42 }
 0x217   : > { %v1808_v43 = vrot.slane %v1807_v17, 1  ;;  %v1968_v8 = vrot.slane %v1967_v20, 1  ;;  %v1803_v19 = vadd.f32 %v1802_v63, %v1801_v41  ;;  %v1963_v23 = vadd.f32 %v1962_v46, %v1961_v48 }
 0x218   : > { %v1815_v4 = vadd.f32 %v1814_v31, %v1813_v14  ;;  %v1981_v33 = vadd.f32 %v1980_v26, %v1979_v22  ;;  %v5389_v15 = vadd.f32 %v1975_v62, %v5005_v25  ;;  %v6698_v25 = vld [vmem:[#allocation30_spill] sm:$0xff]  ;;  %v1773_v41 = vmul.f32 %v5233_v58, %v6700_v54  ;;  %v5427_v31 = vpop.f32.mrb[64].mxu1  ;;  %v5429_v26 = vpop.f32.mrb[65].mxu0 }
 0x219   : > { %v1809_v34 = vadd.f32 %v1808_v43, %v1807_v17  ;;  %v1969_v52 = vadd.f32 %v1968_v8, %v1967_v20  ;;  %v5380_v13 = vadd.f32 %v1803_v19, %v4996_v28  ;;  %v5383_v49 = vadd.f32 %v1963_v23, %v4999_v59  ;;  %v6697_v23 = vld [vmem:[#allocation77_spill] sm:$0xff]  ;;  %6701 = vst [vmem:[#allocation61_spill] sm:$0xff] %v5427_v31  ;;  %v6803_v31 = vld [vmem:[#allocation95_spill] sm:$0xff] }
 0x21a   : > { %v5386_v12 = vadd.f32 %v1815_v4, %v5002_v18  ;;  %v5398_v28 = vadd.f32 %v1821_v50, %v5014_v55  ;;  %v5401_v59 = vadd.f32 %v1981_v33, %v5017_v24  ;;  %v1770_v19 = vmul.f32 %v5193_v37, %v6697_v23  ;;  %6702 = vst [vmem:[#allocation62_spill] sm:$0xff] %v5429_v26  ;;  %v5431_v4 = vpop.f32.mrb[65].mxu1  ;;  %v5433_v33 = vpop.f32.mrb[66].mxu0 }
 0x21b   : > { %v5392_v0 = vadd.f32 %v1809_v34, %v5008_v27  ;;  %v5395_v36 = vadd.f32 %v1969_v52, %v5011_v47  ;;  %v1930_v18 = vmul.f32 %v5190_v16, %v6697_v23  ;;  %v1772_v22 = vmul.f32 %v5209_v11, %v6698_v25  ;;  %v6699_v47 = vld [vmem:[#allocation78_spill] sm:$0xff]  ;;  %6703 = vst [vmem:[#allocation63_spill] sm:$0xff] %v5431_v4  ;;  %v5435_v23 = vpop.f32.mrb[66].mxu1 }
 0x21c   : > { %v1932_v27 = vmul.f32 %v5196_v56, %v6698_v25  ;;  %v1771_v34 = vmul.f32 %v5215_v45, %v6699_v47  ;;  %v1931_v55 = vmul.f32 %v5212_v21, %v6699_v47  ;;  %v1786_v24 = vsub.f32 %v5261_v40, %v1770_v19  ;;  %6704 = vst [vmem:[#allocation64_spill] sm:$0xff] %v5433_v33  ;;  %v5439_v47 = vpop.f32.mrb[67].mxu1 }
 0x21d   : > { %v1946_v7 = vadd.f32 %v1930_v18, %v5265_v5  ;;  %v1933_v48 = vmul.f32 %v5230_v29, %v6700_v54  ;;  %v1788_v6 = vsub.f32 %v5269_v61, %v1772_v22  ;;  %v1789_v40 = vsub.f32 %v5285_v3, %v1773_v41  ;;  %6705 = vst [vmem:[#allocation71_spill] sm:$0xff] %v5435_v23  ;;  %v5443_v41 = vpop.f32.mrb[68].mxu1 }
 0x21e   : > { %v1948_v44 = vadd.f32 %v1932_v27, %v5273_v39  ;;  %v1787_v52 = vsub.f32 %v5277_v30, %v1771_v34  ;;  %v1947_v14 = vadd.f32 %v1931_v55, %v5281_v1  ;;  %v1822_v9 = vrot.slane %v1786_v24, 4  ;;  %v5437_v27 = vpop.f32.mrb[67].mxu0  ;;  %6707 = vst [vmem:[#allocation75_spill] sm:$0xff] %v5439_v47  ;;  %6709 = vst [vmem:[#allocation77_spill] sm:$0xff] %v5443_v41 }
 0x21f   : > { %v1982_v17 = vrot.slane %v1946_v7, 4  ;;  %v1949_v5 = vadd.f32 %v1933_v48, %v5289_v10  ;;  %v1834_v20 = vrot.slane %v1788_v6, 4  ;;  %v1840_v43 = vrot.slane %v1789_v40, 4  ;;  %6706 = vst [vmem:[#allocation74_spill] sm:$0xff] %v5437_v27  ;;  %v5441_v54 = vpop.f32.mrb[68].mxu0 }
 0x220   : > { %v1994_v63 = vrot.slane %v1948_v44, 4  ;;  %v1828_v46 = vrot.slane %v1787_v52, 4  ;;  %v1988_v42 = vrot.slane %v1947_v14, 4  ;;  %v1823_v38 = vadd.f32 %v1822_v9, %v1786_v24  ;;  %6708 = vst [vmem:[#allocation76_spill] sm:$0xff] %v5441_v54  ;;  %v5447_v9 = vpop.f32.mrb[69].mxu1 }
 0x221   : > { %v1983_v61 = vadd.f32 %v1982_v17, %v1946_v7  ;;  %v2000_v39 = vrot.slane %v1949_v5, 4  ;;  %v1835_v8 = vadd.f32 %v1834_v20, %v1788_v6  ;;  %v1841_v62 = vadd.f32 %v1840_v43, %v1789_v40  ;;  %6711 = vst [vmem:[#allocation78_spill] sm:$0xff] %v5447_v9 }
 0x222   : > { %v1995_v30 = vadd.f32 %v1994_v63, %v1948_v44  ;;  %v1829_v32 = vadd.f32 %v1828_v46, %v1787_v52  ;;  %v1989_v1 = vadd.f32 %v1988_v42, %v1947_v14  ;;  %v1824_v3 = vrot.slane %v1823_v38, 2  ;;  %v5445_v14 = vpop.f32.mrb[69].mxu0  ;;  %v5451_v46 = vpop.f32.mrb[70].mxu1 }
 0x223   : > { %v1984_v10 = vrot.slane %v1983_v61, 2  ;;  %v2001_v50 = vadd.f32 %v2000_v39, %v1949_v5  ;;  %v1836_v19 = vrot.slane %v1835_v8, 2  ;;  %v1842_v24 = vrot.slane %v1841_v62, 2  ;;  %6710 = vst [vmem:[#allocation30_spill] sm:$0xff] %v5445_v14  ;;  %v5449_v63 = vpop.f32.mrb[70].mxu0  ;;  %6713 = vst [vmem:[#allocation102_spill] sm:$0xff] %v5451_v46 }
 0x224   : > { %v1996_v18 = vrot.slane %v1995_v30, 2  ;;  %v1830_v25 = vrot.slane %v1829_v32, 2  ;;  %v1990_v22 = vrot.slane %v1989_v1, 2  ;;  %v1825_v34 = vadd.f32 %v1824_v3, %v1823_v38  ;;  %6712 = vst [vmem:[#allocation31_spill] sm:$0xff] %v5449_v63  ;;  %v5453_v39 = vpop.f32.mrb[71].mxu0 }
 0x225   : > { %v1985_v55 = vadd.f32 %v1984_v10, %v1983_v61  ;;  %v2002_v7 = vrot.slane %v2001_v50, 2  ;;  %v1837_v48 = vadd.f32 %v1836_v19, %v1835_v8  ;;  %v1843_v5 = vadd.f32 %v1842_v24, %v1841_v62  ;;  %6714 = vst [vmem:[#allocation103_spill] sm:$0xff] %v5453_v39  ;;  %v5455_v8 = vpop.f32.mrb[71].mxu1  ;;  %v5457_v10 = vpop.f32.mrb[72].mxu0 }
 0x226   : > { %v1997_v6 = vadd.f32 %v1996_v18, %v1995_v30  ;;  %v1831_v44 = vadd.f32 %v1830_v25, %v1829_v32  ;;  %v1991_v52 = vadd.f32 %v1990_v22, %v1989_v1  ;;  %v1826_v17 = vrot.slane %v1825_v34, 1  ;;  %6715 = vst [vmem:[#allocation104_spill] sm:$0xff] %v5455_v8  ;;  %6716 = vst [vmem:[#allocation105_spill] sm:$0xff] %v5457_v10  ;;  %v5509_v10 = vpop.f32.mrb[73].mxu0 }
 0x227   : > { %v1986_v40 = vrot.slane %v1985_v55, 1  ;;  %v2003_v20 = vadd.f32 %v2002_v7, %v2001_v50  ;;  %v1838_v42 = vrot.slane %v1837_v48, 1  ;;  %v1844_v1 = vrot.slane %v1843_v5, 1  ;;  %v5513_v63 = vpop.f32.mrb[74].mxu0 }
 0x228   : > { %v1998_v38 = vrot.slane %v1997_v6, 1  ;;  %v1832_v61 = vrot.slane %v1831_v44, 1  ;;  %v1992_v43 = vrot.slane %v1991_v52, 1  ;;  %v1827_v30 = vadd.f32 %v1826_v17, %v1825_v34 }
 0x229   : > { %v1987_v32 = vadd.f32 %v1986_v40, %v1985_v55  ;;  %v2004_v3 = vrot.slane %v2003_v20, 1  ;;  %v1839_v62 = vadd.f32 %v1838_v42, %v1837_v48  ;;  %v1845_v24 = vadd.f32 %v1844_v1, %v1843_v5  ;;  %v6724_v42 = vld [vmem:[#allocation65_spill] sm:$0xff] }
 0x22a   : > { %v1999_v50 = vadd.f32 %v1998_v38, %v1997_v6  ;;  %v1833_v19 = vadd.f32 %v1832_v61, %v1831_v44  ;;  %v1993_v18 = vadd.f32 %v1992_v43, %v1991_v52  ;;  %v5460_v25 = vadd.f32 %v1827_v30, %v5076_v60  ;;  %v6717_v6 = vld [vmem:[#allocation34_spill] sm:$0xff]  ;;  %v6719_v44 = vld [vmem:[#allocation35_spill] sm:$0xff]  ;;  %v6726_v30 = vld [vmem:[#allocation88_spill] sm:$0xff]  ;;  %6736 = vst [vmem:[#allocation65_spill] sm:$0xff] %v5513_v63 }
 0x22b   : > { %v5463_v22 = vadd.f32 %v1987_v32, %v5079_v35  ;;  %v2005_v7 = vadd.f32 %v2004_v3, %v2003_v20  ;;  %v5466_v8 = vadd.f32 %v1839_v62, %v5082_v2  ;;  %v5478_v60 = vadd.f32 %v1845_v24, %v6717_v6  ;;  %v6721_v52 = vld [vmem:[#allocation83_spill] sm:$0xff]  ;;  %v6725_v61 = vld [vmem:[#allocation66_spill] sm:$0xff] }
 0x22c   : > { %v5469_v34 = vadd.f32 %v1999_v50, %v5085_v53  ;;  %v5472_v55 = vadd.f32 %v1833_v19, %v5088_v57  ;;  %v5475_v48 = vadd.f32 %v1993_v18, %v5091_v51  ;;  %v1774_v17 = vmul.f32 %v5193_v37, %v6721_v52  ;;  %v6722_v53 = vld [vmem:[#allocation86_spill] sm:$0xff]  ;;  %v6723_v51 = vld [vmem:[#allocation87_spill] sm:$0xff]  ;;  %v6728_v50 = vld [vmem:[#allocation68_spill] sm:$0xff] }
 0x22d   : > { %6718 = vst [vmem:[#allocation34_spill] sm:$0xff] %v5478_v60  ;;  %v5481_v35 = vadd.f32 %v2005_v7, %v6719_v44  ;;  %v1934_v2 = vmul.f32 %v5190_v16, %v6721_v52  ;;  %v1776_v40 = vmul.f32 %v5209_v11, %v6722_v53  ;;  %v1936_v57 = vmul.f32 %v5196_v56, %v6722_v53  ;;  %v6727_v3 = vld [vmem:[#allocation67_spill] sm:$0xff]  ;;  %v6729_v18 = vld [vmem:[#allocation69_spill] sm:$0xff]  ;;  %v6730_v7 = vld [vmem:[#allocation70_spill] sm:$0xff] }
 0x22e   : > { %v1775_v5 = vmul.f32 %v5215_v45, %v6723_v51  ;;  %v1935_v20 = vmul.f32 %v5212_v21, %v6723_v51  ;;  %v1790_v38 = vsub.f32 %v6724_v42, %v1774_v17  ;;  %v1777_v32 = vmul.f32 %v5233_v58, %v6726_v30  ;;  %v6731_v53 = vld [vmem:[#allocation72_spill] sm:$0xff]  ;;  %v6732_v51 = vld [vmem:[#allocation73_spill] sm:$0xff]  ;;  %v5507_v42 = vpop.f32.mrb[72].mxu1  ;;  %6734 = vst [vmem:[#allocation86_spill] sm:$0xff] %v5509_v10 }
 0x22f   : > { %6720 = vst [vmem:[#allocation35_spill] sm:$0xff] %v5481_v35  ;;  %v1950_v43 = vadd.f32 %v1934_v2, %v6725_v61  ;;  %v1937_v1 = vmul.f32 %v5230_v29, %v6726_v30  ;;  %v1792_v62 = vsub.f32 %v6727_v3, %v1776_v40  ;;  %v1952_v19 = vadd.f32 %v1936_v57, %v6728_v50  ;;  %v5511_v40 = vpop.f32.mrb[73].mxu1 }
 0x230   : > { %v1791_v24 = vsub.f32 %v6729_v18, %v1775_v5  ;;  %v1951_v6 = vadd.f32 %v1935_v20, %v6730_v7  ;;  %v1846_v44 = vrot.slane %v1790_v38, 4  ;;  %v1793_v17 = vsub.f32 %v6731_v53, %v1777_v32  ;;  %6733 = vst [vmem:[#allocation83_spill] sm:$0xff] %v5507_v42  ;;  %6735 = vst [vmem:[#allocation87_spill] sm:$0xff] %v5511_v40 }
 0x231   : > { %v2006_v52 = vrot.slane %v1950_v43, 4  ;;  %v1953_v2 = vadd.f32 %v1937_v1, %v6732_v51  ;;  %v1858_v61 = vrot.slane %v1792_v62, 4  ;;  %v2018_v39 = vrot.slane %v1952_v19, 4 }
 0x232   : > { %v1852_v46 = vrot.slane %v1791_v24, 4  ;;  %v2012_v30 = vrot.slane %v1951_v6, 4  ;;  %v1847_v57 = vadd.f32 %v1846_v44, %v1790_v38  ;;  %v1864_v3 = vrot.slane %v1793_v17, 4 }
 0x233   : > { %v2007_v5 = vadd.f32 %v2006_v52, %v1950_v43  ;;  %v2024_v20 = vrot.slane %v1953_v2, 4  ;;  %v1859_v50 = vadd.f32 %v1858_v61, %v1792_v62  ;;  %v2019_v18 = vadd.f32 %v2018_v39, %v1952_v19 }
 0x234   : > { %v1853_v7 = vadd.f32 %v1852_v46, %v1791_v24  ;;  %v2013_v32 = vadd.f32 %v2012_v30, %v1951_v6  ;;  %v1848_v53 = vrot.slane %v1847_v57, 2  ;;  %v1865_v51 = vadd.f32 %v1864_v3, %v1793_v17  ;;  %v5515_v3 = vpop.f32.mrb[74].mxu1 }
 0x235   : > { %v2008_v1 = vrot.slane %v2007_v5, 2  ;;  %v2025_v42 = vadd.f32 %v2024_v20, %v1953_v2  ;;  %v1860_v9 = vrot.slane %v1859_v50, 2  ;;  %v2020_v14 = vrot.slane %v2019_v18, 2  ;;  %6737 = vst [vmem:[#allocation66_spill] sm:$0xff] %v5515_v3 }
 0x236   : > { %v1854_v41 = vrot.slane %v1853_v7, 2  ;;  %v2014_v10 = vrot.slane %v2013_v32, 2  ;;  %v1849_v54 = vadd.f32 %v1848_v53, %v1847_v57  ;;  %v1866_v38 = vrot.slane %v1865_v51, 2 }
 0x237   : > { %v2009_v40 = vadd.f32 %v2008_v1, %v2007_v5  ;;  %v2026_v43 = vrot.slane %v2025_v42, 2  ;;  %v1861_v44 = vadd.f32 %v1860_v9, %v1859_v50  ;;  %v2021_v52 = vadd.f32 %v2020_v14, %v2019_v18  ;;  %v6740_v50 = vld [vmem:[#allocation43_spill] sm:$0xff]  ;;  %v6742_v18 = vld [vmem:[#allocation44_spill] sm:$0xff] }
 0x238   : > { %v1855_v62 = vadd.f32 %v1854_v41, %v1853_v7  ;;  %v2015_v39 = vadd.f32 %v2014_v10, %v2013_v32  ;;  %v1850_v46 = vrot.slane %v1849_v54, 1  ;;  %v1867_v24 = vadd.f32 %v1866_v38, %v1865_v51  ;;  %v5517_v41 = vpop.f32.mrb[75].mxu0  ;;  %v5519_v10 = vpop.f32.mrb[75].mxu1  ;;  %v6746_v38 = vld [vmem:[#allocation50_spill] sm:$0xff] }
 0x239   : > { %v2010_v19 = vrot.slane %v2009_v40, 1  ;;  %v2027_v6 = vadd.f32 %v2026_v43, %v2025_v42  ;;  %v1862_v17 = vrot.slane %v1861_v44, 1  ;;  %v2022_v2 = vrot.slane %v2021_v52, 1  ;;  %6738 = vst [vmem:[#allocation88_spill] sm:$0xff] %v5517_v41  ;;  %6739 = vst [vmem:[#allocation67_spill] sm:$0xff] %v5519_v10 }
 0x23a   : > { %v1856_v61 = vrot.slane %v1855_v62, 1  ;;  %v2016_v30 = vrot.slane %v2015_v39, 1  ;;  %v1851_v20 = vadd.f32 %v1850_v46, %v1849_v54  ;;  %v1868_v57 = vrot.slane %v1867_v24, 1  ;;  %v6744_v54 = vld [vmem:[#allocation45_spill] sm:$0xff] }
 0x23b   : > { %v2011_v63 = vadd.f32 %v2010_v19, %v2009_v40  ;;  %v2028_v5 = vrot.slane %v2027_v6, 1  ;;  %v1863_v53 = vadd.f32 %v1862_v17, %v1861_v44  ;;  %v2023_v1 = vadd.f32 %v2022_v2, %v2021_v52  ;;  %v6748_v44 = vld [vmem:[#allocation51_spill] sm:$0xff]  ;;  %v6752_v46 = vld [vmem:[#allocation53_spill] sm:$0xff] }
 0x23c   : > { %v1857_v9 = vadd.f32 %v1856_v61, %v1855_v62  ;;  %v2017_v14 = vadd.f32 %v2016_v30, %v2015_v39  ;;  %v5522_v42 = vadd.f32 %v1851_v20, %v6740_v50  ;;  %v1869_v32 = vadd.f32 %v1868_v57, %v1867_v24  ;;  %v6750_v62 = vld [vmem:[#allocation52_spill] sm:$0xff]  ;;  %v6754_v17 = vld [vmem:[#allocation55_spill] sm:$0xff]  ;;  %v6756_v24 = vld [vmem:[#allocation89_spill] sm:$0xff] }
 0x23d   : > { %v5525_v7 = vadd.f32 %v2011_v63, %v6742_v18  ;;  %v2029_v51 = vadd.f32 %v2028_v5, %v2027_v6  ;;  %v5528_v40 = vadd.f32 %v1863_v53, %v6744_v54  ;;  %v5531_v43 = vadd.f32 %v2023_v1, %v6746_v38  ;;  %v6757_v61 = vld [vmem:[#allocation90_spill] sm:$0xff]  ;;  %v6758_v57 = vld [vmem:[#allocation91_spill] sm:$0xff]  ;;  %v5557_v1 = vpop.f32.mrb[76].mxu0  ;;  %v6762_v18 = vld [vmem:[#allocation92_spill] sm:$0xff] }
 0x23e   : > { %6741 = vst [vmem:[#allocation68_spill] sm:$0xff] %v5522_v42  ;;  %v5534_v52 = vadd.f32 %v1857_v9, %v6748_v44  ;;  %v5537_v39 = vadd.f32 %v2017_v14, %v6750_v62  ;;  %v5540_v19 = vadd.f32 %v1869_v32, %v6752_v46  ;;  %v1778_v6 = vmul.f32 %v5193_v37, %v6756_v24  ;;  %v6760_v9 = vld [vmem:[#allocation54_spill] sm:$0xff]  ;;  %v6761_v37 = vld [vmem:[#allocation57_spill] sm:$0xff]  ;;  %v6766_v44 = vld [vmem:[#allocation16_spill] sm:$0xff] }
 0x23f   : > { %6743 = vst [vmem:[#allocation69_spill] sm:$0xff] %v5525_v7  ;;  %6745 = vst [vmem:[#allocation70_spill] sm:$0xff] %v5528_v40  ;;  %v5543_v63 = vadd.f32 %v2029_v51, %v6754_v17  ;;  %v1938_v2 = vmul.f32 %v5190_v16, %v6756_v24  ;;  %v1780_v30 = vmul.f32 %v5209_v11, %v6757_v61  ;;  %v6763_v32 = vld [vmem:[#allocation58_spill] sm:$0xff]  ;;  %v6764_v51 = vld [vmem:[#allocation59_spill] sm:$0xff] }
 0x240   : > { %6747 = vst [vmem:[#allocation72_spill] sm:$0xff] %v5531_v43  ;;  %6749 = vst [vmem:[#allocation73_spill] sm:$0xff] %v5534_v52  ;;  %v1940_v20 = vmul.f32 %v5196_v56, %v6757_v61  ;;  %v1779_v5 = vmul.f32 %v5215_v45, %v6758_v57  ;;  %v1939_v53 = vmul.f32 %v5212_v21, %v6758_v57  ;;  %v6765_v45 = vld [vmem:[#allocation15_spill] sm:$0xff]  ;;  %v6767_v17 = vld [vmem:[#allocation17_spill] sm:$0xff] }
 0x241   : > { %6751 = vst [vmem:[#allocation43_spill] sm:$0xff] %v5537_v39  ;;  %6753 = vst [vmem:[#allocation44_spill] sm:$0xff] %v5540_v19  ;;  %v1794_v14 = vsub.f32 %v6760_v9, %v1778_v6  ;;  %v1954_v50 = vadd.f32 %v1938_v2, %v6761_v37  ;;  %v1781_v16 = vmul.f32 %v5233_v58, %v6762_v18  ;;  %v6768_v6 = vld [vmem:[#allocation18_spill] sm:$0xff]  ;;  %v6822_v19 = vld [vmem:[#allocation36_spill] sm:$0xff] }
 0x242   : > { %6755 = vst [vmem:[#allocation45_spill] sm:$0xff] %v5543_v63  ;;  %6759 = vst [vmem:[#allocation50_spill] sm:$0xff] %v5557_v1  ;;  %v1941_v11 = vmul.f32 %v5230_v29, %v6762_v18  ;;  %v1796_v56 = vsub.f32 %v6763_v32, %v1780_v30  ;;  %v1956_v54 = vadd.f32 %v1940_v20, %v6764_v51  ;;  %v6824_v52 = vld [vmem:[#allocation38_spill] sm:$0xff] }
 0x243   : > { %v1795_v38 = vsub.f32 %v6765_v45, %v1779_v5  ;;  %v1955_v21 = vadd.f32 %v1939_v53, %v6766_v44  ;;  %v1870_v62 = vrot.slane %v1794_v14, 4  ;;  %v2030_v46 = vrot.slane %v1954_v50, 4 }
 0x244   : > { %v1797_v24 = vsub.f32 %v6767_v17, %v1781_v16  ;;  %v1957_v2 = vadd.f32 %v1941_v11, %v6768_v6  ;;  %v1882_v61 = vrot.slane %v1796_v56, 4  ;;  %v2042_v57 = vrot.slane %v1956_v54, 4 }
 0x245   : > { %v1876_v58 = vrot.slane %v1795_v38, 4  ;;  %v2036_v9 = vrot.slane %v1955_v21, 4  ;;  %v1871_v37 = vadd.f32 %v1870_v62, %v1794_v14  ;;  %v2031_v29 = vadd.f32 %v2030_v46, %v1954_v50 }
 0x246   : > { %v1888_v18 = vrot.slane %v1797_v24, 4  ;;  %v2048_v30 = vrot.slane %v1957_v2, 4  ;;  %v1883_v32 = vadd.f32 %v1882_v61, %v1796_v56  ;;  %v2043_v20 = vadd.f32 %v2042_v57, %v1956_v54 }
 0x247   : > { %v1877_v51 = vadd.f32 %v1876_v58, %v1795_v38  ;;  %v2037_v5 = vadd.f32 %v2036_v9, %v1955_v21  ;;  %v1872_v45 = vrot.slane %v1871_v37, 2  ;;  %v2032_v53 = vrot.slane %v2031_v29, 2 }
 0x248   : > { %v1889_v44 = vadd.f32 %v1888_v18, %v1797_v24  ;;  %v2049_v1 = vadd.f32 %v2048_v30, %v1957_v2  ;;  %v1884_v10 = vrot.slane %v1883_v32, 2  ;;  %v2044_v16 = vrot.slane %v2043_v20, 2 }
 0x249   : > { %v1878_v17 = vrot.slane %v1877_v51, 2  ;;  %v2038_v11 = vrot.slane %v2037_v5, 2  ;;  %v1873_v6 = vadd.f32 %v1872_v45, %v1871_v37  ;;  %v2033_v41 = vadd.f32 %v2032_v53, %v2031_v29 }
 0x24a   : > { %v1890_v3 = vrot.slane %v1889_v44, 2  ;;  %v2050_v47 = vrot.slane %v2049_v1, 2  ;;  %v1885_v14 = vadd.f32 %v1884_v10, %v1883_v32  ;;  %v2045_v50 = vadd.f32 %v2044_v16, %v2043_v20  ;;  %v5572_v20 = vld [vmem:[%s4123_s13 + $0x60] sm:$0xff]  ;;  %v5589_v16 = vld [vmem:[%s4442_s5 + $0x70] sm:$0xff] }
 0x24b   : > { %v1879_v62 = vadd.f32 %v1878_v17, %v1877_v51  ;;  %v2039_v46 = vadd.f32 %v2038_v11, %v2037_v5  ;;  %v1874_v56 = vrot.slane %v1873_v6, 1  ;;  %v2034_v54 = vrot.slane %v2033_v41, 1  ;;  %v6770_v51 = vld [vmem:[#allocation32_spill] sm:$0xff]  ;;  %v6772_v5 = vld [vmem:[#allocation33_spill] sm:$0xff] }
 0x24c   : > { %v1891_v38 = vadd.f32 %v1890_v3, %v1889_v44  ;;  %v2051_v21 = vadd.f32 %v2050_v47, %v2049_v1  ;;  %v1886_v24 = vrot.slane %v1885_v14, 1  ;;  %v2046_v2 = vrot.slane %v2045_v50, 1  ;;  %v5575_v47 = vld [vmem:[%s4442_s5 + $0x60] sm:$0xff]  ;;  %v5578_v3 = vld [vmem:[%s4123_s13 + $0x70] sm:$0xff]  ;;  %v5580_v1 = vpop.f32.mrb[76].mxu1  ;;  %v5592_v17 = vld [vmem:[%s4123_s13 + $0x68] sm:$0xff] }
 0x24d   : > { %v1880_v61 = vrot.slane %v1879_v62, 1  ;;  %v2040_v57 = vrot.slane %v2039_v46, 1  ;;  %v1875_v58 = vadd.f32 %v1874_v56, %v1873_v6  ;;  %v2035_v9 = vadd.f32 %v2034_v54, %v2033_v41  ;;  %6769 = vst [vmem:[#allocation51_spill] sm:$0xff] %v5580_v1  ;;  %v5595_v11 = vld [vmem:[%s4442_s5 + $0x68] sm:$0xff]  ;;  %v6774_v6 = vld [vmem:[#allocation49_spill] sm:$0xff] }
 0x24e   : > { %v1892_v37 = vrot.slane %v1891_v38, 1  ;;  %v2052_v10 = vrot.slane %v2051_v21, 1  ;;  %v1887_v29 = vadd.f32 %v1886_v24, %v1885_v14  ;;  %v2047_v18 = vadd.f32 %v2046_v2, %v2045_v50  ;;  %v6776_v50 = vld [vmem:[#allocation79_spill] sm:$0xff]  ;;  %v6780_v54 = vld [vmem:[#allocation81_spill] sm:$0xff]  ;;  %v6782_v2 = vld [vmem:[#allocation82_spill] sm:$0xff] }
 0x24f   : > { %v1881_v30 = vadd.f32 %v1880_v61, %v1879_v62  ;;  %v2041_v32 = vadd.f32 %v2040_v57, %v2039_v46  ;;  %v5583_v41 = vadd.f32 %v1875_v58, %v6770_v51  ;;  %v5586_v45 = vadd.f32 %v2035_v9, %v6772_v5  ;;  %v6778_v46 = vld [vmem:[#allocation80_spill] sm:$0xff]  ;;  %v6786_v9 = vld [vmem:[#allocation93_spill] sm:$0xff]  ;;  %v6790_v5 = vld [vmem:[#allocation23_spill] sm:$0xff] }
 0x250   : > { %v1893_v53 = vadd.f32 %v1892_v37, %v1891_v38  ;;  %v2053_v44 = vadd.f32 %v2052_v10, %v2051_v21  ;;  %v5598_v14 = vadd.f32 %v1887_v29, %v6774_v6  ;;  %v5601_v62 = vadd.f32 %v2047_v18, %v6776_v50  ;;  %v5610_v38 = vld [vmem:[%s4123_s13 + $0x78] sm:$0xff]  ;;  %v6784_v57 = vld [vmem:[#allocation84_spill] sm:$0xff]  ;;  %v5625_v29 = vpop.f32.mrb[77].mxu0  ;;  %v5627_v18 = vpop.f32.mrb[77].mxu1 }
 0x251   : > { %6771 = vst [vmem:[#allocation52_spill] sm:$0xff] %v5583_v41  ;;  %6773 = vst [vmem:[#allocation53_spill] sm:$0xff] %v5586_v45  ;;  %v5604_v56 = vadd.f32 %v1881_v30, %v6778_v46  ;;  %v5607_v24 = vadd.f32 %v2041_v32, %v6780_v54  ;;  %v5613_v21 = vld [vmem:[%s4442_s5 + $0x78] sm:$0xff]  ;;  %v2339_v37 = vmul.f32 %v5572_v20, %v6786_v9  ;;  %v6791_v6 = vld [vmem:[#allocation24_spill] sm:$0xff]  ;;  %v5665_v1 = vpop.f32.mrb[78].mxu0 }
 0x252   : > { %6775 = vst [vmem:[#allocation55_spill] sm:$0xff] %v5598_v14  ;;  %6777 = vst [vmem:[#allocation89_spill] sm:$0xff] %v5601_v62  ;;  %v5616_v61 = vadd.f32 %v1893_v53, %v6782_v2  ;;  %v5619_v58 = vadd.f32 %v2053_v44, %v6784_v57  ;;  %v2499_v10 = vmul.f32 %v5575_v47, %v6786_v9  ;;  %v6789_v30 = vld [vmem:[#allocation22_spill] sm:$0xff]  ;;  %v6792_v54 = vld [vmem:[#allocation25_spill] sm:$0xff] }
 0x253   : > { %6779 = vst [vmem:[#allocation90_spill] sm:$0xff] %v5604_v56  ;;  %6781 = vst [vmem:[#allocation91_spill] sm:$0xff] %v5607_v24  ;;  %v2341_v32 = vmul.f32 %v5578_v3, %v6789_v30  ;;  %v2501_v51 = vmul.f32 %v5589_v16, %v6789_v30  ;;  %v2340_v53 = vmul.f32 %v5592_v17, %v6790_v5  ;;  %v6793_v9 = vld [vmem:[#allocation26_spill] sm:$0xff]  ;;  %v6809_v56 = vld [vmem:[#allocation97_spill] sm:$0xff] }
 0x254   : > { %6783 = vst [vmem:[#allocation54_spill] sm:$0xff] %v5616_v61  ;;  %6785 = vst [vmem:[#allocation57_spill] sm:$0xff] %v5619_v58  ;;  %v2500_v44 = vmul.f32 %v5595_v11, %v6790_v5  ;;  %v2342_v50 = vmul.f32 %v5610_v38, %v6791_v6  ;;  %v2502_v46 = vmul.f32 %v5613_v21, %v6791_v6  ;;  %v6806_v61 = vld [vmem:[#allocation96_spill] sm:$0xff]  ;;  %v6812_v14 = vld [vmem:[#allocation98_spill] sm:$0xff] }
 0x255   : > { %6787 = vst [vmem:[#allocation92_spill] sm:$0xff] %v5625_v29  ;;  %6788 = vst [vmem:[#allocation58_spill] sm:$0xff] %v5627_v18  ;;  %v5643_v2 = vmul.f32 %v5572_v20, %v6792_v54  ;;  %v5647_v57 = vmul.f32 %v5575_v47, %v6792_v54  ;;  %v5651_v30 = vmul.f32 %v5578_v3, %v6793_v9  ;;  %v6794_v18 = vld [vmem:[#allocation27_spill] sm:$0xff]  ;;  %v6796_v54 = vld [vmem:[#allocation28_spill] sm:$0xff] }
 0x256   : > { %v5655_v5 = vmul.f32 %v5589_v16, %v6793_v9  ;;  %v5659_v29 = vmul.f32 %v5592_v17, %v6794_v18  ;;  %v5663_v6 = vmul.f32 %v5595_v11, %v6794_v18  ;;  %6795 = vst [vmem:[#allocation59_spill] sm:$0xff] %v5665_v1  ;;  %v5669_v27 = vmul.f32 %v5610_v38, %v6796_v54  ;;  %v6797_v9 = vld [vmem:[#allocation29_spill] sm:$0xff]  ;;  %v6800_v18 = vld [vmem:[#allocation94_spill] sm:$0xff]  ;;  %v6815_v41 = vld [vmem:[#allocation99_spill] sm:$0xff] }
 0x257   : > { %v5673_v23 = vmul.f32 %v5613_v21, %v6796_v54  ;;  %v5677_v33 = vmul.f32 %v5572_v20, %v6797_v9  ;;  %v5681_v4 = vmul.f32 %v5575_v47, %v6797_v9  ;;  %v5685_v26 = vmul.f32 %v5578_v3, %v6800_v18 }
 0x258   : > { %v5689_v1 = vmul.f32 %v5589_v16, %v6800_v18  ;;  %v5693_v54 = vmul.f32 %v5592_v17, %v6803_v31  ;;  %v5697_v58 = vmul.f32 %v5595_v11, %v6803_v31  ;;  %v5701_v9 = vmul.f32 %v5610_v38, %v6806_v61 }
 0x259   : > { %6798 = vst [vmem:[#allocation15_spill] sm:$0xff] %v5677_v33  ;;  %6799 = vst [vmem:[#allocation16_spill] sm:$0xff] %v5681_v4  ;;  %v5705_v24 = vmul.f32 %v5613_v21, %v6806_v61  ;;  %v5709_v18 = vmul.f32 %v5572_v20, %v6809_v56  ;;  %v5713_v62 = vmul.f32 %v5575_v47, %v6809_v56 }
 0x25a   : > { %6801 = vst [vmem:[#allocation17_spill] sm:$0xff] %v5685_v26  ;;  %6802 = vst [vmem:[#allocation18_spill] sm:$0xff] %v5689_v1  ;;  %v5717_v31 = vmul.f32 %v5578_v3, %v6812_v14  ;;  %v5721_v45 = vmul.f32 %v5589_v16, %v6812_v14  ;;  %v5725_v61 = vmul.f32 %v5592_v17, %v6815_v41 }
 0x25b   : > { %6804 = vst [vmem:[#allocation32_spill] sm:$0xff] %v5693_v54  ;;  %6805 = vst [vmem:[#allocation33_spill] sm:$0xff] %v5697_v58  ;;  %v5729_v63 = vmul.f32 %v5595_v11, %v6815_v41  ;;  %v2517_v41 = vmul.f32 %v5578_v3, %v6822_v19  ;;  %v2358_v43 = vmul.f32 %v5613_v21, %v6824_v52 }
 0x25c   : > { %6807 = vst [vmem:[#allocation49_spill] sm:$0xff] %v5701_v9  ;;  %6808 = vst [vmem:[#allocation79_spill] sm:$0xff] %v5705_v24 }
 0x25d   : > { %6810 = vst [vmem:[#allocation80_spill] sm:$0xff] %v5709_v18  ;;  %6811 = vst [vmem:[#allocation81_spill] sm:$0xff] %v5713_v62  ;;  %v6818_v18 = vld [vmem:[#allocation100_spill] sm:$0xff]  ;;  %v2533_v7 = vadd.f32 %v2517_v41, %v2501_v51  ;;  %v2374_v58 = vsub.f32 %v2342_v50, %v2358_v43 }
 0x25e   : > { %6813 = vst [vmem:[#allocation82_spill] sm:$0xff] %v5717_v31  ;;  %6814 = vst [vmem:[#allocation84_spill] sm:$0xff] %v5721_v45  ;;  %v5733_v56 = vmul.f32 %v5610_v38, %v6818_v18  ;;  %v5737_v62 = vmul.f32 %v5613_v21, %v6818_v18  ;;  %v6821_v31 = vld [vmem:[#allocation101_spill] sm:$0xff] }
 0x25f   : > { %6816 = vst [vmem:[#allocation93_spill] sm:$0xff] %v5725_v61  ;;  %6817 = vst [vmem:[#allocation22_spill] sm:$0xff] %v5729_v63  ;;  %v2355_v14 = vmul.f32 %v5575_v47, %v6821_v31  ;;  %v2515_v45 = vmul.f32 %v5572_v20, %v6821_v31  ;;  %v2357_v61 = vmul.f32 %v5589_v16, %v6822_v19  ;;  %v6823_v63 = vld [vmem:[#allocation37_spill] sm:$0xff]  ;;  %v2559_v26 = vrot.slane %v2533_v7, 4 }
 0x260   : > { %6819 = vst [vmem:[#allocation23_spill] sm:$0xff] %v5733_v56  ;;  %6820 = vst [vmem:[#allocation24_spill] sm:$0xff] %v5737_v62  ;;  %v2356_v39 = vmul.f32 %v5595_v11, %v6823_v63  ;;  %v2516_v56 = vmul.f32 %v5592_v17, %v6823_v63  ;;  %v2518_v31 = vmul.f32 %v5610_v38, %v6824_v52 }
 0x261   : > { %v2371_v18 = vsub.f32 %v2339_v37, %v2355_v14  ;;  %v2531_v62 = vadd.f32 %v2515_v45, %v2499_v10  ;;  %v2373_v40 = vsub.f32 %v2341_v32, %v2357_v61  ;;  %v2405_v10 = vrot.slane %v2374_v58, 4 }
 0x262   : > { %v2372_v42 = vsub.f32 %v2340_v53, %v2356_v39  ;;  %v2532_v24 = vadd.f32 %v2516_v56, %v2500_v44  ;;  %v2534_v54 = vadd.f32 %v2518_v31, %v2502_v46  ;;  %v2560_v35 = vadd.f32 %v2559_v26, %v2533_v7  ;;  %v5755_v46 = vpop.f32.mrb[78].mxu1 }
 0x263   : > { %v2387_v9 = vrot.slane %v2371_v18, 4  ;;  %v2547_v19 = vrot.slane %v2531_v62, 4  ;;  %v2399_v1 = vrot.slane %v2373_v40, 4  ;;  %v2406_v39 = vadd.f32 %v2405_v10, %v2374_v58  ;;  %6825 = vst [vmem:[#allocation25_spill] sm:$0xff] %v5755_v46  ;;  %v5759_v10 = vpop.f32.mrb[79].mxu1  ;;  %v6916_v46 = vld [vmem:[#allocation83_spill] sm:$0xff] }
 0x264   : > { %v2393_v4 = vrot.slane %v2372_v42, 4  ;;  %v2553_v63 = vrot.slane %v2532_v24, 4  ;;  %v2565_v14 = vrot.slane %v2534_v54, 4  ;;  %v2561_v61 = vrot.slane %v2560_v35, 2  ;;  %6827 = vst [vmem:[#allocation27_spill] sm:$0xff] %v5759_v10  ;;  %v6915_v10 = vld [vmem:[#allocation105_spill] sm:$0xff] }
 0x265   : > { %v2388_v37 = vadd.f32 %v2387_v9, %v2371_v18  ;;  %v2548_v45 = vadd.f32 %v2547_v19, %v2531_v62  ;;  %v2400_v33 = vadd.f32 %v2399_v1, %v2373_v40  ;;  %v2407_v9 = vrot.slane %v2406_v39, 2 }
 0x266   : > { %v2394_v60 = vadd.f32 %v2393_v4, %v2372_v42  ;;  %v2554_v52 = vadd.f32 %v2553_v63, %v2532_v24  ;;  %v2566_v53 = vadd.f32 %v2565_v14, %v2534_v54  ;;  %v2562_v31 = vadd.f32 %v2561_v61, %v2560_v35  ;;  %v5757_v63 = vpop.f32.mrb[79].mxu0 }
 0x267   : > { %v2389_v32 = vrot.slane %v2388_v37, 2  ;;  %v2549_v51 = vrot.slane %v2548_v45, 2  ;;  %v2401_v44 = vrot.slane %v2400_v33, 2  ;;  %v2408_v7 = vadd.f32 %v2407_v9, %v2406_v39  ;;  %6826 = vst [vmem:[#allocation26_spill] sm:$0xff] %v5757_v63 }
 0x268   : > { %v2395_v43 = vrot.slane %v2394_v60, 2  ;;  %v2555_v50 = vrot.slane %v2554_v52, 2  ;;  %v2567_v62 = vrot.slane %v2566_v53, 2  ;;  %v2563_v58 = vrot.slane %v2562_v31, 1 }
 0x269   : > { %v2390_v56 = vadd.f32 %v2389_v32, %v2388_v37  ;;  %v2550_v41 = vadd.f32 %v2549_v51, %v2548_v45  ;;  %v2402_v18 = vadd.f32 %v2401_v44, %v2400_v33  ;;  %v2409_v14 = vrot.slane %v2408_v7, 1 }
 0x26a   : > { %v2396_v40 = vadd.f32 %v2395_v43, %v2394_v60  ;;  %v2556_v26 = vadd.f32 %v2555_v50, %v2554_v52  ;;  %v2568_v1 = vadd.f32 %v2567_v62, %v2566_v53  ;;  %v2564_v35 = vadd.f32 %v2563_v58, %v2562_v31 }
 0x26b   : > { %v2391_v4 = vrot.slane %v2390_v56, 1  ;;  %v2551_v42 = vrot.slane %v2550_v41, 1  ;;  %v2403_v24 = vrot.slane %v2402_v18, 1  ;;  %v2410_v53 = vadd.f32 %v2409_v14, %v2408_v7 }
 0x26c   : > { %v2397_v54 = vrot.slane %v2396_v40, 1  ;;  %v2557_v19 = vrot.slane %v2556_v26, 1  ;;  %v2569_v32 = vrot.slane %v2568_v1, 1  ;;  %v5771_v43 = vadd.f32 %v2564_v35, %v5389_v15  ;;  %v6829_v15 = vld [vmem:[#allocation40_spill] sm:$0xff] }
 0x26d   : > { %v2392_v37 = vadd.f32 %v2391_v4, %v2390_v56  ;;  %v2552_v45 = vadd.f32 %v2551_v42, %v2550_v41  ;;  %v2404_v33 = vadd.f32 %v2403_v24, %v2402_v18  ;;  %v6828_v41 = vld [vmem:[#allocation39_spill] sm:$0xff]  ;;  %v2361_v62 = vmul.f32 %v5589_v16, %v6829_v15 }
 0x26e   : > { %v2398_v60 = vadd.f32 %v2397_v54, %v2396_v40  ;;  %v2558_v52 = vadd.f32 %v2557_v19, %v2556_v26  ;;  %v2570_v44 = vadd.f32 %v2569_v32, %v2568_v1  ;;  %v2359_v9 = vmul.f32 %v5575_v47, %v6828_v41  ;;  %v6831_v40 = vld [vmem:[#allocation42_spill] sm:$0xff] }
 0x26f   : > { %v5762_v51 = vadd.f32 %v2392_v37, %v5380_v13  ;;  %v5765_v39 = vadd.f32 %v2552_v45, %v5383_v49  ;;  %v5768_v61 = vadd.f32 %v2404_v33, %v5386_v12  ;;  %v5780_v13 = vadd.f32 %v2410_v53, %v5398_v28 }
 0x270   : > { %v5774_v50 = vadd.f32 %v2398_v60, %v5392_v0  ;;  %v5777_v56 = vadd.f32 %v2558_v52, %v5395_v36  ;;  %v5783_v49 = vadd.f32 %v2570_v44, %v5401_v59  ;;  %v2519_v12 = vmul.f32 %v5572_v20, %v6828_v41  ;;  %v6830_v36 = vld [vmem:[#allocation41_spill] sm:$0xff] }
 0x271   : > { %v2521_v0 = vmul.f32 %v5578_v3, %v6829_v15  ;;  %v2360_v18 = vmul.f32 %v5595_v11, %v6830_v36  ;;  %v2520_v28 = vmul.f32 %v5592_v17, %v6830_v36  ;;  %v2375_v59 = vsub.f32 %v5643_v2, %v2359_v9 }
 0x272   : > { %v2535_v31 = vadd.f32 %v2519_v12, %v5647_v57  ;;  %v2362_v26 = vmul.f32 %v5613_v21, %v6831_v40  ;;  %v2522_v4 = vmul.f32 %v5610_v38, %v6831_v40  ;;  %v2377_v42 = vsub.f32 %v5651_v30, %v2361_v62 }
 0x273   : > { %v2537_v7 = vadd.f32 %v2521_v0, %v5655_v5  ;;  %v2376_v1 = vsub.f32 %v5659_v29, %v2360_v18  ;;  %v2536_v24 = vadd.f32 %v2520_v28, %v5663_v6  ;;  %v2411_v58 = vrot.slane %v2375_v59, 4 }
 0x274   : > { %v2571_v54 = vrot.slane %v2535_v31, 4  ;;  %v2378_v2 = vsub.f32 %v5669_v27, %v2362_v26  ;;  %v2538_v57 = vadd.f32 %v2522_v4, %v5673_v23  ;;  %v2423_v19 = vrot.slane %v2377_v42, 4 }
 0x275   : > { %v2583_v37 = vrot.slane %v2537_v7, 4  ;;  %v2417_v45 = vrot.slane %v2376_v1, 4  ;;  %v2577_v14 = vrot.slane %v2536_v24, 4  ;;  %v2412_v32 = vadd.f32 %v2411_v58, %v2375_v59 }
 0x276   : > { %v2572_v33 = vadd.f32 %v2571_v54, %v2535_v31  ;;  %v2429_v35 = vrot.slane %v2378_v2, 4  ;;  %v2589_v30 = vrot.slane %v2538_v57, 4  ;;  %v2424_v60 = vadd.f32 %v2423_v19, %v2377_v42 }
 0x277   : > { %v2584_v5 = vadd.f32 %v2583_v37, %v2537_v7  ;;  %v2418_v52 = vadd.f32 %v2417_v45, %v2376_v1  ;;  %v2578_v29 = vadd.f32 %v2577_v14, %v2536_v24  ;;  %v2413_v53 = vrot.slane %v2412_v32, 2 }
 0x278   : > { %v2573_v6 = vrot.slane %v2572_v33, 2  ;;  %v2430_v44 = vadd.f32 %v2429_v35, %v2378_v2  ;;  %v2590_v41 = vadd.f32 %v2589_v30, %v2538_v57  ;;  %v2425_v9 = vrot.slane %v2424_v60, 2 }
 0x279   : > { %v2585_v27 = vrot.slane %v2584_v5, 2  ;;  %v2419_v12 = vrot.slane %v2418_v52, 2  ;;  %v2579_v23 = vrot.slane %v2578_v29, 2  ;;  %v2414_v15 = vadd.f32 %v2413_v53, %v2412_v32 }
 0x27a   : > { %v2574_v62 = vadd.f32 %v2573_v6, %v2572_v33  ;;  %v2431_v0 = vrot.slane %v2430_v44, 2  ;;  %v2591_v36 = vrot.slane %v2590_v41, 2  ;;  %v2426_v18 = vadd.f32 %v2425_v9, %v2424_v60  ;;  %v6832_v6 = vld [vmem:[#allocation34_spill] sm:$0xff] }
 0x27b   : > { %v2586_v28 = vadd.f32 %v2585_v27, %v2584_v5  ;;  %v2420_v59 = vadd.f32 %v2419_v12, %v2418_v52  ;;  %v2580_v31 = vadd.f32 %v2579_v23, %v2578_v29  ;;  %v2415_v40 = vrot.slane %v2414_v15, 1 }
 0x27c   : > { %v2575_v26 = vrot.slane %v2574_v62, 1  ;;  %v2432_v4 = vadd.f32 %v2431_v0, %v2430_v44  ;;  %v2592_v42 = vadd.f32 %v2591_v36, %v2590_v41  ;;  %v2427_v7 = vrot.slane %v2426_v18, 1  ;;  %v6834_v44 = vld [vmem:[#allocation35_spill] sm:$0xff]  ;;  %v6836_v41 = vld [vmem:[#allocation56_spill] sm:$0xff] }
 0x27d   : > { %v2587_v1 = vrot.slane %v2586_v28, 1  ;;  %v2421_v24 = vrot.slane %v2420_v59, 1  ;;  %v2581_v58 = vrot.slane %v2580_v31, 1  ;;  %v2416_v54 = vadd.f32 %v2415_v40, %v2414_v15  ;;  %v6839_v15 = vld [vmem:[#allocation15_spill] sm:$0xff]  ;;  %v6840_v0 = vld [vmem:[#allocation16_spill] sm:$0xff] }
 0x27e   : > { %v2576_v2 = vadd.f32 %v2575_v26, %v2574_v62  ;;  %v2433_v57 = vrot.slane %v2432_v4, 1  ;;  %v2593_v19 = vrot.slane %v2592_v42, 1  ;;  %v2428_v37 = vadd.f32 %v2427_v7, %v2426_v18  ;;  %v6841_v18 = vld [vmem:[#allocation48_spill] sm:$0xff]  ;;  %v6843_v26 = vld [vmem:[#allocation18_spill] sm:$0xff] }
 0x27f   : > { %v2588_v45 = vadd.f32 %v2587_v1, %v2586_v28  ;;  %v2422_v14 = vadd.f32 %v2421_v24, %v2420_v59  ;;  %v2582_v32 = vadd.f32 %v2581_v58, %v2580_v31  ;;  %v5810_v33 = vadd.f32 %v2416_v54, %v5460_v25  ;;  %v6842_v31 = vld [vmem:[#allocation17_spill] sm:$0xff] }
 0x280   : > { %v5813_v35 = vadd.f32 %v2576_v2, %v5463_v22  ;;  %v2434_v30 = vadd.f32 %v2433_v57, %v2432_v4  ;;  %v2594_v60 = vadd.f32 %v2593_v19, %v2592_v42  ;;  %v5816_v5 = vadd.f32 %v2428_v37, %v5466_v8  ;;  %v6844_v42 = vld [vmem:[#allocation32_spill] sm:$0xff]  ;;  %v6845_v1 = vld [vmem:[#allocation33_spill] sm:$0xff]  ;;  %v6847_v19 = vld [vmem:[#allocation79_spill] sm:$0xff] }
 0x281   : > { %v5819_v52 = vadd.f32 %v2588_v45, %v5469_v34  ;;  %v5822_v29 = vadd.f32 %v2422_v14, %v5472_v55  ;;  %v5825_v53 = vadd.f32 %v2582_v32, %v5475_v48  ;;  %v2363_v9 = vmul.f32 %v5575_v47, %v6836_v41  ;;  %v6837_v34 = vld [vmem:[#allocation46_spill] sm:$0xff]  ;;  %v6838_v48 = vld [vmem:[#allocation47_spill] sm:$0xff]  ;;  %v6846_v2 = vld [vmem:[#allocation49_spill] sm:$0xff] }
 0x282   : > { %v5828_v25 = vadd.f32 %v2434_v30, %v6832_v6  ;;  %v5831_v22 = vadd.f32 %v2594_v60, %v6834_v44  ;;  %v2523_v8 = vmul.f32 %v5572_v20, %v6836_v41  ;;  %v2365_v27 = vmul.f32 %v5589_v16, %v6837_v34 }
 0x283   : > { %v2525_v55 = vmul.f32 %v5578_v3, %v6837_v34  ;;  %v2364_v12 = vmul.f32 %v5595_v11, %v6838_v48  ;;  %v2524_v23 = vmul.f32 %v5592_v17, %v6838_v48  ;;  %v2379_v62 = vsub.f32 %v6839_v15, %v2363_v9 }
 0x284   : > { %6833 = vst [vmem:[#allocation28_spill] sm:$0xff] %v5828_v25  ;;  %6835 = vst [vmem:[#allocation29_spill] sm:$0xff] %v5831_v22  ;;  %v2539_v36 = vadd.f32 %v2523_v8, %v6840_v0  ;;  %v2366_v28 = vmul.f32 %v5613_v21, %v6841_v18  ;;  %v2526_v59 = vmul.f32 %v5610_v38, %v6841_v18 }
 0x285   : > { %v2381_v40 = vsub.f32 %v6842_v31, %v2365_v27  ;;  %v2541_v4 = vadd.f32 %v2525_v55, %v6843_v26  ;;  %v2380_v7 = vsub.f32 %v6844_v42, %v2364_v12  ;;  %v2540_v24 = vadd.f32 %v2524_v23, %v6845_v1 }
 0x286   : > { %v2435_v58 = vrot.slane %v2379_v62, 4  ;;  %v2595_v54 = vrot.slane %v2539_v36, 4  ;;  %v2382_v57 = vsub.f32 %v6846_v2, %v2366_v28  ;;  %v2542_v37 = vadd.f32 %v2526_v59, %v6847_v19 }
 0x287   : > { %v2447_v45 = vrot.slane %v2381_v40, 4  ;;  %v2607_v14 = vrot.slane %v2541_v4, 4  ;;  %v2441_v32 = vrot.slane %v2380_v7, 4  ;;  %v2601_v30 = vrot.slane %v2540_v24, 4 }
 0x288   : > { %v2436_v60 = vadd.f32 %v2435_v58, %v2379_v62  ;;  %v2596_v6 = vadd.f32 %v2595_v54, %v2539_v36  ;;  %v2453_v44 = vrot.slane %v2382_v57, 4  ;;  %v2613_v41 = vrot.slane %v2542_v37, 4 }
 0x289   : > { %v2448_v9 = vadd.f32 %v2447_v45, %v2381_v40  ;;  %v2608_v8 = vadd.f32 %v2607_v14, %v2541_v4  ;;  %v2442_v34 = vadd.f32 %v2441_v32, %v2380_v7  ;;  %v2602_v27 = vadd.f32 %v2601_v30, %v2540_v24 }
 0x28a   : > { %v2437_v55 = vrot.slane %v2436_v60, 2  ;;  %v2597_v48 = vrot.slane %v2596_v6, 2  ;;  %v2454_v12 = vadd.f32 %v2453_v44, %v2382_v57  ;;  %v2614_v23 = vadd.f32 %v2613_v41, %v2542_v37  ;;  %v6848_v41 = vld [vmem:[#allocation68_spill] sm:$0xff] }
 0x28b   : > { %v2449_v15 = vrot.slane %v2448_v9, 2  ;;  %v2609_v0 = vrot.slane %v2608_v8, 2  ;;  %v2443_v18 = vrot.slane %v2442_v34, 2  ;;  %v2603_v28 = vrot.slane %v2602_v27, 2 }
 0x28c   : > { %v2438_v59 = vadd.f32 %v2437_v55, %v2436_v60  ;;  %v2598_v31 = vadd.f32 %v2597_v48, %v2596_v6  ;;  %v2455_v26 = vrot.slane %v2454_v12, 2  ;;  %v2615_v42 = vrot.slane %v2614_v23, 2  ;;  %v6852_v48 = vld [vmem:[#allocation70_spill] sm:$0xff] }
 0x28d   : > { %v2450_v62 = vadd.f32 %v2449_v15, %v2448_v9  ;;  %v2610_v36 = vadd.f32 %v2609_v0, %v2608_v8  ;;  %v2444_v1 = vadd.f32 %v2443_v18, %v2442_v34  ;;  %v2604_v58 = vadd.f32 %v2603_v28, %v2602_v27  ;;  %v6850_v8 = vld [vmem:[#allocation69_spill] sm:$0xff]  ;;  %v6858_v28 = vld [vmem:[#allocation43_spill] sm:$0xff] }
 0x28e   : > { %v2439_v40 = vrot.slane %v2438_v59, 1  ;;  %v2599_v4 = vrot.slane %v2598_v31, 1  ;;  %v2456_v7 = vadd.f32 %v2455_v26, %v2454_v12  ;;  %v2616_v24 = vadd.f32 %v2615_v42, %v2614_v23  ;;  %v6854_v23 = vld [vmem:[#allocation72_spill] sm:$0xff]  ;;  %v6856_v0 = vld [vmem:[#allocation73_spill] sm:$0xff] }
 0x28f   : > { %v2451_v54 = vrot.slane %v2450_v62, 1  ;;  %v2611_v2 = vrot.slane %v2610_v36, 1  ;;  %v2445_v57 = vrot.slane %v2444_v1, 1  ;;  %v2605_v19 = vrot.slane %v2604_v58, 1  ;;  %v6862_v42 = vld [vmem:[#allocation45_spill] sm:$0xff] }
 0x290   : > { %v2440_v37 = vadd.f32 %v2439_v40, %v2438_v59  ;;  %v2600_v45 = vadd.f32 %v2599_v4, %v2598_v31  ;;  %v2457_v14 = vrot.slane %v2456_v7, 1  ;;  %v2617_v32 = vrot.slane %v2616_v24, 1  ;;  %v6860_v31 = vld [vmem:[#allocation44_spill] sm:$0xff]  ;;  %v6865_v40 = vld [vmem:[#allocation19_spill] sm:$0xff] }
 0x291   : > { %v2452_v30 = vadd.f32 %v2451_v54, %v2450_v62  ;;  %v2612_v60 = vadd.f32 %v2611_v2, %v2610_v36  ;;  %v2446_v6 = vadd.f32 %v2445_v57, %v2444_v1  ;;  %v2606_v44 = vadd.f32 %v2605_v19, %v2604_v58  ;;  %v6864_v36 = vld [vmem:[#allocation85_spill] sm:$0xff]  ;;  %v6867_v57 = vld [vmem:[#allocation80_spill] sm:$0xff] }
 0x292   : > { %v5858_v9 = vadd.f32 %v2440_v37, %v6848_v41  ;;  %v5861_v34 = vadd.f32 %v2600_v45, %v6850_v8  ;;  %v2458_v27 = vadd.f32 %v2457_v14, %v2456_v7  ;;  %v2618_v55 = vadd.f32 %v2617_v32, %v2616_v24  ;;  %v6866_v24 = vld [vmem:[#allocation20_spill] sm:$0xff]  ;;  %v6868_v37 = vld [vmem:[#allocation81_spill] sm:$0xff]  ;;  %v6874_v8 = vld [vmem:[#allocation23_spill] sm:$0xff] }
 0x293   : > { %v5864_v12 = vadd.f32 %v2452_v30, %v6852_v48  ;;  %v5867_v15 = vadd.f32 %v2612_v60, %v6854_v23  ;;  %v5870_v18 = vadd.f32 %v2446_v6, %v6856_v0  ;;  %v5873_v59 = vadd.f32 %v2606_v44, %v6858_v28  ;;  %v6871_v30 = vld [vmem:[#allocation84_spill] sm:$0xff]  ;;  %v6872_v60 = vld [vmem:[#allocation93_spill] sm:$0xff] }
 0x294   : > { %6849 = vst [vmem:[#allocation94_spill] sm:$0xff] %v5858_v9  ;;  %6851 = vst [vmem:[#allocation95_spill] sm:$0xff] %v5861_v34  ;;  %v5876_v26 = vadd.f32 %v2458_v27, %v6860_v31  ;;  %v5879_v62 = vadd.f32 %v2618_v55, %v6862_v42  ;;  %v2367_v1 = vmul.f32 %v5575_v47, %v6864_v36  ;;  %v6869_v47 = vld [vmem:[#allocation21_spill] sm:$0xff]  ;;  %v6875_v55 = vld [vmem:[#allocation24_spill] sm:$0xff] }
 0x295   : > { %6853 = vst [vmem:[#allocation96_spill] sm:$0xff] %v5864_v12  ;;  %6855 = vst [vmem:[#allocation97_spill] sm:$0xff] %v5867_v15  ;;  %v2527_v58 = vmul.f32 %v5572_v20, %v6864_v36  ;;  %v2369_v4 = vmul.f32 %v5589_v16, %v6865_v40  ;;  %v2529_v7 = vmul.f32 %v5578_v3, %v6865_v40  ;;  %v6870_v16 = vld [vmem:[#allocation82_spill] sm:$0xff] }
 0x296   : > { %6857 = vst [vmem:[#allocation98_spill] sm:$0xff] %v5870_v18  ;;  %6859 = vst [vmem:[#allocation99_spill] sm:$0xff] %v5873_v59  ;;  %v2368_v54 = vmul.f32 %v5595_v11, %v6866_v24  ;;  %v2528_v2 = vmul.f32 %v5592_v17, %v6866_v24  ;;  %v2383_v19 = vsub.f32 %v6867_v57, %v2367_v1  ;;  %v6873_v11 = vld [vmem:[#allocation22_spill] sm:$0xff]  ;;  %v6918_v18 = vld [vmem:[#allocation87_spill] sm:$0xff] }
 0x297   : > { %6861 = vst [vmem:[#allocation100_spill] sm:$0xff] %v5876_v26  ;;  %6863 = vst [vmem:[#allocation101_spill] sm:$0xff] %v5879_v62  ;;  %v2543_v45 = vadd.f32 %v2527_v58, %v6868_v37  ;;  %v2370_v14 = vmul.f32 %v5613_v21, %v6869_v47  ;;  %v2530_v20 = vmul.f32 %v5610_v38, %v6869_v47  ;;  %v6917_v26 = vld [vmem:[#allocation86_spill] sm:$0xff] }
 0x298   : > { %v2385_v32 = vsub.f32 %v6870_v16, %v2369_v4  ;;  %v2545_v3 = vadd.f32 %v2529_v7, %v6871_v30  ;;  %v2384_v6 = vsub.f32 %v6872_v60, %v2368_v54  ;;  %v2544_v44 = vadd.f32 %v2528_v2, %v6873_v11 }
 0x299   : > { %v2459_v41 = vrot.slane %v2383_v19, 4  ;;  %v2619_v17 = vrot.slane %v2543_v45, 4  ;;  %v2386_v27 = vsub.f32 %v6874_v8, %v2370_v14  ;;  %v2546_v48 = vadd.f32 %v2530_v20, %v6875_v55 }
 0x29a   : > { %v2471_v23 = vrot.slane %v2385_v32, 4  ;;  %v2631_v0 = vrot.slane %v2545_v3, 4  ;;  %v2465_v21 = vrot.slane %v2384_v6, 4  ;;  %v2625_v28 = vrot.slane %v2544_v44, 4 }
 0x29b   : > { %v2460_v31 = vadd.f32 %v2459_v41, %v2383_v19  ;;  %v2620_v38 = vadd.f32 %v2619_v17, %v2543_v45  ;;  %v2477_v42 = vrot.slane %v2386_v27, 4  ;;  %v2637_v36 = vrot.slane %v2546_v48, 4 }
 0x29c   : > { %v2472_v1 = vadd.f32 %v2471_v23, %v2385_v32  ;;  %v2632_v58 = vadd.f32 %v2631_v0, %v2545_v3  ;;  %v2466_v40 = vadd.f32 %v2465_v21, %v2384_v6  ;;  %v2626_v4 = vadd.f32 %v2625_v28, %v2544_v44 }
 0x29d   : > { %v2461_v7 = vrot.slane %v2460_v31, 2  ;;  %v2621_v24 = vrot.slane %v2620_v38, 2  ;;  %v2478_v54 = vadd.f32 %v2477_v42, %v2386_v27  ;;  %v2638_v2 = vadd.f32 %v2637_v36, %v2546_v48  ;;  %v6876_v36 = vld [vmem:[#allocation52_spill] sm:$0xff] }
 0x29e   : > { %v2473_v57 = vrot.slane %v2472_v1, 2  ;;  %v2633_v37 = vrot.slane %v2632_v58, 2  ;;  %v2467_v47 = vrot.slane %v2466_v40, 2  ;;  %v2627_v14 = vrot.slane %v2626_v4, 2 }
 0x29f   : > { %v2462_v20 = vadd.f32 %v2461_v7, %v2460_v31  ;;  %v2622_v16 = vadd.f32 %v2621_v24, %v2620_v38  ;;  %v2479_v30 = vrot.slane %v2478_v54, 2  ;;  %v2639_v60 = vrot.slane %v2638_v2, 2  ;;  %v5912_v24 = vld [vmem:[%s4123_s13 + $0x80] sm:$0xff] }
 0x2a0   : > { %v2474_v19 = vadd.f32 %v2473_v57, %v2472_v1  ;;  %v2634_v45 = vadd.f32 %v2633_v37, %v2632_v58  ;;  %v2468_v11 = vadd.f32 %v2467_v47, %v2466_v40  ;;  %v2628_v41 = vadd.f32 %v2627_v14, %v2626_v4  ;;  %v6878_v58 = vld [vmem:[#allocation53_spill] sm:$0xff]  ;;  %v6884_v14 = vld [vmem:[#allocation90_spill] sm:$0xff] }
 0x2a1   : > { %v2463_v32 = vrot.slane %v2462_v20, 1  ;;  %v2623_v3 = vrot.slane %v2622_v16, 1  ;;  %v2480_v6 = vadd.f32 %v2479_v30, %v2478_v54  ;;  %v2640_v44 = vadd.f32 %v2639_v60, %v2638_v2  ;;  %v5915_v54 = vld [vmem:[%s4442_s5 + $0x80] sm:$0xff]  ;;  %v6882_v37 = vld [vmem:[#allocation89_spill] sm:$0xff] }
 0x2a2   : > { %v2475_v17 = vrot.slane %v2474_v19, 1  ;;  %v2635_v8 = vrot.slane %v2634_v45, 1  ;;  %v2469_v27 = vrot.slane %v2468_v11, 1  ;;  %v2629_v55 = vrot.slane %v2628_v41, 1  ;;  %v6880_v2 = vld [vmem:[#allocation55_spill] sm:$0xff]  ;;  %v5930_v60 = vld [vmem:[%s4123_s13 + $0x90] sm:$0xff] }
 0x2a3   : > { %v2464_v48 = vadd.f32 %v2463_v32, %v2462_v20  ;;  %v2624_v23 = vadd.f32 %v2623_v3, %v2622_v16  ;;  %v2481_v0 = vrot.slane %v2480_v6, 1  ;;  %v2641_v21 = vrot.slane %v2640_v44, 1  ;;  %v6886_v16 = vld [vmem:[#allocation91_spill] sm:$0xff]  ;;  %v6890_v32 = vld [vmem:[#allocation57_spill] sm:$0xff] }
 0x2a4   : > { %v2476_v28 = vadd.f32 %v2475_v17, %v2474_v19  ;;  %v2636_v31 = vadd.f32 %v2635_v8, %v2634_v45  ;;  %v2470_v38 = vadd.f32 %v2469_v27, %v2468_v11  ;;  %v2630_v42 = vadd.f32 %v2629_v55, %v2628_v41  ;;  %v5933_v19 = vld [vmem:[%s4442_s5 + $0x90] sm:$0xff]  ;;  %v5936_v45 = vld [vmem:[%s4123_s13 + $0x88] sm:$0xff]  ;;  %v6888_v11 = vld [vmem:[#allocation54_spill] sm:$0xff] }
 0x2a5   : > { %v5906_v1 = vadd.f32 %v2464_v48, %v6876_v36  ;;  %v5909_v40 = vadd.f32 %v2624_v23, %v6878_v58  ;;  %v2482_v4 = vadd.f32 %v2481_v0, %v2480_v6  ;;  %v2642_v7 = vadd.f32 %v2641_v21, %v2640_v44  ;;  %v5945_v6 = vld [vmem:[%s4442_s5 + $0x88] sm:$0xff]  ;;  %v5948_v44 = vld [vmem:[%s4123_s13 + $0x98] sm:$0xff]  ;;  %v6893_v48 = vld [vmem:[#allocation61_spill] sm:$0xff]  ;;  %s3619_s13 = sshll.u32 %s3939_s19, 9 }
 0x2a6   : > { %v5918_v57 = vadd.f32 %v2476_v28, %v6880_v2  ;;  %v5921_v47 = vadd.f32 %v2636_v31, %v6882_v37  ;;  %v5924_v20 = vadd.f32 %v2470_v38, %v6884_v14  ;;  %v5927_v30 = vadd.f32 %v2630_v42, %v6886_v16  ;;  %v5951_v17 = vld [vmem:[%s4442_s5 + $0x98] sm:$0xff]  ;;  %v6892_v8 = vld [vmem:[#allocation60_spill] sm:$0xff]  ;;  %v6895_v38 = vld [vmem:[#allocation63_spill] sm:$0xff]  ;;  %s6278_s23 = scalar_lea.hbm %s6329_s4, %s3619_s13 }
 0x2a7   : > { %6877 = vst [vmem:[#allocation36_spill] sm:$0xff] %v5906_v1  ;;  %6879 = vst [vmem:[#allocation37_spill] sm:$0xff] %v5909_v40  ;;  %v5939_v41 = vadd.f32 %v2482_v4, %v6888_v11  ;;  %v5942_v3 = vadd.f32 %v2642_v7, %v6890_v32  ;;  %v2928_v27 = vmul.f32 %v5912_v24, %v6892_v8  ;;  %v6894_v21 = vld [vmem:[#allocation62_spill] sm:$0xff]  ;;  %v6896_v58 = vld [vmem:[#allocation64_spill] sm:$0xff] }
 0x2a8   : > { %6881 = vst [vmem:[#allocation38_spill] sm:$0xff] %v5918_v57  ;;  %6883 = vst [vmem:[#allocation39_spill] sm:$0xff] %v5921_v47  ;;  %v3088_v55 = vmul.f32 %v5915_v54, %v6892_v8  ;;  %v2930_v23 = vmul.f32 %v5930_v60, %v6893_v48  ;;  %v3090_v0 = vmul.f32 %v5933_v19, %v6893_v48  ;;  %v6897_v2 = vld [vmem:[#allocation71_spill] sm:$0xff]  ;;  %v6898_v16 = vld [vmem:[#allocation74_spill] sm:$0xff] }
 0x2a9   : > { %6885 = vst [vmem:[#allocation40_spill] sm:$0xff] %v5924_v20  ;;  %6887 = vst [vmem:[#allocation41_spill] sm:$0xff] %v5927_v30  ;;  %v2929_v28 = vmul.f32 %v5936_v45, %v6894_v21  ;;  %v3089_v31 = vmul.f32 %v5945_v6, %v6894_v21  ;;  %v2931_v42 = vmul.f32 %v5948_v44, %v6895_v38  ;;  %v6899_v8 = vld [vmem:[#allocation75_spill] sm:$0xff]  ;;  %v6906_v30 = vld [vmem:[#allocation30_spill] sm:$0xff] }
 0x2aa   : > { %6889 = vst [vmem:[#allocation42_spill] sm:$0xff] %v5939_v41  ;;  %6891 = vst [vmem:[#allocation34_spill] sm:$0xff] %v5942_v3  ;;  %v3091_v36 = vmul.f32 %v5951_v17, %v6895_v38  ;;  %v5971_v4 = vmul.f32 %v5912_v24, %v6896_v58  ;;  %v5975_v7 = vmul.f32 %v5915_v54, %v6896_v58  ;;  %v6900_v38 = vld [vmem:[#allocation76_spill] sm:$0xff]  ;;  %v6903_v3 = vld [vmem:[#allocation77_spill] sm:$0xff] }
 0x2ab   : > { %v5979_v37 = vmul.f32 %v5930_v60, %v6897_v2  ;;  %v5983_v14 = vmul.f32 %v5933_v19, %v6897_v2  ;;  %v5987_v11 = vmul.f32 %v5936_v45, %v6898_v16  ;;  %v5991_v32 = vmul.f32 %v5945_v6, %v6898_v16  ;;  %v6909_v47 = vld [vmem:[#allocation78_spill] sm:$0xff]  ;;  %v6912_v40 = vld [vmem:[#allocation31_spill] sm:$0xff] }
 0x2ac   : > { %v5995_v48 = vmul.f32 %v5948_v44, %v6899_v8  ;;  %v5999_v21 = vmul.f32 %v5951_v17, %v6899_v8  ;;  %v6003_v58 = vmul.f32 %v5912_v24, %v6900_v38  ;;  %v6007_v2 = vmul.f32 %v5915_v54, %v6900_v38 }
 0x2ad   : > { %v6011_v16 = vmul.f32 %v5930_v60, %v6903_v3  ;;  %v6015_v41 = vmul.f32 %v5933_v19, %v6903_v3  ;;  %v6019_v8 = vmul.f32 %v5936_v45, %v6906_v30  ;;  %v6023_v20 = vmul.f32 %v5945_v6, %v6906_v30 }
 0x2ae   : > { %6901 = vst [vmem:[#allocation35_spill] sm:$0xff] %v6003_v58  ;;  %6902 = vst [vmem:[#allocation56_spill] sm:$0xff] %v6007_v2  ;;  %v6027_v38 = vmul.f32 %v5948_v44, %v6909_v47  ;;  %v6031_v57 = vmul.f32 %v5951_v17, %v6909_v47  ;;  %v6035_v3 = vmul.f32 %v5912_v24, %v6912_v40 }
 0x2af   : > { %6904 = vst [vmem:[#allocation46_spill] sm:$0xff] %v6011_v16  ;;  %6905 = vst [vmem:[#allocation47_spill] sm:$0xff] %v6015_v41  ;;  %v6039_v1 = vmul.f32 %v5915_v54, %v6912_v40  ;;  %v2944_v30 = vmul.f32 %v5915_v54, %v6915_v10  ;;  %v3104_v63 = vmul.f32 %v5912_v24, %v6915_v10 }
 0x2b0   : > { %6907 = vst [vmem:[#allocation15_spill] sm:$0xff] %v6019_v8  ;;  %6908 = vst [vmem:[#allocation16_spill] sm:$0xff] %v6023_v20  ;;  %v2946_v62 = vmul.f32 %v5933_v19, %v6916_v46  ;;  %v3106_v47 = vmul.f32 %v5930_v60, %v6916_v46  ;;  %v2945_v59 = vmul.f32 %v5945_v6, %v6917_v26 }
 0x2b1   : > { %6910 = vst [vmem:[#allocation48_spill] sm:$0xff] %v6027_v38  ;;  %6911 = vst [vmem:[#allocation17_spill] sm:$0xff] %v6031_v57  ;;  %v2960_v40 = vsub.f32 %v2928_v27, %v2944_v30  ;;  %v2947_v15 = vmul.f32 %v5951_v17, %v6918_v18  ;;  %v3107_v10 = vmul.f32 %v5948_v44, %v6918_v18 }
 0x2b2   : > { %6913 = vst [vmem:[#allocation18_spill] sm:$0xff] %v6035_v3  ;;  %6914 = vst [vmem:[#allocation32_spill] sm:$0xff] %v6039_v1  ;;  %v3105_v3 = vmul.f32 %v5936_v45, %v6917_v26  ;;  %v3120_v1 = vadd.f32 %v3104_v63, %v3088_v55  ;;  %v2962_v12 = vsub.f32 %v2930_v23, %v2946_v62 }
 0x2b3   : > { %v3122_v34 = vadd.f32 %v3106_v47, %v3090_v0  ;;  %v2961_v9 = vsub.f32 %v2929_v28, %v2945_v59  ;;  %v2976_v38 = vrot.slane %v2960_v40, 4  ;;  %v2963_v20 = vsub.f32 %v2931_v42, %v2947_v15 }
 0x2b4   : > { %v3121_v57 = vadd.f32 %v3105_v3, %v3089_v31  ;;  %v3136_v46 = vrot.slane %v3120_v1, 4  ;;  %v3123_v8 = vadd.f32 %v3107_v10, %v3091_v36  ;;  %v2988_v41 = vrot.slane %v2962_v12, 4 }
 0x2b5   : > { %v3148_v16 = vrot.slane %v3122_v34, 4  ;;  %v2982_v2 = vrot.slane %v2961_v9, 4  ;;  %v2977_v27 = vadd.f32 %v2976_v38, %v2960_v40  ;;  %v2994_v55 = vrot.slane %v2963_v20, 4 }
 0x2b6   : > { %v3142_v26 = vrot.slane %v3121_v57, 4  ;;  %v3137_v63 = vadd.f32 %v3136_v46, %v3120_v1  ;;  %v3154_v30 = vrot.slane %v3123_v8, 4  ;;  %v2989_v58 = vadd.f32 %v2988_v41, %v2962_v12 }
 0x2b7   : > { %v3149_v22 = vadd.f32 %v3148_v16, %v3122_v34  ;;  %v2983_v25 = vadd.f32 %v2982_v2, %v2961_v9  ;;  %v2978_v62 = vrot.slane %v2977_v27, 2  ;;  %v2995_v59 = vadd.f32 %v2994_v55, %v2963_v20 }
 0x2b8   : > { %v3143_v18 = vadd.f32 %v3142_v26, %v3121_v57  ;;  %v3138_v23 = vrot.slane %v3137_v63, 2  ;;  %v3155_v0 = vadd.f32 %v3154_v30, %v3123_v8  ;;  %v2990_v28 = vrot.slane %v2989_v58, 2 }
 0x2b9   : > { %v3150_v31 = vrot.slane %v3149_v22, 2  ;;  %v2984_v15 = vrot.slane %v2983_v25, 2  ;;  %v2979_v36 = vadd.f32 %v2978_v62, %v2977_v27  ;;  %v2996_v47 = vrot.slane %v2995_v59, 2 }
 0x2ba   : > { %v3144_v42 = vrot.slane %v3143_v18, 2  ;;  %v3139_v3 = vadd.f32 %v3138_v23, %v3137_v63  ;;  %v3156_v10 = vrot.slane %v3155_v0, 2  ;;  %v2991_v38 = vadd.f32 %v2990_v28, %v2989_v58 }
 0x2bb   : > { %v3151_v1 = vadd.f32 %v3150_v31, %v3149_v22  ;;  %v2985_v40 = vadd.f32 %v2984_v15, %v2983_v25  ;;  %v2980_v12 = vrot.slane %v2979_v36, 1  ;;  %v2997_v9 = vadd.f32 %v2996_v47, %v2995_v59  ;;  %v6919_v15 = vld [vmem:[#allocation65_spill] sm:$0xff] }
 0x2bc   : > { %v3145_v46 = vadd.f32 %v3144_v42, %v3143_v18  ;;  %v3140_v34 = vrot.slane %v3139_v3, 1  ;;  %v3157_v57 = vadd.f32 %v3156_v10, %v3155_v0  ;;  %v2992_v41 = vrot.slane %v2991_v38, 1  ;;  %v6922_v10 = vld [vmem:[#allocation88_spill] sm:$0xff] }
 0x2bd   : > { %v3152_v2 = vrot.slane %v3151_v1, 1  ;;  %v2986_v20 = vrot.slane %v2985_v40, 1  ;;  %v2981_v8 = vadd.f32 %v2980_v12, %v2979_v36  ;;  %v2998_v55 = vrot.slane %v2997_v9, 1  ;;  %v6923_v12 = vld [vmem:[#allocation67_spill] sm:$0xff] }
 0x2be   : > { %v3146_v16 = vrot.slane %v3145_v46, 1  ;;  %v3141_v26 = vadd.f32 %v3140_v34, %v3139_v3  ;;  %v3158_v30 = vrot.slane %v3157_v57, 1  ;;  %v2993_v27 = vadd.f32 %v2992_v41, %v2991_v38 }
 0x2bf   : > { %v3153_v63 = vadd.f32 %v3152_v2, %v3151_v1  ;;  %v2987_v62 = vadd.f32 %v2986_v20, %v2985_v40  ;;  %v6058_v22 = vadd.f32 %v2981_v8, %v5762_v51  ;;  %v2999_v58 = vadd.f32 %v2998_v55, %v2997_v9 }
 0x2c0   : > { %v3147_v23 = vadd.f32 %v3146_v16, %v3145_v46  ;;  %v6061_v25 = vadd.f32 %v3141_v26, %v5765_v39  ;;  %v3159_v18 = vadd.f32 %v3158_v30, %v3157_v57  ;;  %v6064_v59 = vadd.f32 %v2993_v27, %v5768_v61 }
 0x2c1   : > { %v6067_v0 = vadd.f32 %v3153_v63, %v5771_v43  ;;  %v6070_v28 = vadd.f32 %v2987_v62, %v5774_v50  ;;  %v6076_v51 = vadd.f32 %v2999_v58, %v5780_v13  ;;  %v2948_v42 = vmul.f32 %v5915_v54, %v6919_v15  ;;  %v6920_v43 = vld [vmem:[#allocation102_spill] sm:$0xff] }
 0x2c2   : > { %v6073_v31 = vadd.f32 %v3147_v23, %v5777_v56  ;;  %v6079_v39 = vadd.f32 %v3159_v18, %v5783_v49  ;;  %v3108_v61 = vmul.f32 %v5912_v24, %v6919_v15  ;;  %v6087_v36 = vmul.f32 %v5930_v60, %v6920_v43  ;;  %v6921_v56 = vld [vmem:[#allocation66_spill] sm:$0xff] }
 0x2c3   : > { %v6091_v50 = vmul.f32 %v5933_v19, %v6920_v43  ;;  %v2950_v13 = vmul.f32 %v5933_v19, %v6921_v56  ;;  %v3110_v49 = vmul.f32 %v5930_v60, %v6921_v56  ;;  %v2964_v3 = vsub.f32 %v5971_v4, %v2948_v42 }
 0x2c4   : > { %v3124_v47 = vadd.f32 %v3108_v61, %v5975_v7  ;;  %v2949_v38 = vmul.f32 %v5945_v6, %v6922_v10  ;;  %v3109_v1 = vmul.f32 %v5936_v45, %v6922_v10  ;;  %v2951_v34 = vmul.f32 %v5951_v17, %v6923_v12 }
 0x2c5   : > { %v2966_v40 = vsub.f32 %v5979_v37, %v2950_v13  ;;  %v3126_v46 = vadd.f32 %v3110_v49, %v5983_v14  ;;  %v3111_v9 = vmul.f32 %v5948_v44, %v6923_v12  ;;  %v3000_v57 = vrot.slane %v2964_v3, 4 }
 0x2c6   : > { %v3160_v4 = vrot.slane %v3124_v47, 4  ;;  %v2965_v7 = vsub.f32 %v5987_v11, %v2949_v38  ;;  %v3125_v41 = vadd.f32 %v3109_v1, %v5991_v32  ;;  %v2967_v16 = vsub.f32 %v5995_v48, %v2951_v34 }
 0x2c7   : > { %v3012_v2 = vrot.slane %v2966_v40, 4  ;;  %v3172_v20 = vrot.slane %v3126_v46, 4  ;;  %v3127_v37 = vadd.f32 %v3111_v9, %v5999_v21  ;;  %v3001_v8 = vadd.f32 %v3000_v57, %v2964_v3 }
 0x2c8   : > { %v3161_v14 = vadd.f32 %v3160_v4, %v3124_v47  ;;  %v3006_v26 = vrot.slane %v2965_v7, 4  ;;  %v3166_v55 = vrot.slane %v3125_v41, 4  ;;  %v3018_v63 = vrot.slane %v2967_v16, 4 }
 0x2c9   : > { %v3013_v30 = vadd.f32 %v3012_v2, %v2966_v40  ;;  %v3173_v27 = vadd.f32 %v3172_v20, %v3126_v46  ;;  %v3178_v62 = vrot.slane %v3127_v37, 4  ;;  %v3002_v23 = vrot.slane %v3001_v8, 2 }
 0x2ca   : > { %v3162_v11 = vrot.slane %v3161_v14, 2  ;;  %v3007_v58 = vadd.f32 %v3006_v26, %v2965_v7  ;;  %v3167_v32 = vadd.f32 %v3166_v55, %v3125_v41  ;;  %v3019_v42 = vadd.f32 %v3018_v63, %v2967_v16 }
 0x2cb   : > { %v3014_v18 = vrot.slane %v3013_v30, 2  ;;  %v3174_v15 = vrot.slane %v3173_v27, 2  ;;  %v3179_v48 = vadd.f32 %v3178_v62, %v3127_v37  ;;  %v3003_v61 = vadd.f32 %v3002_v23, %v3001_v8 }
 0x2cc   : > { %v3163_v21 = vadd.f32 %v3162_v11, %v3161_v14  ;;  %v3008_v43 = vrot.slane %v3007_v58, 2  ;;  %v3168_v56 = vrot.slane %v3167_v32, 2  ;;  %v3020_v3 = vrot.slane %v3019_v42, 2 }
 0x2cd   : > { %v3015_v13 = vadd.f32 %v3014_v18, %v3013_v30  ;;  %v3175_v49 = vadd.f32 %v3174_v15, %v3173_v27  ;;  %v3180_v47 = vrot.slane %v3179_v48, 2  ;;  %v3004_v10 = vrot.slane %v3003_v61, 1 }
 0x2ce   : > { %v3164_v38 = vrot.slane %v3163_v21, 1  ;;  %v3009_v1 = vadd.f32 %v3008_v43, %v3007_v58  ;;  %v3169_v40 = vadd.f32 %v3168_v56, %v3167_v32  ;;  %v3021_v34 = vadd.f32 %v3020_v3, %v3019_v42  ;;  %v6929_v43 = vld [vmem:[#allocation56_spill] sm:$0xff] }
 0x2cf   : > { %v3016_v46 = vrot.slane %v3015_v13, 1  ;;  %v3176_v12 = vrot.slane %v3175_v49, 1  ;;  %v3181_v9 = vadd.f32 %v3180_v47, %v3179_v48  ;;  %v3005_v57 = vadd.f32 %v3004_v10, %v3003_v61  ;;  %v6928_v61 = vld [vmem:[#allocation35_spill] sm:$0xff]  ;;  %v6931_v47 = vld [vmem:[#allocation92_spill] sm:$0xff] }
 0x2d0   : > { %v3165_v4 = vadd.f32 %v3164_v38, %v3163_v21  ;;  %v3010_v7 = vrot.slane %v3009_v1, 1  ;;  %v3170_v41 = vrot.slane %v3169_v40, 1  ;;  %v3022_v16 = vrot.slane %v3021_v34, 1  ;;  %v6932_v38 = vld [vmem:[#allocation58_spill] sm:$0xff] }
 0x2d1   : > { %v3017_v2 = vadd.f32 %v3016_v46, %v3015_v13  ;;  %v3177_v20 = vadd.f32 %v3176_v12, %v3175_v49  ;;  %v3182_v37 = vrot.slane %v3181_v9, 1  ;;  %v3076_v8 = vadd.f32 %v3005_v57, %v5810_v33  ;;  %v6930_v13 = vld [vmem:[#allocation51_spill] sm:$0xff]  ;;  %v6933_v12 = vld [vmem:[#allocation46_spill] sm:$0xff] }
 0x2d2   : > { %v3236_v14 = vadd.f32 %v3165_v4, %v5813_v35  ;;  %v3011_v26 = vadd.f32 %v3010_v7, %v3009_v1  ;;  %v3171_v55 = vadd.f32 %v3170_v41, %v3169_v40  ;;  %v3023_v63 = vadd.f32 %v3022_v16, %v3021_v34  ;;  %v6935_v4 = vld [vmem:[#allocation15_spill] sm:$0xff]  ;;  %v6936_v41 = vld [vmem:[#allocation16_spill] sm:$0xff] }
 0x2d3   : > { %v3078_v30 = vadd.f32 %v3017_v2, %v5816_v5  ;;  %v3238_v27 = vadd.f32 %v3177_v20, %v5819_v52  ;;  %v3183_v62 = vadd.f32 %v3182_v37, %v3181_v9  ;;  %v6119_v23 = vsel %vm3264_vm1, %v3076_v8, %v6058_v22  ;;  %v6924_v52 = vld [vmem:[#allocation28_spill] sm:$0xff]  ;;  %v6925_v22 = vld [vmem:[#allocation29_spill] sm:$0xff]  ;;  %v6934_v9 = vld [vmem:[#allocation47_spill] sm:$0xff] }
 0x2d4   : > { %v6123_v11 = vsel %vm3303_vm2, %v3236_v14, %v6061_v25  ;;  %v3077_v33 = vadd.f32 %v3011_v26, %v5822_v29  ;;  %v3237_v35 = vadd.f32 %v3171_v55, %v5825_v53  ;;  %v3079_v32 = vadd.f32 %v3023_v63, %v6924_v52  ;;  %v6926_v53 = vld [vmem:[#allocation50_spill] sm:$0xff]  ;;  %v6937_v20 = vld [vmem:[#allocation48_spill] sm:$0xff]  ;;  %v6938_v37 = vld [vmem:[#allocation17_spill] sm:$0xff] }
 0x2d5   : > { %v6129_v58 = vsel %vm3264_vm1, %v3078_v30, %v6064_v59  ;;  %v6133_v5 = vsel %vm3303_vm2, %v3238_v27, %v6067_v0  ;;  %v3239_v18 = vadd.f32 %v3183_v62, %v6925_v22  ;;  %v2952_v59 = vmul.f32 %v5915_v54, %v6926_v53  ;;  %v6927_v0 = vld [vmem:[#allocation103_spill] sm:$0xff] }
 0x2d6   : > { %v6139_v25 = vsel %vm3264_vm1, %v3077_v33, %v6070_v28  ;;  %v6143_v29 = vsel %vm3303_vm2, %v3237_v35, %v6073_v31  ;;  %v3112_v15 = vmul.f32 %v5912_v24, %v6926_v53  ;;  %v6151_v42 = vmul.f32 %v5936_v45, %v6927_v0 }
 0x2d7   : > { %v6155_v48 = vmul.f32 %v5945_v6, %v6927_v0  ;;  %v6159_v28 = vsel %vm3264_vm1, %v3079_v32, %v6076_v51  ;;  %v6163_v31 = vsel %vm3303_vm2, %v3239_v18, %v6079_v39  ;;  %v2968_v21 = vsub.f32 %v6928_v61, %v2952_v59 }
 0x2d8   : > { %v3128_v56 = vadd.f32 %v3112_v15, %v6929_v43  ;;  %v2954_v49 = vmul.f32 %v5933_v19, %v6930_v13  ;;  %v3114_v3 = vmul.f32 %v5930_v60, %v6930_v13  ;;  %v2953_v10 = vmul.f32 %v5945_v6, %v6931_v47 }
 0x2d9   : > { %v3113_v51 = vmul.f32 %v5936_v45, %v6931_v47  ;;  %v2955_v39 = vmul.f32 %v5951_v17, %v6932_v38  ;;  %v3115_v1 = vmul.f32 %v5948_v44, %v6932_v38  ;;  %v3024_v40 = vrot.slane %v2968_v21, 4 }
 0x2da   : > { %v3184_v46 = vrot.slane %v3128_v56, 4  ;;  %v2970_v34 = vsub.f32 %v6933_v12, %v2954_v49  ;;  %v3130_v57 = vadd.f32 %v3114_v3, %v6934_v9  ;;  %v2969_v7 = vsub.f32 %v6935_v4, %v2953_v10 }
 0x2db   : > { %v3129_v2 = vadd.f32 %v3113_v51, %v6936_v41  ;;  %v2971_v16 = vsub.f32 %v6937_v20, %v2955_v39  ;;  %v3131_v8 = vadd.f32 %v3115_v1, %v6938_v37  ;;  %v3025_v14 = vadd.f32 %v3024_v40, %v2968_v21  ;;  %v6939_v20 = vld [vmem:[#allocation94_spill] sm:$0xff]  ;;  %v6940_v37 = vld [vmem:[#allocation95_spill] sm:$0xff] }
 0x2dc   : > { %v3185_v26 = vadd.f32 %v3184_v46, %v3128_v56  ;;  %v3036_v55 = vrot.slane %v2970_v34, 4  ;;  %v3196_v30 = vrot.slane %v3130_v57, 4  ;;  %v3030_v27 = vrot.slane %v2969_v7, 4 }
 0x2dd   : > { %v3190_v63 = vrot.slane %v3129_v2, 4  ;;  %v3042_v62 = vrot.slane %v2971_v16, 4  ;;  %v3202_v33 = vrot.slane %v3131_v8, 4  ;;  %v3026_v35 = vrot.slane %v3025_v14, 2 }
 0x2de   : > { %v3186_v52 = vrot.slane %v3185_v26, 2  ;;  %v3037_v32 = vadd.f32 %v3036_v55, %v2970_v34  ;;  %v3197_v22 = vadd.f32 %v3196_v30, %v3130_v57  ;;  %v3031_v18 = vadd.f32 %v3030_v27, %v2969_v7 }
 0x2df   : > { %v3191_v53 = vadd.f32 %v3190_v63, %v3129_v2  ;;  %v3043_v59 = vadd.f32 %v3042_v62, %v2971_v16  ;;  %v3203_v15 = vadd.f32 %v3202_v33, %v3131_v8  ;;  %v3027_v0 = vadd.f32 %v3026_v35, %v3025_v14  ;;  %v6941_v35 = vld [vmem:[#allocation96_spill] sm:$0xff] }
 0x2e0   : > { %v3187_v61 = vadd.f32 %v3186_v52, %v3185_v26  ;;  %v3038_v21 = vrot.slane %v3037_v32, 2  ;;  %v3198_v43 = vrot.slane %v3197_v22, 2  ;;  %v3032_v56 = vrot.slane %v3031_v18, 2 }
 0x2e1   : > { %v3192_v13 = vrot.slane %v3191_v53, 2  ;;  %v3044_v49 = vrot.slane %v3043_v59, 2  ;;  %v3204_v3 = vrot.slane %v3203_v15, 2  ;;  %v3028_v47 = vrot.slane %v3027_v0, 1 }
 0x2e2   : > { %v3188_v10 = vrot.slane %v3187_v61, 1  ;;  %v3039_v51 = vadd.f32 %v3038_v21, %v3037_v32  ;;  %v3199_v38 = vadd.f32 %v3198_v43, %v3197_v22  ;;  %v3033_v39 = vadd.f32 %v3032_v56, %v3031_v18  ;;  %v6942_v32 = vld [vmem:[#allocation97_spill] sm:$0xff]  ;;  %v6943_v18 = vld [vmem:[#allocation98_spill] sm:$0xff]  ;;  %v6947_v56 = vld [vmem:[#allocation59_spill] sm:$0xff] }
 0x2e3   : > { %v3193_v1 = vadd.f32 %v3192_v13, %v3191_v53  ;;  %v3045_v40 = vadd.f32 %v3044_v49, %v3043_v59  ;;  %v3205_v46 = vadd.f32 %v3204_v3, %v3203_v15  ;;  %v3029_v12 = vadd.f32 %v3028_v47, %v3027_v0  ;;  %v6944_v59 = vld [vmem:[#allocation99_spill] sm:$0xff]  ;;  %v6945_v0 = vld [vmem:[#allocation100_spill] sm:$0xff]  ;;  %v6946_v21 = vld [vmem:[#allocation101_spill] sm:$0xff] }
 0x2e4   : > { %v3189_v34 = vadd.f32 %v3188_v10, %v3187_v61  ;;  %v3040_v9 = vrot.slane %v3039_v51, 1  ;;  %v3200_v57 = vrot.slane %v3199_v38, 1  ;;  %v3034_v4 = vrot.slane %v3033_v39, 1 }
 0x2e5   : > { %v3194_v7 = vrot.slane %v3193_v1, 1  ;;  %v3046_v41 = vrot.slane %v3045_v40, 1  ;;  %v3206_v2 = vrot.slane %v3205_v46, 1  ;;  %v3080_v16 = vadd.f32 %v3029_v12, %v6939_v20 }
 0x2e6   : > { %v3240_v8 = vadd.f32 %v3189_v34, %v6940_v37  ;;  %v3041_v14 = vadd.f32 %v3040_v9, %v3039_v51  ;;  %v3201_v26 = vadd.f32 %v3200_v57, %v3199_v38  ;;  %v3035_v55 = vadd.f32 %v3034_v4, %v3033_v39  ;;  %v6950_v38 = vld [vmem:[#allocation32_spill] sm:$0xff]  ;;  %v6953_v9 = vld [vmem:[#allocation27_spill] sm:$0xff] }
 0x2e7   : > { %v3195_v30 = vadd.f32 %v3194_v7, %v3193_v1  ;;  %v3047_v27 = vadd.f32 %v3046_v41, %v3045_v40  ;;  %v3207_v63 = vadd.f32 %v3206_v2, %v3205_v46  ;;  %v6189_v62 = vsel %vm3266_vm3, %v3080_v16, %v6119_v23  ;;  %v6952_v40 = vld [vmem:[#allocation26_spill] sm:$0xff] }
 0x2e8   : > { %v6193_v33 = vsel %vm3305_vm4, %v3240_v8, %v6123_v11  ;;  %v3082_v52 = vadd.f32 %v3041_v14, %v6941_v35  ;;  %v3242_v22 = vadd.f32 %v3201_v26, %v6942_v32  ;;  %v3081_v53 = vadd.f32 %v3035_v55, %v6943_v18 }
 0x2e9   : > { %v3241_v15 = vadd.f32 %v3195_v30, %v6944_v59  ;;  %v3083_v61 = vadd.f32 %v3047_v27, %v6945_v0  ;;  %v3243_v43 = vadd.f32 %v3207_v63, %v6946_v21  ;;  %v2956_v13 = vmul.f32 %v5915_v54, %v6947_v56  ;;  %v6948_v54 = vld [vmem:[#allocation104_spill] sm:$0xff] }
 0x2ea   : > { %v6203_v23 = vsel %vm3266_vm3, %v3082_v52, %v6129_v58  ;;  %v6207_v11 = vsel %vm3305_vm4, %v3242_v22, %v6133_v5  ;;  %v3116_v49 = vmul.f32 %v5912_v24, %v6947_v56  ;;  %v6215_v3 = vsel %vm3266_vm3, %v3081_v53, %v6139_v25  ;;  %v6949_v25 = vld [vmem:[#allocation18_spill] sm:$0xff] }
 0x2eb   : > { %v6219_v47 = vsel %vm3305_vm4, %v3241_v15, %v6143_v29  ;;  %v6223_v58 = vsel %vm3266_vm3, %v3083_v61, %v6159_v28  ;;  %v6227_v5 = vsel %vm3305_vm4, %v3243_v43, %v6163_v31  ;;  %v2943_v10 = vmul.f32 %v5948_v44, %v6948_v54  ;;  %v6951_v29 = vld [vmem:[#allocation25_spill] sm:$0xff] }
 0x2ec   : > { %v3103_v24 = vmul.f32 %v5951_v17, %v6948_v54  ;;  %v2972_v51 = vsub.f32 %v6949_v25, %v2956_v13  ;;  %v3132_v39 = vadd.f32 %v3116_v49, %v6950_v38  ;;  %v2958_v1 = vmul.f32 %v5933_v19, %v6951_v29 }
 0x2ed   : > { %v3118_v28 = vmul.f32 %v5930_v60, %v6951_v29  ;;  %v2957_v31 = vmul.f32 %v5945_v6, %v6952_v40  ;;  %v3117_v46 = vmul.f32 %v5936_v45, %v6952_v40  ;;  %v2959_v57 = vmul.f32 %v5951_v17, %v6953_v9 }
 0x2ee   : > { %v3048_v12 = vrot.slane %v2972_v51, 4  ;;  %v3208_v34 = vrot.slane %v3132_v39, 4  ;;  %v3119_v4 = vmul.f32 %v5948_v44, %v6953_v9  ;;  %v2974_v7 = vsub.f32 %v6087_v36, %v2958_v1  ;;  %v6955_v1 = vld [vmem:[#allocation37_spill] sm:$0xff] }
 0x2ef   : > { %v3134_v19 = vadd.f32 %v3118_v28, %v6091_v50  ;;  %v2973_v60 = vsub.f32 %v6151_v42, %v2957_v31  ;;  %v3133_v41 = vadd.f32 %v3117_v46, %v6155_v48  ;;  %v2975_v20 = vsub.f32 %v2943_v10, %v2959_v57 }
 0x2f0   : > { %v3049_v6 = vadd.f32 %v3048_v12, %v2972_v51  ;;  %v3209_v2 = vadd.f32 %v3208_v34, %v3132_v39  ;;  %v3135_v45 = vadd.f32 %v3119_v4, %v3103_v24  ;;  %v3060_v16 = vrot.slane %v2974_v7, 4  ;;  %v6954_v39 = vld [vmem:[#allocation36_spill] sm:$0xff] }
 0x2f1   : > { %v3220_v37 = vrot.slane %v3134_v19, 4  ;;  %v3054_v17 = vrot.slane %v2973_v60, 4  ;;  %v3214_v8 = vrot.slane %v3133_v41, 4  ;;  %v3066_v36 = vrot.slane %v2975_v20, 4 }
 0x2f2   : > { %v3050_v14 = vrot.slane %v3049_v6, 2  ;;  %v3210_v44 = vrot.slane %v3209_v2, 2  ;;  %v3226_v26 = vrot.slane %v3135_v45, 4  ;;  %v3061_v50 = vadd.f32 %v3060_v16, %v2974_v7  ;;  %v6959_v16 = vld [vmem:[#allocation41_spill] sm:$0xff] }
 0x2f3   : > { %v3221_v55 = vadd.f32 %v3220_v37, %v3134_v19  ;;  %v3055_v42 = vadd.f32 %v3054_v17, %v2973_v60  ;;  %v3215_v30 = vadd.f32 %v3214_v8, %v3133_v41  ;;  %v3067_v63 = vadd.f32 %v3066_v36, %v2975_v20  ;;  %v6956_v60 = vld [vmem:[#allocation38_spill] sm:$0xff]  ;;  %v6958_v20 = vld [vmem:[#allocation40_spill] sm:$0xff] }
 0x2f4   : > { %v3051_v48 = vadd.f32 %v3050_v14, %v3049_v6  ;;  %v3211_v27 = vadd.f32 %v3210_v44, %v3209_v2  ;;  %v3227_v35 = vadd.f32 %v3226_v26, %v3135_v45  ;;  %v3062_v52 = vrot.slane %v3061_v50, 2  ;;  %v6957_v6 = vld [vmem:[#allocation39_spill] sm:$0xff]  ;;  %v6961_v8 = vld [vmem:[#allocation34_spill] sm:$0xff] }
 0x2f5   : > { %v3222_v32 = vrot.slane %v3221_v55, 2  ;;  %v3056_v22 = vrot.slane %v3055_v42, 2  ;;  %v3216_v18 = vrot.slane %v3215_v30, 2  ;;  %v3068_v15 = vrot.slane %v3067_v63, 2 }
 0x2f6   : > { %v3052_v53 = vrot.slane %v3051_v48, 1  ;;  %v3212_v59 = vrot.slane %v3211_v27, 1  ;;  %v3228_v0 = vrot.slane %v3227_v35, 2  ;;  %v3063_v61 = vadd.f32 %v3062_v52, %v3061_v50 }
 0x2f7   : > { %v3223_v21 = vadd.f32 %v3222_v32, %v3221_v55  ;;  %v3057_v43 = vadd.f32 %v3056_v22, %v3055_v42  ;;  %v3217_v56 = vadd.f32 %v3216_v18, %v3215_v30  ;;  %v3069_v54 = vadd.f32 %v3068_v15, %v3067_v63 }
 0x2f8   : > { %v3053_v13 = vadd.f32 %v3052_v53, %v3051_v48  ;;  %v3213_v49 = vadd.f32 %v3212_v59, %v3211_v27  ;;  %v3229_v10 = vadd.f32 %v3228_v0, %v3227_v35  ;;  %v3064_v24 = vrot.slane %v3063_v61, 1 }
 0x2f9   : > { %v3224_v25 = vrot.slane %v3223_v21, 1  ;;  %v3058_v51 = vrot.slane %v3057_v43, 1  ;;  %v3218_v38 = vrot.slane %v3217_v56, 1  ;;  %v3070_v40 = vrot.slane %v3069_v54, 1 }
 0x2fa   : > { %v3084_v29 = vadd.f32 %v3053_v13, %v6954_v39  ;;  %v3244_v28 = vadd.f32 %v3213_v49, %v6955_v1  ;;  %v3230_v31 = vrot.slane %v3229_v10, 1  ;;  %v3065_v46 = vadd.f32 %v3064_v24, %v3063_v61 }
 0x2fb   : > { %v3225_v12 = vadd.f32 %v3224_v25, %v3223_v21  ;;  %v3059_v34 = vadd.f32 %v3058_v51, %v3057_v43  ;;  %v3219_v9 = vadd.f32 %v3218_v38, %v3217_v56  ;;  %v3071_v7 = vadd.f32 %v3070_v40, %v3069_v54 }
 0x2fc   : > { %v3269_v57 = vsel %vm3268_vm5, %v3084_v29, %v6189_v62  ;;  %v3308_v4 = vsel %vm3307_vm6, %v3244_v28, %v6193_v33  ;;  %v3231_v19 = vadd.f32 %v3230_v31, %v3229_v10  ;;  %v3086_v41 = vadd.f32 %v3065_v46, %v6956_v60  ;;  %v6960_v62 = vld [vmem:[#allocation42_spill] sm:$0xff] }
 0x2fd   : > { %3283 = vst [vmem:[%s292_s2] sm:$0xf] %v3269_v57  ;;  %3322 = vst [vmem:[%s292_s2] sm:$0xf0] %v3308_v4  ;;  %v3246_v2 = vadd.f32 %v3225_v12, %v6957_v6  ;;  %v3085_v45 = vadd.f32 %v3059_v34, %v6958_v20  ;;  %v3245_v37 = vadd.f32 %v3219_v9, %v6959_v16 }
 0x2fe   : > { %v3087_v17 = vadd.f32 %v3071_v7, %v6960_v62  ;;  %v3247_v33 = vadd.f32 %v3231_v19, %v6961_v8  ;;  %v3275_v14 = vsel %vm3268_vm5, %v3086_v41, %v6203_v23 }
 0x2ff   : > { %v3314_v44 = vsel %vm3307_vm6, %v3246_v2, %v6207_v11  ;;  %v3272_v36 = vsel %vm3268_vm5, %v3085_v45, %v6215_v3  ;;  %v3311_v26 = vsel %vm3307_vm6, %v3245_v37, %v6219_v47  ;;  %3285 = vst [vmem:[%s292_s2 + $0x10] sm:$0xf] %v3275_v14 }
 0x300   : > { %3324 = vst [vmem:[%s292_s2 + $0x10] sm:$0xf0] %v3314_v44  ;;  %3284 = vst [vmem:[%s292_s2 + $0x8] sm:$0xf] %v3272_v36  ;;  %v3278_v23 = vsel %vm3268_vm5, %v3087_v17, %v6223_v58  ;;  %v3317_v11 = vsel %vm3307_vm6, %v3247_v33, %v6227_v5 }
 0x301   : > { %3323 = vst [vmem:[%s292_s2 + $0x8] sm:$0xf0] %v3311_v26  ;;  %3286 = vst [vmem:[%s292_s2 + $0x18] sm:$0xf] %v3278_v23 }
 0x302   : > { %3325 = vst [vmem:[%s292_s2 + $0x18] sm:$0xf0] %v3317_v11 }
 0x303   : > { %3826 = shalt.err (!%p3823_p5)
}
 0x304   : > { %s3827_s20 = scalar_lea.hbm %s6278_s23, 512  ;;  %s3831_s22 = scalar_lea.hbm %s6329_s4, 4096 }
 0x305   : > { %p3828_p11 = scmp.ne.s32.totalorder %s6278_s23, %s3827_s20  ;;  %p3832_p2 = scmp.lt.u32.totalorder %s6278_s23, %s6329_s4 }
 0x306   : > { %p3833_p3 = scmp.lt.u32.totalorder %s3831_s22, %s3827_s20  ;;  %p3835_p12 = scmp.lt.u32.totalorder %s3827_s20, %s6278_s23 }
 0x307   : > { %p3829_p9 = pnand %p3828_p11, %p6962_p4 }
 0x308   : > { %p3834_p13 = por %p3833_p3, %p3832_p2 }
 0x309   : > { %p3830_p0 = pneg %p3829_p9 }
 0x30a   : > { %p3836_p7 = por %p3835_p12, %p3834_p13 }
 0x30c   : > { %p3837_p8 = pnand %p3836_p7, %p3830_p0 }
 0x30e   : > { %3840 = shalt.err (!%p3837_p8)
}
 0x30f   : > { %3669 = dma.vmem_to_hbm [thread:$0]  (%p6962_p4), %s6280_s8, 512, %s6278_s23, %s3327_s6  }
 0x310 PF: > { %p3686_p6 = scmp.ge.s32.totalorder %s3883_s18, 2  ;;  %s3353_s29 = sand.u32 1, %s3871_s15  }
 0x311   : > { %p6963_p10 = scmp.ne.s32.totalorder %s6454_s27, 0  ;;  %s3354_s28 = scalar_lea.sflag [#allocation4], %s3353_s29 }
 0x313   : > { %p3682_p1 = pnand %p3686_p6, %p6963_p10 }
 0x315   : > { %3866 = dma.done.wait (!%p3682_p1), %s3354_s28, 512  }
 0x316   : > { %3868 = vsyncadd (!%p3682_p1), %s3354_s28, 4294966784  ;;  %s6964_s18 = sld [smem:[#allocation13_spill]]  ;;  %s6965_s9 = sld [smem:[#allocation12_spill]] }
 0x317   : > { %s6966_s17 = sld [smem:[#allocation14_spill]]  ;;  %s6967_s15 = smov %s3875_s16 }
 0x31c   : > { %p20_p5 = scmp.ge.s32.totalorder %s6964_s18, 10   ;;  %s6968_s16 = smov %s6965_s9 }
 0x31e   :  { %22 = sbr.rel (!%p20_p5) target bundleno = 9 (0x9), region = 117 }
 0x325   :  { %3359 = vsyncpa [#allocation3], 1 }
 0x326   :  { %3361 = vsyncpa [#allocation3 + $0x1], 1 }
 0x327   :  { %3362 = vsyncpa [#allocation6], 1 }
 0x328   :  { %3364 = vsyncpa [#allocation6 + $0x1], 1 }
 0x329   :  { %3365 = vsyncpa [#allocation4], 1 }
 0x32a   :  { %3367 = vsyncpa [#allocation4 + $0x1], 1 }

</bundles_post_ra>
